<compile_context>
chip_gen: v7x
topology: tpu7x:2x2x1
jax: 0.10.0
libtpu: 0.0.40
codegen_flags: <defaults>
</compile_context>

<pallas_src>
import functools
import math

import jax
import jax.numpy as jnp
from jax.experimental import pallas as pl
from jax.experimental.pallas import tpu as pltpu

INV_SQRT2 = 1.0 / math.sqrt(2.0)
LN_EPS = 1e-5  # nn.LayerNorm default


def _layer_norm(x, w, b):
    m = jnp.mean(x, axis=-1, keepdims=True)
    v = jnp.mean(jnp.square(x - m), axis=-1, keepdims=True)
    return (x - m) * jax.lax.rsqrt(v + LN_EPS) * w + b


def _gelu(x):  # exact erf GELU (nn.GELU default)
    return 0.5 * x * (1.0 + jax.lax.erf(x * INV_SQRT2))


# ----------------------------------------------------------------------------
# Fused mixecn kernel: one grid step = one batch item; everything stays in VMEM.
# ----------------------------------------------------------------------------
def _mixecn_kernel(x_ref, win_ref, bin_ref,
                   ln1w_ref, ln1b_ref,
                   wqkv_ref, bqkv_ref, wo_ref, bo_ref,
                   ln2w_ref, ln2b_ref,
                   w1_ref, b1_ref, w2_ref, b2_ref,
                   wout_ref, bout_ref,
                   o_ref, *, lays, heads, dim_head):
    # x_ref: (T, indim)   o_ref: (T, outdim_padded_to_128)
    inner = heads * dim_head
    x = x_ref[...]                                   # native dtype, no blanket up-cast
    # input projection (Identity handled via identity weights built host-side)
    h = jnp.dot(x, win_ref[...], preferred_element_type=jnp.float32) + bin_ref[...]

    for l in range(lays):                            # static unroll over layers
        # ---------------- multi-head self-attention (pre-LN, residual) ----------------
        r = h
        hn = _layer_norm(h, ln1w_ref[l], ln1b_ref[l])
        # single fused QKV matmul; the Q block already carries the 1/sqrt(dim_head) scale
        qkv = jnp.dot(hn, wqkv_ref[l], preferred_element_type=jnp.float32) + bqkv_ref[l]
        q = qkv[:, :inner]                           # 128-lane-aligned slices (inner = 256)
        k = qkv[:, inner:2 * inner]
        v = qkv[:, 2 * inner:]
        wo_l = wo_ref[l]                             # (inner, dim), loaded once per layer
        attn_out = jnp.zeros_like(r)
        for hd in range(heads):                      # static per-head loop
            sl = slice(hd * dim_head, (hd + 1) * dim_head)
            # q_h @ k_h^T without an explicit transpose (contract last dims)
            s = jnp.einsum("td,sd->ts", q[:, sl], k[:, sl],
                           preferred_element_type=jnp.float32)
            s = s - jnp.max(s, axis=-1, keepdims=True)
            p = jnp.exp(s)
            p = p * pl.reciprocal(jnp.sum(p, axis=-1, keepdims=True), approx=True)
            oh = jnp.dot(p, v[:, sl], preferred_element_type=jnp.float32)
            # fold the output projection per head: o @ Wo == sum_h o_h @ Wo[rows_h]
            attn_out = attn_out + jnp.dot(oh, wo_l[sl, :],
                                          preferred_element_type=jnp.float32)
        h = r + attn_out + bo_ref[l]

        # ---------------- FFN: kernel_size=1 conv == pointwise Linear, residual --------
        r = h
        hn = _layer_norm(h, ln2w_ref[l], ln2b_ref[l])
        u = jnp.dot(hn, w1_ref[l], preferred_element_type=jnp.float32) + b1_ref[l]
        u = _gelu(u)
        h = r + jnp.dot(u, w2_ref[l], preferred_element_type=jnp.float32) + b2_ref[l]

    # output projection, lane-dense (wout/bout zero-padded to a multiple of 128 lanes)
    y = jnp.dot(h, wout_ref[...], preferred_element_type=jnp.float32) + bout_ref[...]
    o_ref[...] = y.astype(o_ref.dtype)


def pack_params(params, *, dim_head):
    """One-time host-side packing of mixecn parameters for the fused kernel.

    Q/K/V weights are concatenated into a single (lays, dim, 3*inner) block so the kernel
    does one wide MXU matmul per layer; the 1/sqrt(dim_head) attention scale is folded
    into the Q block (exact rewrite). Done once, outside the kernel's hot path.
    """
    scale = 1.0 / math.sqrt(dim_head)
    p = dict(params)
    p["wqkv"] = jnp.concatenate(
        [params["wq"] * scale, params["wk"], params["wv"]], axis=-1)
    p["bqkv"] = jnp.concatenate(
        [params["bq"] * scale, params["bk"], params["bv"]], axis=-1)
    for n in ("wq", "bq", "wk", "bk", "wv", "bv"):
        del p[n]
    return p


def mixecn_forward(x, packed, outdim, *, heads, dim_head, taskemb=None, mask=None):
    # x: (B, T, indim), channels-last (channels on lanes, time on sublanes).
    # TODO(synk): attention mask / taskemb paths not implemented (both None in this demo).
    assert mask is None and taskemb is None
    B, T, indim = x.shape
    lays = packed["wqkv"].shape[0]
    n_pad = packed["w_out"].shape[1]     # outdim rounded up to a multiple of 128

    kernel = functools.partial(_mixecn_kernel, lays=lays, heads=heads, dim_head=dim_head)

    args = (x,
            packed["w_in"], packed["b_in"],
            packed["ln1_w"], packed["ln1_b"],
            packed["wqkv"], packed["bqkv"], packed["wo"], packed["bo"],
            packed["ln2_w"], packed["ln2_b"],
            packed["w1"], packed["b1"], packed["w2"], packed["b2"],
            packed["w_out"], packed["b_out"])

    def resident(a):                      # full array, VMEM-resident across the grid
        nd = a.ndim
        return pl.BlockSpec(a.shape, lambda b, _nd=nd: (0,) * _nd)

    in_specs = [pl.BlockSpec((None, T, indim), lambda b: (b, 0, 0))]
    in_specs += [resident(a) for a in args[1:]]

    y = pl.pallas_call(
        kernel,
        out_shape=jax.ShapeDtypeStruct((B, T, n_pad), x.dtype),
        grid=(B,),
        in_specs=in_specs,
        out_specs=pl.BlockSpec((None, T, n_pad), lambda b: (b, 0, 0)),
        compiler_params=pltpu.CompilerParams(
            dimension_semantics=("parallel",),
            vmem_limit_bytes=32 * 1024 * 1024,
        ),
    )(*args)
    return y[:, :, :outdim]


# ----------------------------------------------------------------------------
# Deterministic parameter init (shapes follow mixecn.__init__; synthetic values)
# ----------------------------------------------------------------------------
def init_params(key, indim, outdim, dim, lays, heads=4, dim_head=64, hideen_dim=None):
    inner = heads * dim_head
    hid = int(hideen_dim) if hideen_dim is not None else 4 * dim
    n_pad = -(-outdim // 128) * 128

    keys = jax.random.split(key, 4 + lays)

    def nrm(k, shape, scale=0.1):
        return (scale * jax.random.normal(k, shape)).astype(jnp.float32)

    # inl / outl: Linear if dims differ, Identity otherwise (exact identity matrix).
    if indim != dim:
        w_in, b_in = nrm(keys[0], (indim, dim)), nrm(keys[1], (1, dim))
    else:
        w_in, b_in = jnp.eye(dim, dtype=jnp.float32), jnp.zeros((1, dim), jnp.float32)
    if outdim != dim:
        w_out, b_out = nrm(keys[2], (dim, outdim)), nrm(keys[3], (1, outdim))
    else:
        w_out, b_out = jnp.eye(dim, dtype=jnp.float32), jnp.zeros((1, dim), jnp.float32)
    # lane-dense padding of the output projection (kernel stores dense 128-wide lanes)
    w_out = jnp.pad(w_out, ((0, 0), (0, n_pad - outdim)))
    b_out = jnp.pad(b_out, ((0, 0), (0, n_pad - outdim)))

    names = ["ln1_w", "ln1_b", "wq", "bq", "wk", "bk", "wv", "bv", "wo", "bo",
             "ln2_w", "ln2_b", "w1", "b1", "w2", "b2"]
    stacks = {n: [] for n in names}
    for l in range(lays):
        ks = jax.random.split(keys[4 + l], 12)
        stacks["ln1_w"].append(jnp.ones((1, dim), jnp.float32))
        stacks["ln1_b"].append(jnp.zeros((1, dim), jnp.float32))
        stacks["wq"].append(nrm(ks[0], (dim, inner)))
        stacks["bq"].append(nrm(ks[1], (1, inner)))
        stacks["wk"].append(nrm(ks[2], (dim, inner)))
        stacks["bk"].append(nrm(ks[3], (1, inner)))
        stacks["wv"].append(nrm(ks[4], (dim, inner)))
        stacks["bv"].append(nrm(ks[5], (1, inner)))
        stacks["wo"].append(nrm(ks[6], (inner, dim)))
        stacks["bo"].append(nrm(ks[7], (1, dim)))
        stacks["ln2_w"].append(jnp.ones((1, dim), jnp.float32))
        stacks["ln2_b"].append(jnp.zeros((1, dim), jnp.float32))
        stacks["w1"].append(nrm(ks[8], (dim, hid)))
        stacks["b1"].append(nrm(ks[9], (1, hid)))
        stacks["w2"].append(nrm(ks[10], (hid, dim)))
        stacks["b2"].append(nrm(ks[11], (1, dim)))

    params = {n: jnp.stack(v, axis=0) for n, v in stacks.items()}
    params.update(w_in=w_in, b_in=b_in, w_out=w_out, b_out=b_out)
    return params


# ----------------------------------------------------------------------------
# Pure-JAX reference (numeric sanity check, uses the UNPACKED parameters)
# ----------------------------------------------------------------------------
def reference_forward(x, params, outdim, *, heads, dim_head):
    hp = jax.lax.Precision.HIGHEST

    def ln(a, w, b):
        m = jnp.mean(a, -1, keepdims=True)
        v = jnp.mean((a - m) ** 2, -1, keepdims=True)
        return (a - m) / jnp.sqrt(v + LN_EPS) * w + b

    h = jnp.einsum("btc,cd->btd", x, params["w_in"], precision=hp) + params["b_in"][0]
    L = params["wq"].shape[0]
    scale = 1.0 / math.sqrt(dim_head)
    for l in range(L):
        r = h
        hn = ln(h, params["ln1_w"][l], params["ln1_b"][l])
        q = jnp.einsum("btc,cd->btd", hn, params["wq"][l], precision=hp) + params["bq"][l]
        k = jnp.einsum("btc,cd->btd", hn, params["wk"][l], precision=hp) + params["bk"][l]
        v = jnp.einsum("btc,cd->btd", hn, params["wv"][l], precision=hp) + params["bv"][l]
        B, T, inner = q.shape
        qh = q.reshape(B, T, heads, dim_head)
        kh = k.reshape(B, T, heads, dim_head)
        vh = v.reshape(B, T, heads, dim_head)
        s = jnp.einsum("bqhd,bkhd->bhqk", qh, kh, precision=hp) * scale
        s = s - jnp.max(s, -1, keepdims=True)
        p = jnp.exp(s)
        p = p / jnp.sum(p, -1, keepdims=True)
        o = jnp.einsum("bhqk,bkhd->bqhd", p, vh, precision=hp).reshape(B, T, inner)
        h = r + jnp.einsum("btc,cd->btd", o, params["wo"][l], precision=hp) + params["bo"][l]

        r = h
        hn = ln(h, params["ln2_w"][l], params["ln2_b"][l])
        u = jnp.einsum("btc,cd->btd", hn, params["w1"][l], precision=hp) + params["b1"][l]
        u = 0.5 * u * (1.0 + jax.lax.erf(u * INV_SQRT2))
        h = r + jnp.einsum("btc,cd->btd", u, params["w2"][l], precision=hp) + params["b2"][l]

    y = jnp.einsum("btc,cd->btd", h, params["w_out"], precision=hp) + params["b_out"][0]
    return y[:, :, :outdim]


if __name__ == "__main__":
    # small shapes consistent with mixecn(indim, outdim, dim, lays, heads, dim_head, hideen_dim)
    B, T = 2, 16
    indim, dim, outdim = 32, 64, 16
    lays, heads, dim_head, hideen_dim = 2, 4, 64, 128

    key = jax.random.PRNGKey(0)
    kx, kp = jax.random.split(key)
    x = jax.random.normal(kx, (B, T, indim), jnp.float32)
    params = init_params(kp, indim, outdim, dim, lays,
                         heads=heads, dim_head=dim_head, hideen_dim=hideen_dim)
    packed = pack_params(params, dim_head=dim_head)   # one-time host-side fuse of QKV + scale

    y = jax.block_until_ready(
        mixecn_forward(x, packed, outdim, heads=heads, dim_head=dim_head))
    assert y.shape == (B, T, outdim), y.shape

    y_ref = reference_forward(x, params, outdim, heads=heads, dim_head=dim_head)
    max_err = float(jnp.max(jnp.abs(y - y_ref)))
    assert max_err < 1e-2, f"max_err={max_err}"

    print("KERNEL_OK")
</pallas_src>

<mosaic_0001>
module attributes {stable_mosaic.version = 11 : i64} {
  func.func @_mixecn_kernel(%arg0: i32, %arg1: memref<1x16x32xf32, #tpu.memory_space<vmem>>, %arg2: memref<32x64xf32, #tpu.memory_space<vmem>>, %arg3: memref<1x64xf32, #tpu.memory_space<vmem>>, %arg4: memref<2x1x64xf32, #tpu.memory_space<vmem>>, %arg5: memref<2x1x64xf32, #tpu.memory_space<vmem>>, %arg6: memref<2x64x768xf32, #tpu.memory_space<vmem>>, %arg7: memref<2x1x768xf32, #tpu.memory_space<vmem>>, %arg8: memref<2x256x64xf32, #tpu.memory_space<vmem>>, %arg9: memref<2x1x64xf32, #tpu.memory_space<vmem>>, %arg10: memref<2x1x64xf32, #tpu.memory_space<vmem>>, %arg11: memref<2x1x64xf32, #tpu.memory_space<vmem>>, %arg12: memref<2x64x128xf32, #tpu.memory_space<vmem>>, %arg13: memref<2x1x128xf32, #tpu.memory_space<vmem>>, %arg14: memref<2x128x64xf32, #tpu.memory_space<vmem>>, %arg15: memref<2x1x64xf32, #tpu.memory_space<vmem>>, %arg16: memref<64x128xf32, #tpu.memory_space<vmem>>, %arg17: memref<1x128xf32, #tpu.memory_space<vmem>>, %arg18: memref<1x16x128xf32, #tpu.memory_space<vmem>>) attributes {dimension_semantics = [#tpu.dimension_semantics<parallel>], iteration_bounds = array<i64: 2>, scalar_prefetch = 0 : i64, scratch_operands = 0 : i64, tpu.core_type = #tpu.core_type<tc>, window_params = [{transform_indices = @transform_0, window_bounds = array<i64: 1, 16, 32>}, {pipeline_mode = #tpu.pipeline_mode<synchronous>, transform_indices = @transform_1, window_bounds = array<i64: 32, 64>}, {pipeline_mode = #tpu.pipeline_mode<synchronous>, transform_indices = @transform_2, window_bounds = array<i64: 1, 64>}, {pipeline_mode = #tpu.pipeline_mode<synchronous>, transform_indices = @transform_3, window_bounds = array<i64: 2, 1, 64>}, {pipeline_mode = #tpu.pipeline_mode<synchronous>, transform_indices = @transform_4, window_bounds = array<i64: 2, 1, 64>}, {pipeline_mode = #tpu.pipeline_mode<synchronous>, transform_indices = @transform_5, window_bounds = array<i64: 2, 64, 768>}, {pipeline_mode = #tpu.pipeline_mode<synchronous>, transform_indices = @transform_6, window_bounds = array<i64: 2, 1, 768>}, {pipeline_mode = #tpu.pipeline_mode<synchronous>, transform_indices = @transform_7, window_bounds = array<i64: 2, 256, 64>}, {pipeline_mode = #tpu.pipeline_mode<synchronous>, transform_indices = @transform_8, window_bounds = array<i64: 2, 1, 64>}, {pipeline_mode = #tpu.pipeline_mode<synchronous>, transform_indices = @transform_9, window_bounds = array<i64: 2, 1, 64>}, {pipeline_mode = #tpu.pipeline_mode<synchronous>, transform_indices = @transform_10, window_bounds = array<i64: 2, 1, 64>}, {pipeline_mode = #tpu.pipeline_mode<synchronous>, transform_indices = @transform_11, window_bounds = array<i64: 2, 64, 128>}, {pipeline_mode = #tpu.pipeline_mode<synchronous>, transform_indices = @transform_12, window_bounds = array<i64: 2, 1, 128>}, {pipeline_mode = #tpu.pipeline_mode<synchronous>, transform_indices = @transform_13, window_bounds = array<i64: 2, 128, 64>}, {pipeline_mode = #tpu.pipeline_mode<synchronous>, transform_indices = @transform_14, window_bounds = array<i64: 2, 1, 64>}, {pipeline_mode = #tpu.pipeline_mode<synchronous>, transform_indices = @transform_15, window_bounds = array<i64: 64, 128>}, {pipeline_mode = #tpu.pipeline_mode<synchronous>, transform_indices = @transform_16, window_bounds = array<i64: 1, 128>}, {transform_indices = @transform_17, window_bounds = array<i64: 1, 16, 128>}]} {
    %c0 = arith.constant 0 : index
    %c0_0 = arith.constant 0 : index
    %c0_1 = arith.constant 0 : index
    %0 = vector.load %arg1[%c0, %c0_0, %c0_1] : memref<1x16x32xf32, #tpu.memory_space<vmem>>, vector<1x16x32xf32>
    %1 = vector.shape_cast %0 : vector<1x16x32xf32> to vector<16x32xf32>
    %c0_2 = arith.constant 0 : index
    %c0_3 = arith.constant 0 : index
    %2 = vector.load %arg2[%c0_2, %c0_3] : memref<32x64xf32, #tpu.memory_space<vmem>>, vector<32x64xf32>
    %cst = arith.constant dense<0.000000e+00> : vector<16x64xf32>
    %3 = tpu.matmul %1, %2, %cst {dimension_numbers = #tpu.dot_dimension_numbers<[1], [0], [0], [1], [0, 0, 1, 1], [], []>} : vector<16x32xf32>, vector<32x64xf32>, vector<16x64xf32> -> vector<16x64xf32>
    %c0_4 = arith.constant 0 : index
    %c0_5 = arith.constant 0 : index
    %4 = vector.load %arg3[%c0_4, %c0_5] : memref<1x64xf32, #tpu.memory_space<vmem>>, vector<1x64xf32>
    %5 = vector.broadcast %4 : vector<1x64xf32> to vector<16x64xf32>
    %6 = arith.addf %3, %5 : vector<16x64xf32>
    %c0_6 = arith.constant 0 : index
    %c0_7 = arith.constant 0 : index
    %c0_8 = arith.constant 0 : index
    %7 = vector.load %arg4[%c0_6, %c0_7, %c0_8] : memref<2x1x64xf32, #tpu.memory_space<vmem>>, vector<1x1x64xf32>
    %8 = vector.shape_cast %7 : vector<1x1x64xf32> to vector<1x64xf32>
    %c0_9 = arith.constant 0 : index
    %c0_10 = arith.constant 0 : index
    %c0_11 = arith.constant 0 : index
    %9 = vector.load %arg5[%c0_9, %c0_10, %c0_11] : memref<2x1x64xf32, #tpu.memory_space<vmem>>, vector<1x1x64xf32>
    %10 = vector.shape_cast %9 : vector<1x1x64xf32> to vector<1x64xf32>
    %cst_12 = arith.constant dense<0.000000e+00> : vector<16xf32>
    %11 = vector.multi_reduction <add>, %6, %cst_12 [1] : vector<16x64xf32> to vector<16xf32>
    %12 = vector.shape_cast %11 : vector<16xf32> to vector<16x1xf32>
    %cst_13 = arith.constant 6.400000e+01 : f32
    %13 = vector.broadcast %cst_13 : f32 to vector<16x1xf32>
    %14 = arith.divf %12, %13 : vector<16x1xf32>
    %15 = vector.broadcast %14 : vector<16x1xf32> to vector<16x64xf32>
    %16 = arith.subf %6, %15 : vector<16x64xf32>
    %17 = arith.mulf %16, %16 : vector<16x64xf32>
    %cst_14 = arith.constant dense<0.000000e+00> : vector<16xf32>
    %18 = vector.multi_reduction <add>, %17, %cst_14 [1] : vector<16x64xf32> to vector<16xf32>
    %19 = vector.shape_cast %18 : vector<16xf32> to vector<16x1xf32>
    %cst_15 = arith.constant 6.400000e+01 : f32
    %20 = vector.broadcast %cst_15 : f32 to vector<16x1xf32>
    %21 = arith.divf %19, %20 : vector<16x1xf32>
    %22 = vector.broadcast %14 : vector<16x1xf32> to vector<16x64xf32>
    %23 = arith.subf %6, %22 : vector<16x64xf32>
    %cst_16 = arith.constant 9.99999974E-6 : f32
    %24 = vector.broadcast %cst_16 : f32 to vector<16x1xf32>
    %25 = arith.addf %21, %24 : vector<16x1xf32>
    %26 = math.rsqrt %25 : vector<16x1xf32>
    %27 = vector.broadcast %26 : vector<16x1xf32> to vector<16x64xf32>
    %28 = arith.mulf %23, %27 : vector<16x64xf32>
    %29 = vector.broadcast %8 : vector<1x64xf32> to vector<16x64xf32>
    %30 = arith.mulf %28, %29 : vector<16x64xf32>
    %31 = vector.broadcast %10 : vector<1x64xf32> to vector<16x64xf32>
    %32 = arith.addf %30, %31 : vector<16x64xf32>
    %c0_17 = arith.constant 0 : index
    %c0_18 = arith.constant 0 : index
    %c0_19 = arith.constant 0 : index
    %33 = vector.load %arg6[%c0_17, %c0_18, %c0_19] : memref<2x64x768xf32, #tpu.memory_space<vmem>>, vector<1x64x768xf32>
    %34 = vector.shape_cast %33 : vector<1x64x768xf32> to vector<64x768xf32>
    %cst_20 = arith.constant dense<0.000000e+00> : vector<16x768xf32>
    %35 = tpu.matmul %32, %34, %cst_20 {dimension_numbers = #tpu.dot_dimension_numbers<[1], [0], [0], [1], [0, 0, 1, 1], [], []>} : vector<16x64xf32>, vector<64x768xf32>, vector<16x768xf32> -> vector<16x768xf32>
    %c0_21 = arith.constant 0 : index
    %c0_22 = arith.constant 0 : index
    %c0_23 = arith.constant 0 : index
    %36 = vector.load %arg7[%c0_21, %c0_22, %c0_23] : memref<2x1x768xf32, #tpu.memory_space<vmem>>, vector<1x1x768xf32>
    %37 = vector.shape_cast %36 : vector<1x1x768xf32> to vector<1x768xf32>
    %38 = vector.broadcast %37 : vector<1x768xf32> to vector<16x768xf32>
    %39 = arith.addf %35, %38 : vector<16x768xf32>
    %40 = vector.extract_strided_slice %39 {offsets = [0, 0], sizes = [16, 256], strides = [1, 1]} : vector<16x768xf32> to vector<16x256xf32>
    %41 = vector.extract_strided_slice %39 {offsets = [0, 256], sizes = [16, 256], strides = [1, 1]} : vector<16x768xf32> to vector<16x256xf32>
    %42 = vector.extract_strided_slice %39 {offsets = [0, 512], sizes = [16, 256], strides = [1, 1]} : vector<16x768xf32> to vector<16x256xf32>
    %c0_24 = arith.constant 0 : index
    %c0_25 = arith.constant 0 : index
    %c0_26 = arith.constant 0 : index
    %43 = vector.load %arg8[%c0_24, %c0_25, %c0_26] : memref<2x256x64xf32, #tpu.memory_space<vmem>>, vector<1x256x64xf32>
    %44 = vector.shape_cast %43 : vector<1x256x64xf32> to vector<256x64xf32>
    %cst_27 = arith.constant 0.000000e+00 : f32
    %45 = vector.broadcast %cst_27 : f32 to vector<16x64xf32>
    %46 = vector.extract_strided_slice %40 {offsets = [0, 0], sizes = [16, 64], strides = [1, 1]} : vector<16x256xf32> to vector<16x64xf32>
    %47 = vector.extract_strided_slice %41 {offsets = [0, 0], sizes = [16, 64], strides = [1, 1]} : vector<16x256xf32> to vector<16x64xf32>
    "tpu.trace_start"() <{level = 10 : i32, message = "td,sd->ts"}> : () -> ()
    %cst_28 = arith.constant dense<0.000000e+00> : vector<16x16xf32>
    %48 = tpu.matmul %46, %47, %cst_28 {dimension_numbers = #tpu.dot_dimension_numbers<[1], [1], [0], [0], [0, 0, 1, 0], [], []>} : vector<16x64xf32>, vector<16x64xf32>, vector<16x16xf32> -> vector<16x16xf32>
    "tpu.trace_stop"() : () -> ()
    %cst_29 = arith.constant dense<0xFF800000> : vector<16xf32>
    %49 = vector.multi_reduction <maximumf>, %48, %cst_29 [1] : vector<16x16xf32> to vector<16xf32>
    %50 = vector.shape_cast %49 : vector<16xf32> to vector<16x1xf32>
    %51 = vector.broadcast %50 : vector<16x1xf32> to vector<16x16xf32>
    %52 = arith.subf %48, %51 : vector<16x16xf32>
    %53 = math.exp %52 : vector<16x16xf32>
    %cst_30 = arith.constant dense<0.000000e+00> : vector<16xf32>
    %54 = vector.multi_reduction <add>, %53, %cst_30 [1] : vector<16x16xf32> to vector<16xf32>
    %55 = vector.shape_cast %54 : vector<16xf32> to vector<16x1xf32>
    %56 = tpu.reciprocal %55 {approx = true} : vector<16x1xf32> -> vector<16x1xf32>
    %57 = vector.broadcast %56 : vector<16x1xf32> to vector<16x16xf32>
    %58 = arith.mulf %53, %57 : vector<16x16xf32>
    %59 = vector.extract_strided_slice %42 {offsets = [0, 0], sizes = [16, 64], strides = [1, 1]} : vector<16x256xf32> to vector<16x64xf32>
    %cst_31 = arith.constant dense<0.000000e+00> : vector<16x64xf32>
    %60 = tpu.matmul %58, %59, %cst_31 {dimension_numbers = #tpu.dot_dimension_numbers<[1], [0], [0], [1], [0, 0, 1, 1], [], []>} : vector<16x16xf32>, vector<16x64xf32>, vector<16x64xf32> -> vector<16x64xf32>
    %61 = vector.extract_strided_slice %44 {offsets = [0, 0], sizes = [64, 64], strides = [1, 1]} : vector<256x64xf32> to vector<64x64xf32>
    %cst_32 = arith.constant dense<0.000000e+00> : vector<16x64xf32>
    %62 = tpu.matmul %60, %61, %cst_32 {dimension_numbers = #tpu.dot_dimension_numbers<[1], [0], [0], [1], [0, 0, 1, 1], [], []>} : vector<16x64xf32>, vector<64x64xf32>, vector<16x64xf32> -> vector<16x64xf32>
    %63 = arith.addf %45, %62 : vector<16x64xf32>
    %64 = vector.extract_strided_slice %40 {offsets = [0, 64], sizes = [16, 64], strides = [1, 1]} : vector<16x256xf32> to vector<16x64xf32>
    %65 = vector.extract_strided_slice %41 {offsets = [0, 64], sizes = [16, 64], strides = [1, 1]} : vector<16x256xf32> to vector<16x64xf32>
    "tpu.trace_start"() <{level = 10 : i32, message = "td,sd->ts"}> : () -> ()
    %cst_33 = arith.constant dense<0.000000e+00> : vector<16x16xf32>
    %66 = tpu.matmul %64, %65, %cst_33 {dimension_numbers = #tpu.dot_dimension_numbers<[1], [1], [0], [0], [0, 0, 1, 0], [], []>} : vector<16x64xf32>, vector<16x64xf32>, vector<16x16xf32> -> vector<16x16xf32>
    "tpu.trace_stop"() : () -> ()
    %cst_34 = arith.constant dense<0xFF800000> : vector<16xf32>
    %67 = vector.multi_reduction <maximumf>, %66, %cst_34 [1] : vector<16x16xf32> to vector<16xf32>
    %68 = vector.shape_cast %67 : vector<16xf32> to vector<16x1xf32>
    %69 = vector.broadcast %68 : vector<16x1xf32> to vector<16x16xf32>
    %70 = arith.subf %66, %69 : vector<16x16xf32>
    %71 = math.exp %70 : vector<16x16xf32>
    %cst_35 = arith.constant dense<0.000000e+00> : vector<16xf32>
    %72 = vector.multi_reduction <add>, %71, %cst_35 [1] : vector<16x16xf32> to vector<16xf32>
    %73 = vector.shape_cast %72 : vector<16xf32> to vector<16x1xf32>
    %74 = tpu.reciprocal %73 {approx = true} : vector<16x1xf32> -> vector<16x1xf32>
    %75 = vector.broadcast %74 : vector<16x1xf32> to vector<16x16xf32>
    %76 = arith.mulf %71, %75 : vector<16x16xf32>
    %77 = vector.extract_strided_slice %42 {offsets = [0, 64], sizes = [16, 64], strides = [1, 1]} : vector<16x256xf32> to vector<16x64xf32>
    %cst_36 = arith.constant dense<0.000000e+00> : vector<16x64xf32>
    %78 = tpu.matmul %76, %77, %cst_36 {dimension_numbers = #tpu.dot_dimension_numbers<[1], [0], [0], [1], [0, 0, 1, 1], [], []>} : vector<16x16xf32>, vector<16x64xf32>, vector<16x64xf32> -> vector<16x64xf32>
    %79 = vector.extract_strided_slice %44 {offsets = [64, 0], sizes = [64, 64], strides = [1, 1]} : vector<256x64xf32> to vector<64x64xf32>
    %cst_37 = arith.constant dense<0.000000e+00> : vector<16x64xf32>
    %80 = tpu.matmul %78, %79, %cst_37 {dimension_numbers = #tpu.dot_dimension_numbers<[1], [0], [0], [1], [0, 0, 1, 1], [], []>} : vector<16x64xf32>, vector<64x64xf32>, vector<16x64xf32> -> vector<16x64xf32>
    %81 = arith.addf %63, %80 : vector<16x64xf32>
    %82 = vector.extract_strided_slice %40 {offsets = [0, 128], sizes = [16, 64], strides = [1, 1]} : vector<16x256xf32> to vector<16x64xf32>
    %83 = vector.extract_strided_slice %41 {offsets = [0, 128], sizes = [16, 64], strides = [1, 1]} : vector<16x256xf32> to vector<16x64xf32>
    "tpu.trace_start"() <{level = 10 : i32, message = "td,sd->ts"}> : () -> ()
    %cst_38 = arith.constant dense<0.000000e+00> : vector<16x16xf32>
    %84 = tpu.matmul %82, %83, %cst_38 {dimension_numbers = #tpu.dot_dimension_numbers<[1], [1], [0], [0], [0, 0, 1, 0], [], []>} : vector<16x64xf32>, vector<16x64xf32>, vector<16x16xf32> -> vector<16x16xf32>
    "tpu.trace_stop"() : () -> ()
    %cst_39 = arith.constant dense<0xFF800000> : vector<16xf32>
    %85 = vector.multi_reduction <maximumf>, %84, %cst_39 [1] : vector<16x16xf32> to vector<16xf32>
    %86 = vector.shape_cast %85 : vector<16xf32> to vector<16x1xf32>
    %87 = vector.broadcast %86 : vector<16x1xf32> to vector<16x16xf32>
    %88 = arith.subf %84, %87 : vector<16x16xf32>
    %89 = math.exp %88 : vector<16x16xf32>
    %cst_40 = arith.constant dense<0.000000e+00> : vector<16xf32>
    %90 = vector.multi_reduction <add>, %89, %cst_40 [1] : vector<16x16xf32> to vector<16xf32>
    %91 = vector.shape_cast %90 : vector<16xf32> to vector<16x1xf32>
    %92 = tpu.reciprocal %91 {approx = true} : vector<16x1xf32> -> vector<16x1xf32>
    %93 = vector.broadcast %92 : vector<16x1xf32> to vector<16x16xf32>
    %94 = arith.mulf %89, %93 : vector<16x16xf32>
    %95 = vector.extract_strided_slice %42 {offsets = [0, 128], sizes = [16, 64], strides = [1, 1]} : vector<16x256xf32> to vector<16x64xf32>
    %cst_41 = arith.constant dense<0.000000e+00> : vector<16x64xf32>
    %96 = tpu.matmul %94, %95, %cst_41 {dimension_numbers = #tpu.dot_dimension_numbers<[1], [0], [0], [1], [0, 0, 1, 1], [], []>} : vector<16x16xf32>, vector<16x64xf32>, vector<16x64xf32> -> vector<16x64xf32>
    %97 = vector.extract_strided_slice %44 {offsets = [128, 0], sizes = [64, 64], strides = [1, 1]} : vector<256x64xf32> to vector<64x64xf32>
    %cst_42 = arith.constant dense<0.000000e+00> : vector<16x64xf32>
    %98 = tpu.matmul %96, %97, %cst_42 {dimension_numbers = #tpu.dot_dimension_numbers<[1], [0], [0], [1], [0, 0, 1, 1], [], []>} : vector<16x64xf32>, vector<64x64xf32>, vector<16x64xf32> -> vector<16x64xf32>
    %99 = arith.addf %81, %98 : vector<16x64xf32>
    %100 = vector.extract_strided_slice %40 {offsets = [0, 192], sizes = [16, 64], strides = [1, 1]} : vector<16x256xf32> to vector<16x64xf32>
    %101 = vector.extract_strided_slice %41 {offsets = [0, 192], sizes = [16, 64], strides = [1, 1]} : vector<16x256xf32> to vector<16x64xf32>
    "tpu.trace_start"() <{level = 10 : i32, message = "td,sd->ts"}> : () -> ()
    %cst_43 = arith.constant dense<0.000000e+00> : vector<16x16xf32>
    %102 = tpu.matmul %100, %101, %cst_43 {dimension_numbers = #tpu.dot_dimension_numbers<[1], [1], [0], [0], [0, 0, 1, 0], [], []>} : vector<16x64xf32>, vector<16x64xf32>, vector<16x16xf32> -> vector<16x16xf32>
    "tpu.trace_stop"() : () -> ()
    %cst_44 = arith.constant dense<0xFF800000> : vector<16xf32>
    %103 = vector.multi_reduction <maximumf>, %102, %cst_44 [1] : vector<16x16xf32> to vector<16xf32>
    %104 = vector.shape_cast %103 : vector<16xf32> to vector<16x1xf32>
    %105 = vector.broadcast %104 : vector<16x1xf32> to vector<16x16xf32>
    %106 = arith.subf %102, %105 : vector<16x16xf32>
    %107 = math.exp %106 : vector<16x16xf32>
    %cst_45 = arith.constant dense<0.000000e+00> : vector<16xf32>
    %108 = vector.multi_reduction <add>, %107, %cst_45 [1] : vector<16x16xf32> to vector<16xf32>
    %109 = vector.shape_cast %108 : vector<16xf32> to vector<16x1xf32>
    %110 = tpu.reciprocal %109 {approx = true} : vector<16x1xf32> -> vector<16x1xf32>
    %111 = vector.broadcast %110 : vector<16x1xf32> to vector<16x16xf32>
    %112 = arith.mulf %107, %111 : vector<16x16xf32>
    %113 = vector.extract_strided_slice %42 {offsets = [0, 192], sizes = [16, 64], strides = [1, 1]} : vector<16x256xf32> to vector<16x64xf32>
    %cst_46 = arith.constant dense<0.000000e+00> : vector<16x64xf32>
    %114 = tpu.matmul %112, %113, %cst_46 {dimension_numbers = #tpu.dot_dimension_numbers<[1], [0], [0], [1], [0, 0, 1, 1], [], []>} : vector<16x16xf32>, vector<16x64xf32>, vector<16x64xf32> -> vector<16x64xf32>
    %115 = vector.extract_strided_slice %44 {offsets = [192, 0], sizes = [64, 64], strides = [1, 1]} : vector<256x64xf32> to vector<64x64xf32>
    %cst_47 = arith.constant dense<0.000000e+00> : vector<16x64xf32>
    %116 = tpu.matmul %114, %115, %cst_47 {dimension_numbers = #tpu.dot_dimension_numbers<[1], [0], [0], [1], [0, 0, 1, 1], [], []>} : vector<16x64xf32>, vector<64x64xf32>, vector<16x64xf32> -> vector<16x64xf32>
    %117 = arith.addf %99, %116 : vector<16x64xf32>
    %118 = arith.addf %6, %117 : vector<16x64xf32>
    %c0_48 = arith.constant 0 : index
    %c0_49 = arith.constant 0 : index
    %c0_50 = arith.constant 0 : index
    %119 = vector.load %arg9[%c0_48, %c0_49, %c0_50] : memref<2x1x64xf32, #tpu.memory_space<vmem>>, vector<1x1x64xf32>
    %120 = vector.shape_cast %119 : vector<1x1x64xf32> to vector<1x64xf32>
    %121 = vector.broadcast %120 : vector<1x64xf32> to vector<16x64xf32>
    %122 = arith.addf %118, %121 : vector<16x64xf32>
    %c0_51 = arith.constant 0 : index
    %c0_52 = arith.constant 0 : index
    %c0_53 = arith.constant 0 : index
    %123 = vector.load %arg10[%c0_51, %c0_52, %c0_53] : memref<2x1x64xf32, #tpu.memory_space<vmem>>, vector<1x1x64xf32>
    %124 = vector.shape_cast %123 : vector<1x1x64xf32> to vector<1x64xf32>
    %c0_54 = arith.constant 0 : index
    %c0_55 = arith.constant 0 : index
    %c0_56 = arith.constant 0 : index
    %125 = vector.load %arg11[%c0_54, %c0_55, %c0_56] : memref<2x1x64xf32, #tpu.memory_space<vmem>>, vector<1x1x64xf32>
    %126 = vector.shape_cast %125 : vector<1x1x64xf32> to vector<1x64xf32>
    %cst_57 = arith.constant dense<0.000000e+00> : vector<16xf32>
    %127 = vector.multi_reduction <add>, %122, %cst_57 [1] : vector<16x64xf32> to vector<16xf32>
    %128 = vector.shape_cast %127 : vector<16xf32> to vector<16x1xf32>
    %cst_58 = arith.constant 6.400000e+01 : f32
    %129 = vector.broadcast %cst_58 : f32 to vector<16x1xf32>
    %130 = arith.divf %128, %129 : vector<16x1xf32>
    %131 = vector.broadcast %130 : vector<16x1xf32> to vector<16x64xf32>
    %132 = arith.subf %122, %131 : vector<16x64xf32>
    %133 = arith.mulf %132, %132 : vector<16x64xf32>
    %cst_59 = arith.constant dense<0.000000e+00> : vector<16xf32>
    %134 = vector.multi_reduction <add>, %133, %cst_59 [1] : vector<16x64xf32> to vector<16xf32>
    %135 = vector.shape_cast %134 : vector<16xf32> to vector<16x1xf32>
    %cst_60 = arith.constant 6.400000e+01 : f32
    %136 = vector.broadcast %cst_60 : f32 to vector<16x1xf32>
    %137 = arith.divf %135, %136 : vector<16x1xf32>
    %138 = vector.broadcast %130 : vector<16x1xf32> to vector<16x64xf32>
    %139 = arith.subf %122, %138 : vector<16x64xf32>
    %cst_61 = arith.constant 9.99999974E-6 : f32
    %140 = vector.broadcast %cst_61 : f32 to vector<16x1xf32>
    %141 = arith.addf %137, %140 : vector<16x1xf32>
    %142 = math.rsqrt %141 : vector<16x1xf32>
    %143 = vector.broadcast %142 : vector<16x1xf32> to vector<16x64xf32>
    %144 = arith.mulf %139, %143 : vector<16x64xf32>
    %145 = vector.broadcast %124 : vector<1x64xf32> to vector<16x64xf32>
    %146 = arith.mulf %144, %145 : vector<16x64xf32>
    %147 = vector.broadcast %126 : vector<1x64xf32> to vector<16x64xf32>
    %148 = arith.addf %146, %147 : vector<16x64xf32>
    %c0_62 = arith.constant 0 : index
    %c0_63 = arith.constant 0 : index
    %c0_64 = arith.constant 0 : index
    %149 = vector.load %arg12[%c0_62, %c0_63, %c0_64] : memref<2x64x128xf32, #tpu.memory_space<vmem>>, vector<1x64x128xf32>
    %150 = vector.shape_cast %149 : vector<1x64x128xf32> to vector<64x128xf32>
    %cst_65 = arith.constant dense<0.000000e+00> : vector<16x128xf32>
    %151 = tpu.matmul %148, %150, %cst_65 {dimension_numbers = #tpu.dot_dimension_numbers<[1], [0], [0], [1], [0, 0, 1, 1], [], []>} : vector<16x64xf32>, vector<64x128xf32>, vector<16x128xf32> -> vector<16x128xf32>
    %c0_66 = arith.constant 0 : index
    %c0_67 = arith.constant 0 : index
    %c0_68 = arith.constant 0 : index
    %152 = vector.load %arg13[%c0_66, %c0_67, %c0_68] : memref<2x1x128xf32, #tpu.memory_space<vmem>>, vector<1x1x128xf32>
    %153 = vector.shape_cast %152 : vector<1x1x128xf32> to vector<1x128xf32>
    %154 = vector.broadcast %153 : vector<1x128xf32> to vector<16x128xf32>
    %155 = arith.addf %151, %154 : vector<16x128xf32>
    %cst_69 = arith.constant 5.000000e-01 : f32
    %156 = vector.broadcast %cst_69 : f32 to vector<16x128xf32>
    %157 = arith.mulf %156, %155 : vector<16x128xf32>
    %cst_70 = arith.constant 0.707106769 : f32
    %158 = vector.broadcast %cst_70 : f32 to vector<16x128xf32>
    %159 = arith.mulf %155, %158 : vector<16x128xf32>
    %160 = math.erf %159 : vector<16x128xf32>
    %cst_71 = arith.constant 1.000000e+00 : f32
    %161 = vector.broadcast %cst_71 : f32 to vector<16x128xf32>
    %162 = arith.addf %161, %160 : vector<16x128xf32>
    %163 = arith.mulf %157, %162 : vector<16x128xf32>
    %c0_72 = arith.constant 0 : index
    %c0_73 = arith.constant 0 : index
    %c0_74 = arith.constant 0 : index
    %164 = vector.load %arg14[%c0_72, %c0_73, %c0_74] : memref<2x128x64xf32, #tpu.memory_space<vmem>>, vector<1x128x64xf32>
    %165 = vector.shape_cast %164 : vector<1x128x64xf32> to vector<128x64xf32>
    %cst_75 = arith.constant dense<0.000000e+00> : vector<16x64xf32>
    %166 = tpu.matmul %163, %165, %cst_75 {dimension_numbers = #tpu.dot_dimension_numbers<[1], [0], [0], [1], [0, 0, 1, 1], [], []>} : vector<16x128xf32>, vector<128x64xf32>, vector<16x64xf32> -> vector<16x64xf32>
    %167 = arith.addf %122, %166 : vector<16x64xf32>
    %c0_76 = arith.constant 0 : index
    %c0_77 = arith.constant 0 : index
    %c0_78 = arith.constant 0 : index
    %168 = vector.load %arg15[%c0_76, %c0_77, %c0_78] : memref<2x1x64xf32, #tpu.memory_space<vmem>>, vector<1x1x64xf32>
    %169 = vector.shape_cast %168 : vector<1x1x64xf32> to vector<1x64xf32>
    %170 = vector.broadcast %169 : vector<1x64xf32> to vector<16x64xf32>
    %171 = arith.addf %167, %170 : vector<16x64xf32>
    %c1 = arith.constant 1 : index
    %c0_79 = arith.constant 0 : index
    %c0_80 = arith.constant 0 : index
    %172 = vector.load %arg4[%c1, %c0_79, %c0_80] : memref<2x1x64xf32, #tpu.memory_space<vmem>>, vector<1x1x64xf32>
    %173 = vector.shape_cast %172 : vector<1x1x64xf32> to vector<1x64xf32>
    %c1_81 = arith.constant 1 : index
    %c0_82 = arith.constant 0 : index
    %c0_83 = arith.constant 0 : index
    %174 = vector.load %arg5[%c1_81, %c0_82, %c0_83] : memref<2x1x64xf32, #tpu.memory_space<vmem>>, vector<1x1x64xf32>
    %175 = vector.shape_cast %174 : vector<1x1x64xf32> to vector<1x64xf32>
    %cst_84 = arith.constant dense<0.000000e+00> : vector<16xf32>
    %176 = vector.multi_reduction <add>, %171, %cst_84 [1] : vector<16x64xf32> to vector<16xf32>
    %177 = vector.shape_cast %176 : vector<16xf32> to vector<16x1xf32>
    %cst_85 = arith.constant 6.400000e+01 : f32
    %178 = vector.broadcast %cst_85 : f32 to vector<16x1xf32>
    %179 = arith.divf %177, %178 : vector<16x1xf32>
    %180 = vector.broadcast %179 : vector<16x1xf32> to vector<16x64xf32>
    %181 = arith.subf %171, %180 : vector<16x64xf32>
    %182 = arith.mulf %181, %181 : vector<16x64xf32>
    %cst_86 = arith.constant dense<0.000000e+00> : vector<16xf32>
    %183 = vector.multi_reduction <add>, %182, %cst_86 [1] : vector<16x64xf32> to vector<16xf32>
    %184 = vector.shape_cast %183 : vector<16xf32> to vector<16x1xf32>
    %cst_87 = arith.constant 6.400000e+01 : f32
    %185 = vector.broadcast %cst_87 : f32 to vector<16x1xf32>
    %186 = arith.divf %184, %185 : vector<16x1xf32>
    %187 = vector.broadcast %179 : vector<16x1xf32> to vector<16x64xf32>
    %188 = arith.subf %171, %187 : vector<16x64xf32>
    %cst_88 = arith.constant 9.99999974E-6 : f32
    %189 = vector.broadcast %cst_88 : f32 to vector<16x1xf32>
    %190 = arith.addf %186, %189 : vector<16x1xf32>
    %191 = math.rsqrt %190 : vector<16x1xf32>
    %192 = vector.broadcast %191 : vector<16x1xf32> to vector<16x64xf32>
    %193 = arith.mulf %188, %192 : vector<16x64xf32>
    %194 = vector.broadcast %173 : vector<1x64xf32> to vector<16x64xf32>
    %195 = arith.mulf %193, %194 : vector<16x64xf32>
    %196 = vector.broadcast %175 : vector<1x64xf32> to vector<16x64xf32>
    %197 = arith.addf %195, %196 : vector<16x64xf32>
    %c1_89 = arith.constant 1 : index
    %c0_90 = arith.constant 0 : index
    %c0_91 = arith.constant 0 : index
    %198 = vector.load %arg6[%c1_89, %c0_90, %c0_91] : memref<2x64x768xf32, #tpu.memory_space<vmem>>, vector<1x64x768xf32>
    %199 = vector.shape_cast %198 : vector<1x64x768xf32> to vector<64x768xf32>
    %cst_92 = arith.constant dense<0.000000e+00> : vector<16x768xf32>
    %200 = tpu.matmul %197, %199, %cst_92 {dimension_numbers = #tpu.dot_dimension_numbers<[1], [0], [0], [1], [0, 0, 1, 1], [], []>} : vector<16x64xf32>, vector<64x768xf32>, vector<16x768xf32> -> vector<16x768xf32>
    %c1_93 = arith.constant 1 : index
    %c0_94 = arith.constant 0 : index
    %c0_95 = arith.constant 0 : index
    %201 = vector.load %arg7[%c1_93, %c0_94, %c0_95] : memref<2x1x768xf32, #tpu.memory_space<vmem>>, vector<1x1x768xf32>
    %202 = vector.shape_cast %201 : vector<1x1x768xf32> to vector<1x768xf32>
    %203 = vector.broadcast %202 : vector<1x768xf32> to vector<16x768xf32>
    %204 = arith.addf %200, %203 : vector<16x768xf32>
    %205 = vector.extract_strided_slice %204 {offsets = [0, 0], sizes = [16, 256], strides = [1, 1]} : vector<16x768xf32> to vector<16x256xf32>
    %206 = vector.extract_strided_slice %204 {offsets = [0, 256], sizes = [16, 256], strides = [1, 1]} : vector<16x768xf32> to vector<16x256xf32>
    %207 = vector.extract_strided_slice %204 {offsets = [0, 512], sizes = [16, 256], strides = [1, 1]} : vector<16x768xf32> to vector<16x256xf32>
    %c1_96 = arith.constant 1 : index
    %c0_97 = arith.constant 0 : index
    %c0_98 = arith.constant 0 : index
    %208 = vector.load %arg8[%c1_96, %c0_97, %c0_98] : memref<2x256x64xf32, #tpu.memory_space<vmem>>, vector<1x256x64xf32>
    %209 = vector.shape_cast %208 : vector<1x256x64xf32> to vector<256x64xf32>
    %cst_99 = arith.constant 0.000000e+00 : f32
    %210 = vector.broadcast %cst_99 : f32 to vector<16x64xf32>
    %211 = vector.extract_strided_slice %205 {offsets = [0, 0], sizes = [16, 64], strides = [1, 1]} : vector<16x256xf32> to vector<16x64xf32>
    %212 = vector.extract_strided_slice %206 {offsets = [0, 0], sizes = [16, 64], strides = [1, 1]} : vector<16x256xf32> to vector<16x64xf32>
    "tpu.trace_start"() <{level = 10 : i32, message = "td,sd->ts"}> : () -> ()
    %cst_100 = arith.constant dense<0.000000e+00> : vector<16x16xf32>
    %213 = tpu.matmul %211, %212, %cst_100 {dimension_numbers = #tpu.dot_dimension_numbers<[1], [1], [0], [0], [0, 0, 1, 0], [], []>} : vector<16x64xf32>, vector<16x64xf32>, vector<16x16xf32> -> vector<16x16xf32>
    "tpu.trace_stop"() : () -> ()
    %cst_101 = arith.constant dense<0xFF800000> : vector<16xf32>
    %214 = vector.multi_reduction <maximumf>, %213, %cst_101 [1] : vector<16x16xf32> to vector<16xf32>
    %215 = vector.shape_cast %214 : vector<16xf32> to vector<16x1xf32>
    %216 = vector.broadcast %215 : vector<16x1xf32> to vector<16x16xf32>
    %217 = arith.subf %213, %216 : vector<16x16xf32>
    %218 = math.exp %217 : vector<16x16xf32>
    %cst_102 = arith.constant dense<0.000000e+00> : vector<16xf32>
    %219 = vector.multi_reduction <add>, %218, %cst_102 [1] : vector<16x16xf32> to vector<16xf32>
    %220 = vector.shape_cast %219 : vector<16xf32> to vector<16x1xf32>
    %221 = tpu.reciprocal %220 {approx = true} : vector<16x1xf32> -> vector<16x1xf32>
    %222 = vector.broadcast %221 : vector<16x1xf32> to vector<16x16xf32>
    %223 = arith.mulf %218, %222 : vector<16x16xf32>
    %224 = vector.extract_strided_slice %207 {offsets = [0, 0], sizes = [16, 64], strides = [1, 1]} : vector<16x256xf32> to vector<16x64xf32>
    %cst_103 = arith.constant dense<0.000000e+00> : vector<16x64xf32>
    %225 = tpu.matmul %223, %224, %cst_103 {dimension_numbers = #tpu.dot_dimension_numbers<[1], [0], [0], [1], [0, 0, 1, 1], [], []>} : vector<16x16xf32>, vector<16x64xf32>, vector<16x64xf32> -> vector<16x64xf32>
    %226 = vector.extract_strided_slice %209 {offsets = [0, 0], sizes = [64, 64], strides = [1, 1]} : vector<256x64xf32> to vector<64x64xf32>
    %cst_104 = arith.constant dense<0.000000e+00> : vector<16x64xf32>
    %227 = tpu.matmul %225, %226, %cst_104 {dimension_numbers = #tpu.dot_dimension_numbers<[1], [0], [0], [1], [0, 0, 1, 1], [], []>} : vector<16x64xf32>, vector<64x64xf32>, vector<16x64xf32> -> vector<16x64xf32>
    %228 = arith.addf %210, %227 : vector<16x64xf32>
    %229 = vector.extract_strided_slice %205 {offsets = [0, 64], sizes = [16, 64], strides = [1, 1]} : vector<16x256xf32> to vector<16x64xf32>
    %230 = vector.extract_strided_slice %206 {offsets = [0, 64], sizes = [16, 64], strides = [1, 1]} : vector<16x256xf32> to vector<16x64xf32>
    "tpu.trace_start"() <{level = 10 : i32, message = "td,sd->ts"}> : () -> ()
    %cst_105 = arith.constant dense<0.000000e+00> : vector<16x16xf32>
    %231 = tpu.matmul %229, %230, %cst_105 {dimension_numbers = #tpu.dot_dimension_numbers<[1], [1], [0], [0], [0, 0, 1, 0], [], []>} : vector<16x64xf32>, vector<16x64xf32>, vector<16x16xf32> -> vector<16x16xf32>
    "tpu.trace_stop"() : () -> ()
    %cst_106 = arith.constant dense<0xFF800000> : vector<16xf32>
    %232 = vector.multi_reduction <maximumf>, %231, %cst_106 [1] : vector<16x16xf32> to vector<16xf32>
    %233 = vector.shape_cast %232 : vector<16xf32> to vector<16x1xf32>
    %234 = vector.broadcast %233 : vector<16x1xf32> to vector<16x16xf32>
    %235 = arith.subf %231, %234 : vector<16x16xf32>
    %236 = math.exp %235 : vector<16x16xf32>
    %cst_107 = arith.constant dense<0.000000e+00> : vector<16xf32>
    %237 = vector.multi_reduction <add>, %236, %cst_107 [1] : vector<16x16xf32> to vector<16xf32>
    %238 = vector.shape_cast %237 : vector<16xf32> to vector<16x1xf32>
    %239 = tpu.reciprocal %238 {approx = true} : vector<16x1xf32> -> vector<16x1xf32>
    %240 = vector.broadcast %239 : vector<16x1xf32> to vector<16x16xf32>
    %241 = arith.mulf %236, %240 : vector<16x16xf32>
    %242 = vector.extract_strided_slice %207 {offsets = [0, 64], sizes = [16, 64], strides = [1, 1]} : vector<16x256xf32> to vector<16x64xf32>
    %cst_108 = arith.constant dense<0.000000e+00> : vector<16x64xf32>
    %243 = tpu.matmul %241, %242, %cst_108 {dimension_numbers = #tpu.dot_dimension_numbers<[1], [0], [0], [1], [0, 0, 1, 1], [], []>} : vector<16x16xf32>, vector<16x64xf32>, vector<16x64xf32> -> vector<16x64xf32>
    %244 = vector.extract_strided_slice %209 {offsets = [64, 0], sizes = [64, 64], strides = [1, 1]} : vector<256x64xf32> to vector<64x64xf32>
    %cst_109 = arith.constant dense<0.000000e+00> : vector<16x64xf32>
    %245 = tpu.matmul %243, %244, %cst_109 {dimension_numbers = #tpu.dot_dimension_numbers<[1], [0], [0], [1], [0, 0, 1, 1], [], []>} : vector<16x64xf32>, vector<64x64xf32>, vector<16x64xf32> -> vector<16x64xf32>
    %246 = arith.addf %228, %245 : vector<16x64xf32>
    %247 = vector.extract_strided_slice %205 {offsets = [0, 128], sizes = [16, 64], strides = [1, 1]} : vector<16x256xf32> to vector<16x64xf32>
    %248 = vector.extract_strided_slice %206 {offsets = [0, 128], sizes = [16, 64], strides = [1, 1]} : vector<16x256xf32> to vector<16x64xf32>
    "tpu.trace_start"() <{level = 10 : i32, message = "td,sd->ts"}> : () -> ()
    %cst_110 = arith.constant dense<0.000000e+00> : vector<16x16xf32>
    %249 = tpu.matmul %247, %248, %cst_110 {dimension_numbers = #tpu.dot_dimension_numbers<[1], [1], [0], [0], [0, 0, 1, 0], [], []>} : vector<16x64xf32>, vector<16x64xf32>, vector<16x16xf32> -> vector<16x16xf32>
    "tpu.trace_stop"() : () -> ()
    %cst_111 = arith.constant dense<0xFF800000> : vector<16xf32>
    %250 = vector.multi_reduction <maximumf>, %249, %cst_111 [1] : vector<16x16xf32> to vector<16xf32>
    %251 = vector.shape_cast %250 : vector<16xf32> to vector<16x1xf32>
    %252 = vector.broadcast %251 : vector<16x1xf32> to vector<16x16xf32>
    %253 = arith.subf %249, %252 : vector<16x16xf32>
    %254 = math.exp %253 : vector<16x16xf32>
    %cst_112 = arith.constant dense<0.000000e+00> : vector<16xf32>
    %255 = vector.multi_reduction <add>, %254, %cst_112 [1] : vector<16x16xf32> to vector<16xf32>
    %256 = vector.shape_cast %255 : vector<16xf32> to vector<16x1xf32>
    %257 = tpu.reciprocal %256 {approx = true} : vector<16x1xf32> -> vector<16x1xf32>
    %258 = vector.broadcast %257 : vector<16x1xf32> to vector<16x16xf32>
    %259 = arith.mulf %254, %258 : vector<16x16xf32>
    %260 = vector.extract_strided_slice %207 {offsets = [0, 128], sizes = [16, 64], strides = [1, 1]} : vector<16x256xf32> to vector<16x64xf32>
    %cst_113 = arith.constant dense<0.000000e+00> : vector<16x64xf32>
    %261 = tpu.matmul %259, %260, %cst_113 {dimension_numbers = #tpu.dot_dimension_numbers<[1], [0], [0], [1], [0, 0, 1, 1], [], []>} : vector<16x16xf32>, vector<16x64xf32>, vector<16x64xf32> -> vector<16x64xf32>
    %262 = vector.extract_strided_slice %209 {offsets = [128, 0], sizes = [64, 64], strides = [1, 1]} : vector<256x64xf32> to vector<64x64xf32>
    %cst_114 = arith.constant dense<0.000000e+00> : vector<16x64xf32>
    %263 = tpu.matmul %261, %262, %cst_114 {dimension_numbers = #tpu.dot_dimension_numbers<[1], [0], [0], [1], [0, 0, 1, 1], [], []>} : vector<16x64xf32>, vector<64x64xf32>, vector<16x64xf32> -> vector<16x64xf32>
    %264 = arith.addf %246, %263 : vector<16x64xf32>
    %265 = vector.extract_strided_slice %205 {offsets = [0, 192], sizes = [16, 64], strides = [1, 1]} : vector<16x256xf32> to vector<16x64xf32>
    %266 = vector.extract_strided_slice %206 {offsets = [0, 192], sizes = [16, 64], strides = [1, 1]} : vector<16x256xf32> to vector<16x64xf32>
    "tpu.trace_start"() <{level = 10 : i32, message = "td,sd->ts"}> : () -> ()
    %cst_115 = arith.constant dense<0.000000e+00> : vector<16x16xf32>
    %267 = tpu.matmul %265, %266, %cst_115 {dimension_numbers = #tpu.dot_dimension_numbers<[1], [1], [0], [0], [0, 0, 1, 0], [], []>} : vector<16x64xf32>, vector<16x64xf32>, vector<16x16xf32> -> vector<16x16xf32>
    "tpu.trace_stop"() : () -> ()
    %cst_116 = arith.constant dense<0xFF800000> : vector<16xf32>
    %268 = vector.multi_reduction <maximumf>, %267, %cst_116 [1] : vector<16x16xf32> to vector<16xf32>
    %269 = vector.shape_cast %268 : vector<16xf32> to vector<16x1xf32>
    %270 = vector.broadcast %269 : vector<16x1xf32> to vector<16x16xf32>
    %271 = arith.subf %267, %270 : vector<16x16xf32>
    %272 = math.exp %271 : vector<16x16xf32>
    %cst_117 = arith.constant dense<0.000000e+00> : vector<16xf32>
    %273 = vector.multi_reduction <add>, %272, %cst_117 [1] : vector<16x16xf32> to vector<16xf32>
    %274 = vector.shape_cast %273 : vector<16xf32> to vector<16x1xf32>
    %275 = tpu.reciprocal %274 {approx = true} : vector<16x1xf32> -> vector<16x1xf32>
    %276 = vector.broadcast %275 : vector<16x1xf32> to vector<16x16xf32>
    %277 = arith.mulf %272, %276 : vector<16x16xf32>
    %278 = vector.extract_strided_slice %207 {offsets = [0, 192], sizes = [16, 64], strides = [1, 1]} : vector<16x256xf32> to vector<16x64xf32>
    %cst_118 = arith.constant dense<0.000000e+00> : vector<16x64xf32>
    %279 = tpu.matmul %277, %278, %cst_118 {dimension_numbers = #tpu.dot_dimension_numbers<[1], [0], [0], [1], [0, 0, 1, 1], [], []>} : vector<16x16xf32>, vector<16x64xf32>, vector<16x64xf32> -> vector<16x64xf32>
    %280 = vector.extract_strided_slice %209 {offsets = [192, 0], sizes = [64, 64], strides = [1, 1]} : vector<256x64xf32> to vector<64x64xf32>
    %cst_119 = arith.constant dense<0.000000e+00> : vector<16x64xf32>
    %281 = tpu.matmul %279, %280, %cst_119 {dimension_numbers = #tpu.dot_dimension_numbers<[1], [0], [0], [1], [0, 0, 1, 1], [], []>} : vector<16x64xf32>, vector<64x64xf32>, vector<16x64xf32> -> vector<16x64xf32>
    %282 = arith.addf %264, %281 : vector<16x64xf32>
    %283 = arith.addf %171, %282 : vector<16x64xf32>
    %c1_120 = arith.constant 1 : index
    %c0_121 = arith.constant 0 : index
    %c0_122 = arith.constant 0 : index
    %284 = vector.load %arg9[%c1_120, %c0_121, %c0_122] : memref<2x1x64xf32, #tpu.memory_space<vmem>>, vector<1x1x64xf32>
    %285 = vector.shape_cast %284 : vector<1x1x64xf32> to vector<1x64xf32>
    %286 = vector.broadcast %285 : vector<1x64xf32> to vector<16x64xf32>
    %287 = arith.addf %283, %286 : vector<16x64xf32>
    %c1_123 = arith.constant 1 : index
    %c0_124 = arith.constant 0 : index
    %c0_125 = arith.constant 0 : index
    %288 = vector.load %arg10[%c1_123, %c0_124, %c0_125] : memref<2x1x64xf32, #tpu.memory_space<vmem>>, vector<1x1x64xf32>
    %289 = vector.shape_cast %288 : vector<1x1x64xf32> to vector<1x64xf32>
    %c1_126 = arith.constant 1 : index
    %c0_127 = arith.constant 0 : index
    %c0_128 = arith.constant 0 : index
    %290 = vector.load %arg11[%c1_126, %c0_127, %c0_128] : memref<2x1x64xf32, #tpu.memory_space<vmem>>, vector<1x1x64xf32>
    %291 = vector.shape_cast %290 : vector<1x1x64xf32> to vector<1x64xf32>
    %cst_129 = arith.constant dense<0.000000e+00> : vector<16xf32>
    %292 = vector.multi_reduction <add>, %287, %cst_129 [1] : vector<16x64xf32> to vector<16xf32>
    %293 = vector.shape_cast %292 : vector<16xf32> to vector<16x1xf32>
    %cst_130 = arith.constant 6.400000e+01 : f32
    %294 = vector.broadcast %cst_130 : f32 to vector<16x1xf32>
    %295 = arith.divf %293, %294 : vector<16x1xf32>
    %296 = vector.broadcast %295 : vector<16x1xf32> to vector<16x64xf32>
    %297 = arith.subf %287, %296 : vector<16x64xf32>
    %298 = arith.mulf %297, %297 : vector<16x64xf32>
    %cst_131 = arith.constant dense<0.000000e+00> : vector<16xf32>
    %299 = vector.multi_reduction <add>, %298, %cst_131 [1] : vector<16x64xf32> to vector<16xf32>
    %300 = vector.shape_cast %299 : vector<16xf32> to vector<16x1xf32>
    %cst_132 = arith.constant 6.400000e+01 : f32
    %301 = vector.broadcast %cst_132 : f32 to vector<16x1xf32>
    %302 = arith.divf %300, %301 : vector<16x1xf32>
    %303 = vector.broadcast %295 : vector<16x1xf32> to vector<16x64xf32>
    %304 = arith.subf %287, %303 : vector<16x64xf32>
    %cst_133 = arith.constant 9.99999974E-6 : f32
    %305 = vector.broadcast %cst_133 : f32 to vector<16x1xf32>
    %306 = arith.addf %302, %305 : vector<16x1xf32>
    %307 = math.rsqrt %306 : vector<16x1xf32>
    %308 = vector.broadcast %307 : vector<16x1xf32> to vector<16x64xf32>
    %309 = arith.mulf %304, %308 : vector<16x64xf32>
    %310 = vector.broadcast %289 : vector<1x64xf32> to vector<16x64xf32>
    %311 = arith.mulf %309, %310 : vector<16x64xf32>
    %312 = vector.broadcast %291 : vector<1x64xf32> to vector<16x64xf32>
    %313 = arith.addf %311, %312 : vector<16x64xf32>
    %c1_134 = arith.constant 1 : index
    %c0_135 = arith.constant 0 : index
    %c0_136 = arith.constant 0 : index
    %314 = vector.load %arg12[%c1_134, %c0_135, %c0_136] : memref<2x64x128xf32, #tpu.memory_space<vmem>>, vector<1x64x128xf32>
    %315 = vector.shape_cast %314 : vector<1x64x128xf32> to vector<64x128xf32>
    %cst_137 = arith.constant dense<0.000000e+00> : vector<16x128xf32>
    %316 = tpu.matmul %313, %315, %cst_137 {dimension_numbers = #tpu.dot_dimension_numbers<[1], [0], [0], [1], [0, 0, 1, 1], [], []>} : vector<16x64xf32>, vector<64x128xf32>, vector<16x128xf32> -> vector<16x128xf32>
    %c1_138 = arith.constant 1 : index
    %c0_139 = arith.constant 0 : index
    %c0_140 = arith.constant 0 : index
    %317 = vector.load %arg13[%c1_138, %c0_139, %c0_140] : memref<2x1x128xf32, #tpu.memory_space<vmem>>, vector<1x1x128xf32>
    %318 = vector.shape_cast %317 : vector<1x1x128xf32> to vector<1x128xf32>
    %319 = vector.broadcast %318 : vector<1x128xf32> to vector<16x128xf32>
    %320 = arith.addf %316, %319 : vector<16x128xf32>
    %cst_141 = arith.constant 5.000000e-01 : f32
    %321 = vector.broadcast %cst_141 : f32 to vector<16x128xf32>
    %322 = arith.mulf %321, %320 : vector<16x128xf32>
    %cst_142 = arith.constant 0.707106769 : f32
    %323 = vector.broadcast %cst_142 : f32 to vector<16x128xf32>
    %324 = arith.mulf %320, %323 : vector<16x128xf32>
    %325 = math.erf %324 : vector<16x128xf32>
    %cst_143 = arith.constant 1.000000e+00 : f32
    %326 = vector.broadcast %cst_143 : f32 to vector<16x128xf32>
    %327 = arith.addf %326, %325 : vector<16x128xf32>
    %328 = arith.mulf %322, %327 : vector<16x128xf32>
    %c1_144 = arith.constant 1 : index
    %c0_145 = arith.constant 0 : index
    %c0_146 = arith.constant 0 : index
    %329 = vector.load %arg14[%c1_144, %c0_145, %c0_146] : memref<2x128x64xf32, #tpu.memory_space<vmem>>, vector<1x128x64xf32>
    %330 = vector.shape_cast %329 : vector<1x128x64xf32> to vector<128x64xf32>
    %cst_147 = arith.constant dense<0.000000e+00> : vector<16x64xf32>
    %331 = tpu.matmul %328, %330, %cst_147 {dimension_numbers = #tpu.dot_dimension_numbers<[1], [0], [0], [1], [0, 0, 1, 1], [], []>} : vector<16x128xf32>, vector<128x64xf32>, vector<16x64xf32> -> vector<16x64xf32>
    %332 = arith.addf %287, %331 : vector<16x64xf32>
    %c1_148 = arith.constant 1 : index
    %c0_149 = arith.constant 0 : index
    %c0_150 = arith.constant 0 : index
    %333 = vector.load %arg15[%c1_148, %c0_149, %c0_150] : memref<2x1x64xf32, #tpu.memory_space<vmem>>, vector<1x1x64xf32>
    %334 = vector.shape_cast %333 : vector<1x1x64xf32> to vector<1x64xf32>
    %335 = vector.broadcast %334 : vector<1x64xf32> to vector<16x64xf32>
    %336 = arith.addf %332, %335 : vector<16x64xf32>
    %c0_151 = arith.constant 0 : index
    %c0_152 = arith.constant 0 : index
    %337 = vector.load %arg16[%c0_151, %c0_152] : memref<64x128xf32, #tpu.memory_space<vmem>>, vector<64x128xf32>
    %cst_153 = arith.constant dense<0.000000e+00> : vector<16x128xf32>
    %338 = tpu.matmul %336, %337, %cst_153 {dimension_numbers = #tpu.dot_dimension_numbers<[1], [0], [0], [1], [0, 0, 1, 1], [], []>} : vector<16x64xf32>, vector<64x128xf32>, vector<16x128xf32> -> vector<16x128xf32>
    %c0_154 = arith.constant 0 : index
    %c0_155 = arith.constant 0 : index
    %339 = vector.load %arg17[%c0_154, %c0_155] : memref<1x128xf32, #tpu.memory_space<vmem>>, vector<1x128xf32>
    %340 = vector.broadcast %339 : vector<1x128xf32> to vector<16x128xf32>
    %341 = arith.addf %338, %340 : vector<16x128xf32>
    %c0_156 = arith.constant 0 : index
    %c0_157 = arith.constant 0 : index
    %c0_158 = arith.constant 0 : index
    %342 = vector.load %arg18[%c0_156, %c0_157, %c0_158] : memref<1x16x128xf32, #tpu.memory_space<vmem>>, vector<1x16x128xf32>
    %343 = vector.shape_cast %342 : vector<1x16x128xf32> to vector<16x128xf32>
    %344 = vector.shape_cast %341 : vector<16x128xf32> to vector<1x16x128xf32>
    tpu.vector_store %arg18[%c0_156, %c0_157, %c0_158], %344 {strides = array<i32>} : memref<1x16x128xf32, #tpu.memory_space<vmem>>, vector<1x16x128xf32>,
    return
  }
  func.func @transform_0(%arg0: i32) -> (i32, i32, i32) {
    %c0_i32 = arith.constant 0 : i32
    %c0_i32_0 = arith.constant 0 : i32
    %c0_i32_1 = arith.constant 0 : i32
    return %arg0, %c0_i32, %c0_i32_0 : i32, i32, i32
  }
  func.func @transform_1(%arg0: i32) -> (i32, i32) {
    %c0_i32 = arith.constant 0 : i32
    %c0_i32_0 = arith.constant 0 : i32
    %c0_i32_1 = arith.constant 0 : i32
    return %c0_i32, %c0_i32_0 : i32, i32
  }
  func.func @transform_2(%arg0: i32) -> (i32, i32) {
    %c0_i32 = arith.constant 0 : i32
    %c0_i32_0 = arith.constant 0 : i32
    %c0_i32_1 = arith.constant 0 : i32
    return %c0_i32, %c0_i32_0 : i32, i32
  }
  func.func @transform_3(%arg0: i32) -> (i32, i32, i32) {
    %c0_i32 = arith.constant 0 : i32
    %c0_i32_0 = arith.constant 0 : i32
    %c0_i32_1 = arith.constant 0 : i32
    %c0_i32_2 = arith.constant 0 : i32
    return %c0_i32, %c0_i32_0, %c0_i32_1 : i32, i32, i32
  }
  func.func @transform_4(%arg0: i32) -> (i32, i32, i32) {
    %c0_i32 = arith.constant 0 : i32
    %c0_i32_0 = arith.constant 0 : i32
    %c0_i32_1 = arith.constant 0 : i32
    %c0_i32_2 = arith.constant 0 : i32
    return %c0_i32, %c0_i32_0, %c0_i32_1 : i32, i32, i32
  }
  func.func @transform_5(%arg0: i32) -> (i32, i32, i32) {
    %c0_i32 = arith.constant 0 : i32
    %c0_i32_0 = arith.constant 0 : i32
    %c0_i32_1 = arith.constant 0 : i32
    %c0_i32_2 = arith.constant 0 : i32
    return %c0_i32, %c0_i32_0, %c0_i32_1 : i32, i32, i32
  }
  func.func @transform_6(%arg0: i32) -> (i32, i32, i32) {
    %c0_i32 = arith.constant 0 : i32
    %c0_i32_0 = arith.constant 0 : i32
    %c0_i32_1 = arith.constant 0 : i32
    %c0_i32_2 = arith.constant 0 : i32
    return %c0_i32, %c0_i32_0, %c0_i32_1 : i32, i32, i32
  }
  func.func @transform_7(%arg0: i32) -> (i32, i32, i32) {
    %c0_i32 = arith.constant 0 : i32
    %c0_i32_0 = arith.constant 0 : i32
    %c0_i32_1 = arith.constant 0 : i32
    %c0_i32_2 = arith.constant 0 : i32
    return %c0_i32, %c0_i32_0, %c0_i32_1 : i32, i32, i32
  }
  func.func @transform_8(%arg0: i32) -> (i32, i32, i32) {
    %c0_i32 = arith.constant 0 : i32
    %c0_i32_0 = arith.constant 0 : i32
    %c0_i32_1 = arith.constant 0 : i32
    %c0_i32_2 = arith.constant 0 : i32
    return %c0_i32, %c0_i32_0, %c0_i32_1 : i32, i32, i32
  }
  func.func @transform_9(%arg0: i32) -> (i32, i32, i32) {
    %c0_i32 = arith.constant 0 : i32
    %c0_i32_0 = arith.constant 0 : i32
    %c0_i32_1 = arith.constant 0 : i32
    %c0_i32_2 = arith.constant 0 : i32
    return %c0_i32, %c0_i32_0, %c0_i32_1 : i32, i32, i32
  }
  func.func @transform_10(%arg0: i32) -> (i32, i32, i32) {
    %c0_i32 = arith.constant 0 : i32
    %c0_i32_0 = arith.constant 0 : i32
    %c0_i32_1 = arith.constant 0 : i32
    %c0_i32_2 = arith.constant 0 : i32
    return %c0_i32, %c0_i32_0, %c0_i32_1 : i32, i32, i32
  }
  func.func @transform_11(%arg0: i32) -> (i32, i32, i32) {
    %c0_i32 = arith.constant 0 : i32
    %c0_i32_0 = arith.constant 0 : i32
    %c0_i32_1 = arith.constant 0 : i32
    %c0_i32_2 = arith.constant 0 : i32
    return %c0_i32, %c0_i32_0, %c0_i32_1 : i32, i32, i32
  }
  func.func @transform_12(%arg0: i32) -> (i32, i32, i32) {
    %c0_i32 = arith.constant 0 : i32
    %c0_i32_0 = arith.constant 0 : i32
    %c0_i32_1 = arith.constant 0 : i32
    %c0_i32_2 = arith.constant 0 : i32
    return %c0_i32, %c0_i32_0, %c0_i32_1 : i32, i32, i32
  }
  func.func @transform_13(%arg0: i32) -> (i32, i32, i32) {
    %c0_i32 = arith.constant 0 : i32
    %c0_i32_0 = arith.constant 0 : i32
    %c0_i32_1 = arith.constant 0 : i32
    %c0_i32_2 = arith.constant 0 : i32
    return %c0_i32, %c0_i32_0, %c0_i32_1 : i32, i32, i32
  }
  func.func @transform_14(%arg0: i32) -> (i32, i32, i32) {
    %c0_i32 = arith.constant 0 : i32
    %c0_i32_0 = arith.constant 0 : i32
    %c0_i32_1 = arith.constant 0 : i32
    %c0_i32_2 = arith.constant 0 : i32
    return %c0_i32, %c0_i32_0, %c0_i32_1 : i32, i32, i32
  }
  func.func @transform_15(%arg0: i32) -> (i32, i32) {
    %c0_i32 = arith.constant 0 : i32
    %c0_i32_0 = arith.constant 0 : i32
    %c0_i32_1 = arith.constant 0 : i32
    return %c0_i32, %c0_i32_0 : i32, i32
  }
  func.func @transform_16(%arg0: i32) -> (i32, i32) {
    %c0_i32 = arith.constant 0 : i32
    %c0_i32_0 = arith.constant 0 : i32
    %c0_i32_1 = arith.constant 0 : i32
    return %c0_i32, %c0_i32_0 : i32, i32
  }
  func.func @transform_17(%arg0: i32) -> (i32, i32, i32) {
    %c0_i32 = arith.constant 0 : i32
    %c0_i32_0 = arith.constant 0 : i32
    %c0_i32_1 = arith.constant 0 : i32
    return %arg0, %c0_i32, %c0_i32_0 : i32, i32, i32
  }
}

</mosaic_0001>

<bundles_post_ra>
// kernel: tpu_custom_call.1
= control target key start
LH: loop header
LB: loop body
LE: loop exit
PB: predicated region body
PF: predicated region fallthrough
CT: control target
= control target key end

     0   :  { %s7582_s0 = inlined_call_operand.hbm [shape: f32[2,16,32], index: 0, kind: input, shape index: {}]   ;;  %s7583_s1 = inlined_call_operand.hbm [shape: f32[32,64], index: 1, kind: input, shape index: {}]   ;;  %s7584_s2 = inlined_call_operand.hbm [shape: f32[1,64], index: 2, kind: input, shape index: {}]   ;;  %s7585_s3 = inlined_call_operand.vmem [shape: f32[2,1,64], index: 3, kind: input, shape index: {}]   ;;  %s7586_s4 = inlined_call_operand.vmem [shape: f32[2,1,64], index: 4, kind: input, shape index: {}]   ;;  %s7587_s5 = inlined_call_operand.vmem [shape: f32[2,64,768], index: 5, kind: input, shape index: {}]   ;;  %s7588_s6 = inlined_call_operand.vmem [shape: f32[2,1,768], index: 6, kind: input, shape index: {}]   ;;  %s7589_s7 = inlined_call_operand.vmem [shape: f32[2,256,64], index: 7, kind: input, shape index: {}]   ;;  %s7590_s8 = inlined_call_operand.vmem [shape: f32[2,1,64], index: 8, kind: input, shape index: {}]   ;;  %s7591_s9 = inlined_call_operand.vmem [shape: f32[2,1,64], index: 9, kind: input, shape index: {}]   ;;  %s7592_s10 = inlined_call_operand.vmem [shape: f32[2,1,64], index: 10, kind: input, shape index: {}]   ;;  %s7593_s11 = inlined_call_operand.vmem [shape: f32[2,64,128], index: 11, kind: input, shape index: {}]   ;;  %s7594_s12 = inlined_call_operand.vmem [shape: f32[2,1,128], index: 12, kind: input, shape index: {}]   ;;  %s7595_s13 = inlined_call_operand.vmem [shape: f32[2,128,64], index: 13, kind: input, shape index: {}]   ;;  %s7596_s14 = inlined_call_operand.vmem [shape: f32[2,1,64], index: 14, kind: input, shape index: {}]   ;;  %s7597_s15 = inlined_call_operand.hbm [shape: f32[64,128], index: 15, kind: input, shape index: {}]   ;;  %s7598_s16 = inlined_call_operand.vmem [shape: f32[1,128], index: 16, kind: input, shape index: {}]   ;;  %s7599_s17 = inlined_call_operand.hbm [shape: f32[2,16,128], index: 17, kind: output, shape index: {}]  }
   0x1   :  { %7620 = sst [smem:[#allocation17_spill]] %s7582_s0 }
   0x2   :  { %7621 = sst [smem:[#allocation18_spill]] %s7583_s1 }
   0x3   :  { %7622 = sst [smem:[#allocation19_spill]] %s7584_s2 }
   0x4   :  { %7623 = sst [smem:[#allocation20_spill]] %s7591_s9 }
   0x5   :  { %7624 = sst [smem:[#allocation21_spill]] %s7592_s10 }
   0x6   :  { %7625 = sst [smem:[#allocation22_spill]] %s7593_s11 }
   0x7   :  { %7626 = sst [smem:[#allocation23_spill]] %s7594_s12 }
   0x8   :  { %7627 = sst [smem:[#allocation24_spill]] %s7595_s13 }
   0x9   :  { %7628 = sst [smem:[#allocation25_spill]] %s7596_s14 }
   0xa   :  { %7629 = sst [smem:[#allocation26_spill]] %s7597_s15 }
   0xb   :  { %7630 = sst [smem:[#allocation27_spill]] %s7598_s16 }
   0xc   :  { %7631 = sst [smem:[#allocation28_spill]] %s7599_s17 }
   0xd   :  { %22 = vsyncpa [#allocation3], 0 }
   0xe   :  { %24 = vsyncpa [#allocation3 + $0x1], 0 }
   0xf   :  { %25 = vsyncpa [#allocation6], 0 }
  0x10   :  { %26 = vsyncpa [#allocation9], 0 }
  0x11   :  { %27 = vsyncpa [#allocation4], 0 }
  0x12   :  { %29 = vsyncpa [#allocation4 + $0x1], 0  ;;  %s6259_s24 = smov 0   ;;  %s6261_s25 = smov 0  }
  0x13   :  { %s6263_s26 = smov 0   ;;  %s6265_s27 = smov 0  }
  0x14 LB: > { %7632 = sst [smem:[#allocation15_spill]] %s6144_s24  ;;  %s6280_s28 = sadd.s32 4294967295, %s6156_s27   ;;  %s6156_s27 = sphi %s6265_s27, %s7674_s27   ;;  %s6152_s26 = sphi %s6263_s26, %s7673_s26   ;;  %s6148_s25 = sphi %s6261_s25, %s7672_s25   ;;  %s6144_s24 = sphi %s6259_s24, %s7671_s24  }
  0x15   : > { %s4469_s29 = sadd.s32 4294967294, %s6156_s27   ;;  %p55_p0 = scmp.ne.s32.totalorder %s6148_s25, %s6144_s24 }
  0x16   : > { %p7608_p1 = scmp.eq.s32.totalorder %s6280_s28, 0  ;;  %p421_p3 = scmp.eq.s32.totalorder %s4469_s29, 1 }
  0x17   : > { %p4470_p5 = scmp.ge.s32.totalorder %s6156_s27, 1  ;;  %p428_p7 = scmp.lt.s32.totalorder %s6156_s27, 3 }
  0x18   : > { %p6289_p4 = por %p7608_p1, %p55_p0  ;;  %p6294_p6 = por %p421_p3, %p55_p0 }
  0x19   : > { %p6299_p8 = pnand %p4470_p5, %p428_p7  ;;  %s6158_s19 = smov [#allocation5]  }
  0x1a   : > { %s7633_s0 = scalar_select %p6289_p4, 1, 0 }
  0x1b   : > { %s7634_s30 = scalar_select %p6294_p6, 1, 0 }
  0x1c   : > { %s7636_s18 = scalar_select %p6299_p8, 1, 0 }
  0x1d   : > { %7635 = sst [smem:[#allocation16_spill]] %s7634_s30  ;;  %s440_s1 = sshll.u32 %s6158_s19, 4  ;;  %s6303_s1 = int_to_ptr.vmem [resolvable:$true] %s440_s1 }
  0x1e   : > { %p5773_p9 = pneg %p6299_p8  ;;  %s6159_s21 = smov [#allocation7]  }
  0x1f   : > { %s454_s22 = sshll.u32 %s6159_s21, 4  ;;  %s6160_s23 = smov [#allocation8]   ;;  %s6314_s22 = int_to_ptr.vmem [resolvable:$true] %s454_s22 }
  0x20   : > { %p6310_p11 = pnand %p5773_p9, %p7608_p1  ;;  %s6316_s29 = sshll.u32 %s6160_s23, 4  ;;  %s501_s29 = int_to_ptr.vmem [resolvable:$true] %s6316_s29 }
  0x21   : > { %s7638_s24 = sld [smem:[#allocation18_spill]] }
  0x22   : > { %p6326_p13 = pneg %p6310_p11 }
  0x27   : > { %s7639_s17 = smov %s7638_s24  ;;  %s5968_s16 = scalar_lea.hbm %s7638_s24, 512 }
  0x28   : > { %p5969_p12 = scmp.ne.s32.totalorder %s7639_s17, %s5968_s16  ;;  %p5975_p5 = scmp.lt.u32.totalorder %s5968_s16, %s7639_s17 }
  0x2a   : > { %p5971_p0 = pnand %p6326_p13, %p5969_p12 }
  0x2c   : > { %p5972_p3 = pneg %p5971_p0 }
  0x2e   : > { %p5977_p7 = pnand %p5975_p5, %p5972_p3 }
  0x30   : > { %5980 = shalt.err (!%p5977_p7)
}
  0x31   : > { %s5981_s12 = scalar_lea.vmem %s6303_s1, 512  ;;  %p5989_p2 = scmp.lt.s32.totalorder %s6303_s1, %s6303_s1 }
  0x32   : > { %p5982_p9 = scmp.ne.s32.totalorder %s6303_s1, %s5981_s12  ;;  %p5990_p6 = scmp.lt.s32.totalorder %s5981_s12, %s5981_s12 }
  0x34   : > { %p5984_p10 = pnand %p5982_p9, %p6326_p13  ;;  %p5991_p12 = por %p5990_p6, %p5989_p2 }
  0x36   : > { %p5985_p1 = pneg %p5984_p10 }
  0x38   : > { %p5992_p0 = pnand %p5991_p12, %p5985_p1 }
  0x3a   : > { %5995 = shalt.err (!%p5992_p0)
}
  0x3b   : > { %s7614_s14 = smov 128   ;;  %s6162_s16 = smov 8  }
  0x3c   : > { %5776 = dma.hbm_to_vmem [thread:$0]  (!%p6310_p11), %s7639_s17, 512, %s6303_s1, [#allocation6], %s7614_s14, %s7614_s14, %s6162_s16  }
  0x3d   : > { %s7641_s2 = sld [smem:[#allocation19_spill]] }
  0x43   : > { %s5996_s23 = scalar_lea.hbm %s7641_s2, 16 }
  0x44   : > { %p5997_p1 = scmp.ne.s32.totalorder %s7641_s2, %s5996_s23  ;;  %p6003_p10 = scmp.lt.u32.totalorder %s5996_s23, %s7641_s2 }
  0x46   : > { %p5999_p2 = pnand %p5997_p1, %p6326_p13 }
  0x48   : > { %p6000_p6 = pneg %p5999_p2 }
  0x4a   : > { %p6005_p3 = pnand %p6003_p10, %p6000_p6 }
  0x4c   : > { %6008 = shalt.err (!%p6005_p3)
}
  0x4d   : > { %s6009_s1 = scalar_lea.vmem %s6314_s22, 16  ;;  %s6016_s9 = scalar_lea.vmem %s6314_s22, 32 }
  0x4e   : > { %p6010_p5 = scmp.ne.s32.totalorder %s6314_s22, %s6009_s1  ;;  %p6017_p12 = scmp.lt.s32.totalorder %s6314_s22, %s6314_s22 }
  0x4f   : > { %p6018_p0 = scmp.lt.s32.totalorder %s6016_s9, %s6009_s1 }
  0x50   : > { %p6012_p7 = pnand %p6010_p5, %p6326_p13 }
  0x51   : > { %p6019_p1 = por %p6018_p0, %p6017_p12 }
  0x52   : > { %p6013_p9 = pneg %p6012_p7 }
  0x54   : > { %p6020_p2 = pnand %p6019_p1, %p6013_p9 }
  0x56   : > { %6023 = shalt.err (!%p6020_p2)
}
  0x57   : > { %5779 = dma.hbm_to_vmem [thread:$0]  (!%p6310_p11), %s7641_s2, 16, %s6314_s22, [#allocation6]  }
  0x58   : > { %s7642_s15 = sld [smem:[#allocation26_spill]] }
  0x5e   : > { %s6024_s19 = scalar_lea.hbm %s7642_s15, 1024 }
  0x5f   : > { %p6025_p6 = scmp.ne.s32.totalorder %s7642_s15, %s6024_s19  ;;  %p6031_p5 = scmp.lt.u32.totalorder %s6024_s19, %s7642_s15 }
  0x61   : > { %p6027_p10 = pnand %p6025_p6, %p6326_p13 }
  0x63   : > { %p6028_p3 = pneg %p6027_p10 }
  0x65   : > { %p6033_p7 = pnand %p6031_p5, %p6028_p3 }
  0x67   : > { %6036 = shalt.err (!%p6033_p7)
}
  0x68   : > { %s6037_s9 = scalar_lea.vmem %s501_s29, 1024  ;;  %p6045_p1 = scmp.lt.s32.totalorder %s501_s29, %s501_s29 }
  0x69   : > { %p6038_p9 = scmp.ne.s32.totalorder %s501_s29, %s6037_s9  ;;  %p6046_p2 = scmp.lt.s32.totalorder %s6037_s9, %s6037_s9 }
  0x6b   : > { %p6040_p12 = pnand %p6038_p9, %p6326_p13  ;;  %p6047_p4 = por %p6046_p2, %p6045_p1 }
  0x6d   : > { %p6041_p0 = pneg %p6040_p12 }
  0x6f   : > { %p6048_p8 = pnand %p6047_p4, %p6041_p0 }
  0x71   : > { %6051 = shalt.err (!%p6048_p8)
}
  0x72   : > { %5782 = dma.hbm_to_vmem [thread:$0]  (!%p6310_p11), %s7642_s15, 1024, %s501_s29, [#allocation9], %s7614_s14, %s7614_s14, %s6162_s16  }
  0x73   : > { %s6397_s10 = sadd.s32 1, %s6156_s27   ;;  %s42_s13 = sadd.s32 1, %s6152_s26 }
  0x74   : > { %s39_s20 = ssub.s32 %s6156_s27, %s6397_s10  ;;  %p49_p8 = scmp.ne.s32.totalorder %s6152_s26, %s6148_s25 }
  0x75   : > { %p40_p4 = scmp.eq.s32.totalorder %s39_s20, 0  ;;  %p50_p13 = scmp.eq.s32.totalorder %s6156_s27, 0 }
  0x76   : > { %p5794_p6 = scmp.lt.s32.totalorder %s6156_s27, 2  ;;  %p7643_p3 = scmp.eq.s32.totalorder %s6280_s28, 1 }
  0x77   : > { %s6407_s24 = scalar_select %p40_p4, %s6152_s26, %s42_s13  }
  0x78   : > { %p51_p10 = por %p50_p13, %p49_p8  ;;  %p6411_p5 = por %p7643_p3, %p49_p8 }
  0x79   : > { %s517_s19 = sand.u32 1, %s6152_s26   ;;  %s4701_s21 = sshll.u32 %s6156_s27, 8 }
  0x7a   : > { %s4475_s29 = sshll.u32 %s517_s19, 4  ;;  %s7645_s1 = sld [smem:[#allocation17_spill]] }
  0x7b   : > { %s521_s22 = scalar_lea.vmem [#allocation2], %s4475_s29  ;;  %p6422_p11 = pnand %p5794_p6, %p51_p10 }
  0x7c   : > { %s528_s11 = sshll.u32 %s521_s22, 4  ;;  %s6428_s13 = scalar_lea.sflag [#allocation3], %s517_s19  ;;  %s6426_s11 = int_to_ptr.vmem [resolvable:$true] %s528_s11 }
  0x7d   : > { %p6054_p9 = pneg %p6422_p11 }
  0x80   : > { %s6420_s9 = scalar_lea.hbm %s7645_s1, %s4701_s21  ;;  %s6057_s23 = scalar_lea.hbm %s7645_s1, 512 }
  0x81   : > { %s6052_s14 = scalar_lea.hbm %s6420_s9, 256  ;;  %p6058_p1 = scmp.lt.u32.totalorder %s6420_s9, %s7645_s1 }
  0x82   : > { %p6053_p7 = scmp.ne.s32.totalorder %s6420_s9, %s6052_s14  ;;  %p6059_p2 = scmp.lt.u32.totalorder %s6057_s23, %s6052_s14 }
  0x83   : > { %p6061_p8 = scmp.lt.u32.totalorder %s6052_s14, %s6420_s9 }
  0x84   : > { %p6055_p12 = pnand %p6054_p9, %p6053_p7  ;;  %p6060_p4 = por %p6059_p2, %p6058_p1 }
  0x86   : > { %p6056_p0 = pneg %p6055_p12  ;;  %p6062_p13 = por %p6061_p8, %p6060_p4 }
  0x88   : > { %p6063_p6 = pnand %p6062_p13, %p6056_p0 }
  0x8a   : > { %6066 = shalt.err (!%p6063_p6)
}
  0x8b   : > { %s6067_s19 = scalar_lea.vmem %s6426_s11, 256  ;;  %s6163_s21 = smov [#allocation2]  }
  0x8c   : > { %p6068_p10 = scmp.ne.s32.totalorder %s6426_s11, %s6067_s19  ;;  %s6072_s29 = sshll.u32 %s6163_s21, 4  ;;  %s6073_s29 = int_to_ptr.vmem [resolvable:$false] %s6072_s29 }
  0x8d   : > { %s6074_s12 = scalar_lea.vmem %s6073_s29, 512  ;;  %p6075_p12 = scmp.lt.s32.totalorder %s6426_s11, %s6073_s29 }
  0x8e   : > { %p6070_p3 = pnand %p6068_p10, %p6054_p9  ;;  %p6076_p1 = scmp.lt.s32.totalorder %s6074_s12, %s6067_s19 }
  0x90   : > { %p6071_p7 = pneg %p6070_p3  ;;  %p6077_p2 = por %p6076_p1, %p6075_p12 }
  0x92   : > { %p6078_p4 = pnand %p6077_p2, %p6071_p7 }
  0x94   : > { %6081 = shalt.err (!%p6078_p4)
}
  0x95   : > { %s7647_s14 = smov 128   ;;  %p7648_p9 = scmp.ne.s32.totalorder %s7636_s18, 0 }
  0x96   : > { %5786 = dma.hbm_to_vmem [thread:$0]  (!%p6422_p11), %s6420_s9, 256, %s6426_s11, %s6428_s13, %s7647_s14, %s7647_s14, %s6162_s16  }
  0x97   : > { %540 = sbr.rel (%p7648_p9) target bundleno = 7562 (0x1d8a), region = 88  ;;  %s6462_s23 = sand.u32 (!%p7648_p9), 1, %s6148_s25  }
  0x98   : > { %s7615_s22 = sshll.u32 (!%p7648_p9), %s6462_s23, 4  ;;  %s543_s19 = scalar_lea.sflag (!%p7648_p9), [#allocation3], %s6462_s23 }
  0x99   : > { %s546_s20 = scalar_lea.vmem (!%p7648_p9), [#allocation2], %s7615_s22  ;;  %p7649_p0 = scmp.ne.s32.totalorder (!%p7648_p9), %s7633_s0, 0 }
  0x9e   : > { %6127 = dma.done.wait (%p7649_p0), %s543_s19, 256  }
  0x9f   : > { %6129 = vsyncadd (%p7649_p0), %s543_s19, 4294967040  ;;  %p7650_p11 = scmp.eq.s32.totalorder %s6280_s28, 0 }
  0xa1   : > { %6131 = dma.done.wait (%p7650_p11), [#allocation6], 528   ;;  %p7651_p8 = pmov %p7650_p11 }
  0xa3   : > { %6133 = vsyncadd (%p7651_p8), [#allocation6], 4294966768  ;;  %p7652_p13 = pmov %p7651_p8 }
  0xa4   : > { %p7653_p6 = pmov %p7651_p8 }
  0xa5   : > { %6135 = dma.done.wait (%p7652_p13), [#allocation9], 1024  }
  0xa6   : > { %6137 = vsyncadd (%p7653_p6), [#allocation9], 4294966272  ;;  %vm622_vm0 = vcmask 261120   ;;  %v611_v0 = vld [vmem:[#allocation5] sm:$0xff]  ;;  %v612_v1 = vld [vmem:[#allocation5 + $0x8] sm:$0xff]  ;;  %vm706_vm1 = vcmask 523264  }
  0xa7   : > { %v613_v2 = vld [vmem:[#allocation5 + $0x10] sm:$0xff]  ;;  %v5321_v3 = vpack.c.bf16 %v612_v1, %v611_v0  ;;  %v614_v4 = vld [vmem:[#allocation5 + $0x18] sm:$0xff]  ;;  %v4484_v8 = vld [vmem:[#allocation7] ss:$0 sm:$0xff]  ;;  %v6164_v56 = vmov 0.0   ;;  %s7616_s21 = smov 64  }
  0xa8   : > { %v609_v5 = vld [vmem:[%s546_s20] sm:$0xff]  ;;  %v5325_v6 = vpack.c.bf16 %v614_v4, %v613_v2  ;;  %v610_v7 = vld [vmem:[%s546_s20 + $0x8] sm:$0xff]  ;;  %900 = vmatprep.mubr.f32.mxu1 %v6164_v56  ;;  %vm6690_vm2 = vmpackc.low %vm706_vm1, %vm706_vm1  ;;  %vm1186_vm3 = vcmask 130048   ;;  %s7656_s14 = sld [smem:[#allocation22_spill]]  ;;  %s7657_s11 = sld [smem:[#allocation24_spill]] }
  0xa9   : > { %4927 = vmatprep.mubr.msk.f32.mxu0 %vm622_vm0, %v609_v5  ;;  %5322 = vmatprep.subr.bf16.mxu0 %v5321_v3  ;;  %v751_v25 = vld [vmem:[%s7587_s5 + $0x8] sm:$0xff]  ;;  %v757_v26 = vld [vmem:[%s7587_s5 + $0x38] sm:$0xff]  ;;  %v750_v28 = vld [vmem:[%s7587_s5] sm:$0xff]  ;;  %s7658_s20 = sld [smem:[#allocation20_spill]]  ;;  %s7659_s16 = sld [smem:[#allocation21_spill]] }
  0xaa   : > { %5324 = vmatpush3.bf16.msra.mxu0 %v5321_v3  ;;  %v5329_v27 = vpack.c.bf16 %v757_v26, %v751_v25  ;;  %v756_v29 = vld [vmem:[%s7587_s5 + $0x30] sm:$0xff]  ;;  %v753_v30 = vld [vmem:[%s7587_s5 + $0x18] sm:$0xff]  ;;  %v759_v32 = vld [vmem:[%s7587_s5 + $0x48] sm:$0xff]  ;;  %s7661_s22 = sld [smem:[#allocation25_spill]]  ;;  %s7662_s12 = smov 64  }
  0xab   : > { %5326 = vmatprep.subr.bf16.mxu0 %v5325_v6  ;;  %v5331_v31 = vpack.c.bf16 %v756_v29, %v750_v28  ;;  %v752_v33 = vld [vmem:[%s7587_s5 + $0x10] sm:$0xff]  ;;  %v758_v34 = vld [vmem:[%s7587_s5 + $0x40] sm:$0xff]  ;;  %v5345_v35 = vpack.c.bf16 %v759_v32, %v753_v30  ;;  %v763_v37 = vld [vmem:[%s7587_s5 + $0x68] sm:$0xff]  ;;  %s7663_s9 = sshll.u32 %s6462_s23, 4  ;;  %s7664_s19 = sld [smem:[#allocation27_spill]] }
  0xac   : > { %5330 = vmatprep.subr.bf16.mxu1 %v5329_v27  ;;  %v5347_v36 = vpack.c.bf16 %v758_v34, %v752_v33  ;;  %v769_v38 = vld [vmem:[%s7587_s5 + $0x98] sm:$0xff]  ;;  %v762_v40 = vld [vmem:[%s7587_s5 + $0x60] sm:$0xff]  ;;  %v768_v41 = vld [vmem:[%s7587_s5 + $0x90] sm:$0xff]  ;;  %s4702_s1 = sshll.u32 %s6280_s28, 8  ;;  %s7665_s0 = sld [smem:[#allocation28_spill]] }
  0xad   : > { %5332 = vmatpush1.bf16.msra.mxu1 %v5331_v31  ;;  %v5333_v39 = vpack.c.bf16 %v769_v38, %v763_v37  ;;  %v765_v42 = vld [vmem:[%s7587_s5 + $0x78] sm:$0xff]  ;;  %v5335_v43 = vpack.c.bf16 %v768_v41, %v762_v40  ;;  %v771_v44 = vld [vmem:[%s7587_s5 + $0xa8] sm:$0xff]  ;;  %v764_v45 = vld [vmem:[%s7587_s5 + $0x70] sm:$0xff]  ;;  %s6166_s28 = smov [#allocation10]  }
  0xae   : > { %5328 = vmatpush3.bf16.msra.mxu0 %v5325_v6  ;;  %v770_v46 = vld [vmem:[%s7587_s5 + $0xa0] sm:$0xff]  ;;  %v5349_v47 = vpack.c.bf16 %v771_v44, %v765_v42  ;;  %v775_v49 = vld [vmem:[%s7587_s5 + $0xc8] sm:$0xff]  ;;  %v781_v50 = vld [vmem:[%s7587_s5 + $0xf8] sm:$0xff]  ;;  %s6086_s29 = sshll.u32 %s6166_s28, 4  ;;  %s6087_s29 = int_to_ptr.vmem [resolvable:$false] %s6086_s29 }
  0xaf   : > { %5346 = vmatprep.subr.bf16.mxu0 %v5345_v35  ;;  %5334 = vmatprep.subr.bf16.mxu1 %v5333_v39  ;;  %v5351_v48 = vpack.c.bf16 %v770_v46, %v764_v45  ;;  %v774_v51 = vld [vmem:[%s7587_s5 + $0xc0] sm:$0xff]  ;;  %v5337_v52 = vpack.c.bf16 %v781_v50, %v775_v49  ;;  %v780_v53 = vld [vmem:[%s7587_s5 + $0xf0] sm:$0xff]  ;;  %v777_v54 = vld [vmem:[%s7587_s5 + $0xd8] sm:$0xff] }
  0xb0   : > { %v783_v55 = vld [vmem:[%s7587_s5 + $0x108] sm:$0xff]  ;;  %v5339_v57 = vpack.c.bf16 %v780_v53, %v774_v51  ;;  %v776_v59 = vld [vmem:[%s7587_s5 + $0xd0] sm:$0xff]  ;;  %v782_v60 = vld [vmem:[%s7587_s5 + $0x100] sm:$0xff] }
  0xb1   : > { %4928 = vmatmul.mubr.msk.f32.vlgmr.msra.gmra.mrb[0].mxu0 %vm622_vm0, %v610_v7  ;;  %5336 = vmatpush1.bf16.msra.mxu1 %v5335_v43  ;;  %v5353_v58 = vpack.c.bf16 %v783_v55, %v777_v54  ;;  %v787_v61 = vld [vmem:[%s7587_s5 + $0x128] sm:$0xff]  ;;  %v5355_v62 = vpack.c.bf16 %v782_v60, %v776_v59  ;;  %v793_v63 = vld [vmem:[%s7587_s5 + $0x158] sm:$0xff]  ;;  %v786_v0 = vld [vmem:[%s7587_s5 + $0x120] sm:$0xff] }
  0xb2   : > { %5348 = vmatpush1.bf16.msra.mxu0 %v5347_v36  ;;  %977 = vmatprep.mubr.f32.mxu0 %v6164_v56  ;;  %v792_v1 = vld [vmem:[%s7587_s5 + $0x150] sm:$0xff]  ;;  %v5341_v2 = vpack.c.bf16 %v793_v63, %v787_v61  ;;  %v789_v3 = vld [vmem:[%s7587_s5 + $0x138] sm:$0xff]  ;;  %v795_v4 = vld [vmem:[%s7587_s5 + $0x168] sm:$0xff]  ;;  %s7538_s18 = scalar_lea.hbm %s7665_s0, %s4702_s1 }
  0xb3   : > { %5350 = vmatprep.subr.bf16.mxu0 %v5349_v47  ;;  %5338 = vmatprep.subr.bf16.mxu1 %v5337_v52  ;;  %v788_v5 = vld [vmem:[%s7587_s5 + $0x130] sm:$0xff]  ;;  %v5343_v6 = vpack.c.bf16 %v792_v1, %v786_v0  ;;  %v5357_v7 = vpack.c.bf16 %v795_v4, %v789_v3  ;;  %v754_v26 = vld [vmem:[%s7587_s5 + $0x20] sm:$0xff]  ;;  %v767_v29 = vld [vmem:[%s7587_s5 + $0x88] sm:$0xff]  ;;  %v800_v52 = vlaneseq }
  0xb4   : > { %v760_v27 = vld [vmem:[%s7587_s5 + $0x50] sm:$0xff]  ;;  %v4488_v28 = vld [vmem:[%s7586_s4] ss:$0 sm:$0xff]  ;;  %v779_v38 = vld [vmem:[%s7587_s5 + $0xe8] sm:$0xff] }
  0xb5   : > { %5340 = vmatpush1.bf16.msra.mxu1 %v5339_v57  ;;  %v5363_v32 = vpack.c.bf16 %v760_v27, %v754_v26  ;;  %v766_v36 = vld [vmem:[%s7587_s5 + $0x80] sm:$0xff]  ;;  %v772_v37 = vld [vmem:[%s7587_s5 + $0xb0] sm:$0xff]  ;;  %v785_v39 = vld [vmem:[%s7587_s5 + $0x118] sm:$0xff]  ;;  %v6664_v53 = vshrl.u32 %v800_v52, 7 }
  0xb6   : > { %5352 = vmatpush1.bf16.msra.mxu0 %v5351_v48  ;;  %5342 = vmatprep.subr.bf16.mxu1 %v5341_v2  ;;  %v5367_v40 = vpack.c.bf16 %v772_v37, %v766_v36  ;;  %v5369_v42 = vpack.c.bf16 %v785_v39, %v779_v38  ;;  %v778_v43 = vld [vmem:[%s7587_s5 + $0xe0] sm:$0xff]  ;;  %v784_v44 = vld [vmem:[%s7587_s5 + $0x110] sm:$0xff]  ;;  %v791_v45 = vld [vmem:[%s7587_s5 + $0x148] sm:$0xff] }
  0xb7   : > { %5354 = vmatprep.subr.bf16.mxu0 %v5353_v58  ;;  %v797_v46 = vld [vmem:[%s7587_s5 + $0x178] sm:$0xff]  ;;  %v5371_v47 = vpack.c.bf16 %v784_v44, %v778_v43  ;;  %v790_v49 = vld [vmem:[%s7587_s5 + $0x140] sm:$0xff]  ;;  %v796_v50 = vld [vmem:[%s7587_s5 + $0x170] sm:$0xff]  ;;  %v802_v54 = vsub.s32 0, %v6664_v53  ;;  %v806_v57 = vsub.s32 1, %v6664_v53  ;;  %v810_v59 = vsub.s32 2, %v6664_v53 }
  0xb8   : > { %v5373_v48 = vpack.c.bf16 %v797_v46, %v791_v45  ;;  %v5375_v51 = vpack.c.bf16 %v796_v50, %v790_v49  ;;  %v798_v55 = vld [vmem:[%s7588_s6] sm:$0x3f]  ;;  %v814_v61 = vsub.s32 3, %v6664_v53 }
  0xb9   : > { %5344 = vmatpush1.bf16.msra.mxu1 %v5343_v6  ;;  %v803_v58 = vrot.slane %v798_v55, %v802_v54  ;;  %v6676_v60 = vrot.slane %v798_v55, %v806_v57  ;;  %v811_v1 = vrot.slane %v798_v55, %v810_v59 }
  0xba   : > { %5356 = vmatpush1.bf16.msra.mxu0 %v5355_v62 }
  0xbb   : > { %5358 = vmatprep.subr.bf16.mxu0 %v5357_v7 }
 0x184   : > { %v4929_v9 = vpop.f32.mrb[0].mxu0 }
 0x185   : > { %v695_v10 = vpop.f32.mrb[1].mxu0  ;;  %v6482_v12 = vadd.f32 %v4929_v9, %v4484_v8  ;;  %v755_v9 = vld [vmem:[%s7587_s5 + $0x28] sm:$0xff] }
 0x186   : > { %v6480_v11 = vadd.f32 %v4484_v8, %v695_v10  ;;  %v794_v8 = vld [vmem:[%s7587_s5 + $0x160] sm:$0xff]  ;;  %v761_v10 = vld [vmem:[%s7587_s5 + $0x58] sm:$0xff] }
 0x187   : > { %v710_v14 = vsel %vm706_vm1, %v6482_v12, 0.0 }
 0x188   : > { %v707_v13 = vsel %vm706_vm1, %v6480_v11, 0.0 }
 0x189   : > { %708 = vadd.xlane.f32.xlu0 %v707_v13  ;;  %v5361_v13 = vpack.c.bf16 %v761_v10, %v755_v9 }
 0x18b   : > { %5362 = vmatprep.subr.bf16.mxu1 %v5361_v13 }
 0x18d   : > { %711 = vadd.xlane.f32.xlu0 %v710_v14  ;;  %v5359_v14 = vpack.c.bf16 %v794_v8, %v788_v5  ;;  %v815_v5 = vrot.slane %v798_v55, %v814_v61 }
 0x18f   : > { %5360 = vmatpush1.bf16.msra.mxu0 %v5359_v14 }
 0x216   : > { %v709_v15 = vpop.xlane.xlu0 %708 }
 0x217   : > { %v714_v16 = vmul.f32 0.015625, %v709_v15 }
 0x219   : > { %v6489_v17 = vsub.f32 %v6480_v11, %v714_v16 }
 0x21a   : > { %v712_v18 = vpop.xlane.xlu0 %711 }
 0x21b   : > { %v715_v19 = vmul.f32 0.015625, %v712_v18  ;;  %v718_v20 = vmul.f32 %v6489_v17, %v6489_v17 }
 0x21d   : > { %v6494_v21 = vsub.f32 %v6482_v12, %v715_v19  ;;  %v720_v22 = vsel %vm706_vm1, %v718_v20, 0.0 }
 0x21e   : > { %721 = vadd.xlane.f32.xlu1 %v720_v22 }
 0x21f   : > { %v719_v23 = vmul.f32 %v6494_v21, %v6494_v21 }
 0x221   : > { %v723_v24 = vsel %vm706_vm1, %v719_v23, 0.0 }
 0x222   : > { %724 = vadd.xlane.f32.xlu1 %v723_v24  ;;  %v4487_v24 = vld [vmem:[%s7585_s3] ss:$0 sm:$0xff] }
 0x2ab   : > { %v722_v15 = vpop.xlane.xlu1 %721 }
 0x2ac   : > { %v726_v16 = vmul.f32 0.015625, %v722_v15 }
 0x2ae   : > { %v728_v18 = vadd.f32 1e-05, %v726_v16 }
 0x2af   : > { %v725_v19 = vpop.xlane.xlu1 %724 }
 0x2b0   : > { %5880 = vrsqrt.f32 %v728_v18  ;;  %v727_v20 = vmul.f32 0.015625, %v725_v19 }
 0x2b2   : > { %v729_v22 = vadd.f32 1e-05, %v727_v20 }
 0x2b4   : > { %5882 = vrsqrt.f32 %v729_v22 }
 0x2ba   : > { %v5881_v23 = vpop.eup %5880 }
 0x2bb   : > { %v732_v25 = vmul.f32 %v5881_v23, %v6489_v17  ;;  %v773_v17 = vld [vmem:[%s7587_s5 + $0xb8] sm:$0xff] }
 0x2bc   : > { %v5365_v34 = vpack.c.bf16 %v773_v17, %v767_v29 }
 0x2bd   : > { %v740_v30 = vmul.f32 %v4487_v24, %v732_v25  ;;  %v822_v25 = vsub.s32 5, %v6664_v53 }
 0x2be   : > { %v5883_v31 = vpop.eup %5882 }
 0x2bf   : > { %v748_v33 = vadd.f32 %v4488_v28, %v740_v30  ;;  %v733_v35 = vmul.f32 %v5883_v31, %v6494_v21  ;;  %v823_v29 = vrot.slane %v798_v55, %v822_v25 }
 0x2c1   : > { %4489 = vmatmul.mubr.msk.f32.vlgmr.msra.gmra.mrb[0].mxu1 %vm706_vm1, %v748_v33  ;;  %4491 = vmatmul.mubr.msk.f32.vlgmr.msra.gmra.mrb[2].mxu0 %vm706_vm1, %v748_v33  ;;  %v741_v21 = vmul.f32 %v4487_v24, %v733_v35  ;;  %v818_v24 = vsub.s32 4, %v6664_v53 }
 0x2c2   : > { %5364 = vmatpush1.bf16.msra.mxu1 %v5363_v32  ;;  %906 = vmatprep.mubr.f32.mxu1 %v6164_v56 }
 0x2c3   : > { %983 = vmatprep.mubr.f32.mxu0 %v6164_v56  ;;  %5366 = vmatprep.subr.bf16.mxu1 %v5365_v34  ;;  %v749_v41 = vadd.f32 %v4488_v28, %v741_v21  ;;  %v819_v27 = vrot.slane %v798_v55, %v818_v24 }
 0x2c5   : > { %4490 = vmatmul.mubr.msk.f32.gmra.mrb[2].mxu1 %vm706_vm1, %v749_v41  ;;  %4492 = vmatmul.mubr.msk.f32.gmra.mrb[4].mxu0 %vm706_vm1, %v749_v41 }
 0x2c6   : > { %5368 = vmatpush1.bf16.msra.mxu1 %v5367_v40  ;;  %1054 = vmatprep.mubr.f32.mxu1 %v6164_v56 }
 0x2c7   : > { %5370 = vmatprep.subr.bf16.mxu1 %v5369_v42 }
 0x2ca   : > { %5372 = vmatpush1.bf16.msra.mxu1 %v5371_v47 }
 0x2cb   : > { %5374 = vmatprep.subr.bf16.mxu1 %v5373_v48 }
 0x2ce   : > { %5376 = vmatpush1.bf16.msra.mxu1 %v5375_v51 }
 0x2d1   : > { %4493 = vmatmul.mubr.msk.f32.vlgmr.msra.gmra.mrb[4].mxu1 %vm706_vm1, %v748_v33 }
 0x2d2   : > { %1060 = vmatprep.mubr.f32.mxu1 %v6164_v56 }
 0x2d5   : > { %4494 = vmatmul.mubr.msk.f32.gmra.mrb[6].mxu1 %vm706_vm1, %v749_v41 }
 0x394   : > { %v902_v62 = vpop.f32.mrb[0].mxu1  ;;  %v979_v63 = vpop.f32.mrb[2].mxu0 }
 0x395   : > { %v903_v0 = vadd.f32 %v902_v62, %v803_v58  ;;  %v904_v2 = vpop.f32.mrb[1].mxu1  ;;  %v981_v3 = vpop.f32.mrb[3].mxu0  ;;  %v980_v8 = vadd.f32 %v979_v63, %v811_v1 }
 0x396   : > { %v6682_v4 = vadd.f32 %v904_v2, %v6676_v60  ;;  %v982_v15 = vadd.f32 %v981_v3, %v815_v5 }
 0x397   : > { %1290 = vrot.lane.b32.xlu1 %v903_v0, %s7616_s21  ;;  %4934 = vmatprep.mubr.msk.f32.mxu0 %vm706_vm1, %v903_v0 }
 0x398   : > { %v908_v6 = vpop.f32.mrb[2].mxu1  ;;  %v985_v7 = vpop.f32.mrb[4].mxu0 }
 0x399   : > { %v909_v9 = vadd.f32 %v908_v6, %v803_v58  ;;  %v986_v10 = vadd.f32 %v985_v7, %v811_v1  ;;  %v910_v13 = vpop.f32.mrb[3].mxu1  ;;  %v987_v14 = vpop.f32.mrb[5].mxu0 }
 0x39a   : > { %v988_v16 = vadd.f32 %v987_v14, %v815_v5  ;;  %v911_v50 = vadd.f32 %v910_v13, %v6676_v60 }
 0x39b   : > { %v5840_v19 = vpack.i.bf16 %v986_v10, %v980_v8  ;;  %v5377_v20 = vpack.c.bf16 %v986_v10, %v980_v8  ;;  %1292 = vrot.lane.b32.xlu1 %v909_v9, %s7616_s21 }
 0x39c   : > { %v5850_v22 = vpack.i.bf16 %v988_v16, %v982_v15  ;;  %v6695_v23 = vpack.c.bf16 %v988_v16, %v982_v15 }
 0x39d   : > { %5841 = vrot.lane.b32.xlu0 %v5840_v19, %s7616_s21  ;;  %5379 = vmatprep.subr.msk.bf16.mxu0 %vm6690_vm2, %v5377_v20 }
 0x39e   : > { %5382 = vmatpush3.bf16.xpose.msk.msra.mxu0 %vm6690_vm2, %v5377_v20 }
 0x3a4   : > { %v1056_v26 = vpop.f32.mrb[4].mxu1 }
 0x3a5   : > { %v1058_v28 = vpop.f32.mrb[5].mxu1  ;;  %4935 = vmatmul.mubr.msk.f32.vlgmr.msra.gmra.mrb[6].mxu0 %vm706_vm1, %v909_v9  ;;  %v1057_v30 = vadd.f32 %v1056_v26, %v819_v27 }
 0x3a6   : > { %v6709_v33 = vadd.f32 %v1058_v28, %v823_v29 }
 0x3a8   : > { %v1062_v17 = vpop.f32.mrb[6].mxu1 }
 0x3a9   : > { %v1063_v31 = vadd.f32 %v1062_v17, %v819_v27  ;;  %v1064_v32 = vpop.f32.mrb[7].mxu1 }
 0x3aa   : > { %v6711_v34 = vadd.f32 %v1064_v32, %v823_v29 }
 0x3ab   : > { %v5845_v35 = vpack.i.bf16 %v1063_v31, %v1057_v30  ;;  %v5383_v36 = vpack.c.bf16 %v1063_v31, %v1057_v30 }
 0x3ac   : > { %v5855_v37 = vpack.i.bf16 %v6711_v34, %v6709_v33  ;;  %v6717_v38 = vpack.c.bf16 %v6711_v34, %v6709_v33  ;;  %v1070_v33 = vld [vmem:[%s7589_s7 + $0x18] sm:$0xff] }
 0x3ad   : > { %5384 = vmatprep.subr.bf16.mxu0 %v5383_v36 }
 0x3ae   : > { %5386 = vmatpush3.bf16.msra.mxu0 %v5383_v36 }
 0x409   : > { %v1291_v39 = vpop.permute.xlu1 %1290 }
 0x40a   : > { %4948 = vmatprep.mubr.msk.f32.mxu1 %vm706_vm1, %v1291_v39 }
 0x40d   : > { %v1293_v43 = vpop.permute.xlu1 %1292 }
 0x40f   : > { %v5842_v21 = vpop.permute.xlu0 %5841 }
 0x410   : > { %v5844_v40 = vunpack.i.h.bf16 %v5842_v21  ;;  %v5843_v41 = vunpack.i.l.bf16 %v5842_v21 }
 0x412   : > { %v5387_v42 = vpack.c.bf16 %v5844_v40, %v5843_v41 }
 0x414   : > { %5389 = vmatprep.subr.msk.bf16.mxu1 %vm6690_vm2, %v5387_v42 }
 0x415   : > { %5392 = vmatpush3.bf16.xpose.msk.msra.mxu1 %vm6690_vm2, %v5387_v42 }
 0x41c   : > { %4949 = vmatmul.mubr.msk.f32.vlgmr.msra.gmra.mrb[8].mxu1 %vm706_vm1, %v1293_v43 }
 0x478   : > { %v6725_v44 = vpop.f32.mrb[6].mxu0 }
 0x479   : > { %v6727_v45 = vpop.f32.mrb[7].mxu0  ;;  %v1190_v43 = vsel %vm1186_vm3, %v6725_v44, -inf }
 0x47a   : > { %v1187_v51 = vsel %vm1186_vm3, %v6727_v45, -inf }
 0x4ef   : > { %v4950_v46 = vpop.f32.mrb[8].mxu1 }
 0x4f0   : > { %v1372_v47 = vpop.f32.mrb[9].mxu1  ;;  %v1384_v48 = vsel %vm1186_vm3, %v4950_v46, -inf }
 0x4f1   : > { %1385 = vmax.xlane.f32.xlu0 %v1384_v48  ;;  %v1381_v49 = vsel %vm1186_vm3, %v1372_v47, -inf }
 0x4f2   : > { %1382 = vmax.xlane.f32.xlu1 %v1381_v49 }
 0x503   : > { %5846 = vrot.lane.b32.xlu1 %v5845_v35, %s7616_s21 }
 0x507   : > { %5851 = vrot.lane.b32.xlu1 %v5850_v22, %s7616_s21 }
 0x50b   : > { %1929 = vrot.lane.b32.xlu1 %v911_v50, %s7616_s21 }
 0x52f   : > { %1188 = vmax.xlane.f32.xlu1 %v1187_v51 }
 0x57e   : > { %v1386_v52 = vpop.xlane.xlu0 %1385 }
 0x57f   : > { %v1388_v55 = vsub.f32 %v4950_v46, %v1386_v52  ;;  %v1383_v58 = vpop.xlane.xlu1 %1382 }
 0x580   : > { %v1387_v62 = vsub.f32 %v1372_v47, %v1383_v58 }
 0x581   : > { %v1391_v63 = vmul.f32 1.442695, %v1388_v55 }
 0x582   : > { %v1389_v0 = vmul.f32 1.442695, %v1387_v62 }
 0x583   : > { %v5847_v1 = vpop.permute.xlu1 %5846 }
 0x584   : > { %5884 = vpow2.f32 %v1389_v0  ;;  %v5849_v2 = vunpack.i.h.bf16 %v5847_v1  ;;  %v5848_v3 = vunpack.i.l.bf16 %v5847_v1 }
 0x585   : > { %5886 = vpow2.f32 %v1391_v63 }
 0x586   : > { %v5393_v5 = vpack.c.bf16 %v5849_v2, %v5848_v3 }
 0x587   : > { %v5852_v19 = vpop.permute.xlu1 %5851 }
 0x588   : > { %5394 = vmatprep.subr.bf16.mxu1 %v5393_v5  ;;  %v5854_v20 = vunpack.i.h.bf16 %v5852_v19  ;;  %v5853_v22 = vunpack.i.l.bf16 %v5852_v19 }
 0x589   : > { %5396 = vmatpush3.bf16.msra.mxu1 %v5393_v5 }
 0x58a   : > { %5431 = vmatprep.subr.msk.bf16.mxu1 %vm6690_vm2, %v6695_v23  ;;  %v5455_v26 = vpack.c.bf16 %v5854_v20, %v5853_v22 }
 0x58e   : > { %v5885_v60 = vpop.eup %5884 }
 0x58f   : > { %v1393_v6 = vsel %vm1186_vm3, %v5885_v60, 0.0  ;;  %v5887_v7 = vpop.eup %5886 }
 0x590   : > { %1394 = vadd.xlane.f32.xlu0 %v1393_v6  ;;  %v1396_v8 = vsel %vm1186_vm3, %v5887_v7, 0.0 }
 0x594   : > { %1397 = vadd.xlane.f32.xlu0 %v1396_v8 }
 0x61d   : > { %v1395_v9 = vpop.xlane.xlu0 %1394 }
 0x61e   : > { %5888 = vrcp.f32 %v1395_v9 }
 0x621   : > { %v1398_v10 = vpop.xlane.xlu0 %1397 }
 0x622   : > { %5890 = vrcp.f32 %v1398_v10 }
 0x628   : > { %v5889_v13 = vpop.eup %5888 }
 0x629   : > { %v1401_v14 = vmul.f32 %v5889_v13, %v5885_v60  ;;  %v1076_v13 = vld [vmem:[%s7589_s7 + $0x48] sm:$0xff] }
 0x62b   : > { %4955 = vmatprep.mubr.msk.f32.mxu1 %vm1186_vm3, %v1401_v14 }
 0x62c   : > { %v5891_v15 = vpop.eup %5890 }
 0x62d   : > { %v1402_v16 = vmul.f32 %v5891_v15, %v5887_v7 }
 0x62f   : > { %4956 = vmatmul.mubr.msk.f32.vlgmr.msra.gmra.mrb[10].mxu1 %vm1186_vm3, %v1402_v16 }
 0x630   : > { %5434 = vmatpush3.bf16.xpose.msk.msra.mxu1 %vm6690_vm2, %v6695_v23  ;;  %5000 = vmatprep.mubr.msk.f32.mxu1 %vm706_vm1, %v6682_v4 }
 0x631   : > { %5436 = vmatprep.subr.bf16.mxu1 %v6717_v38 }
 0x637   : > { %5001 = vmatmul.mubr.msk.f32.vlgmr.msra.gmra.mrb[12].mxu1 %vm706_vm1, %v911_v50 }
 0x638   : > { %5438 = vmatpush3.bf16.msra.mxu1 %v6717_v38 }
 0x639   : > { %5457 = vmatprep.subr.msk.bf16.mxu1 %vm6690_vm2, %v5455_v26 }
 0x702   : > { %v6754_v27 = vpop.f32.mrb[10].mxu1 }
 0x703   : > { %v6756_v28 = vpop.f32.mrb[11].mxu1 }
 0x70a   : > { %v5002_v23 = vpop.f32.mrb[12].mxu1 }
 0x70b   : > { %v1732_v29 = vpop.f32.mrb[13].mxu1  ;;  %v1744_v30 = vsel %vm1186_vm3, %v5002_v23, -inf }
 0x70c   : > { %v1741_v17 = vsel %vm1186_vm3, %v1732_v29, -inf }
 0x70d   : > { %1742 = vmax.xlane.f32.xlu0 %v1741_v17 }
 0x711   : > { %1745 = vmax.xlane.f32.xlu0 %v1744_v30 }
 0x79a   : > { %v1743_v31 = vpop.xlane.xlu0 %1742 }
 0x79b   : > { %v1747_v32 = vsub.f32 %v1732_v29, %v1743_v31 }
 0x79d   : > { %v1749_v35 = vmul.f32 1.442695, %v1747_v32 }
 0x79e   : > { %v1746_v36 = vpop.xlane.xlu0 %1745 }
 0x79f   : > { %5892 = vpow2.f32 %v1749_v35  ;;  %v1748_v38 = vsub.f32 %v5002_v23, %v1746_v36  ;;  %v1077_v35 = vld [vmem:[%s7589_s7 + $0x50] sm:$0xff]  ;;  %v1078_v36 = vld [vmem:[%s7589_s7 + $0x58] sm:$0xff] }
 0x7a1   : > { %v1751_v39 = vmul.f32 1.442695, %v1748_v38 }
 0x7a3   : > { %5894 = vpow2.f32 %v1751_v39 }
 0x7a9   : > { %v5893_v21 = vpop.eup %5892 }
 0x7aa   : > { %v1753_v40 = vsel %vm1186_vm3, %v5893_v21, 0.0 }
 0x7ab   : > { %1754 = vadd.xlane.f32.xlu0 %v1753_v40 }
 0x7ad   : > { %v5895_v41 = vpop.eup %5894 }
 0x7ae   : > { %v1756_v42 = vsel %vm1186_vm3, %v5895_v41, 0.0 }
 0x7af   : > { %1757 = vadd.xlane.f32.xlu0 %v1756_v42  ;;  %v1079_v42 = vld [vmem:[%s7589_s7 + $0x60] sm:$0xff] }
 0x7c5   : > { %1927 = vrot.lane.b32.xlu0 %v6682_v4, %s7616_s21  ;;  %v1930_v4 = vpop.permute.xlu1 %1929 }
 0x7c9   : > { %v1189_v1 = vpop.xlane.xlu1 %1188 }
 0x7ca   : > { %v1193_v2 = vsub.f32 %v6727_v45, %v1189_v1  ;;  %v1075_v45 = vld [vmem:[%s7589_s7 + $0x40] sm:$0xff] }
 0x7cb   : > { %v5397_v14 = vpack.c.bf16 %v1076_v13, %v1075_v45 }
 0x7cc   : > { %v1195_v5 = vmul.f32 1.442695, %v1193_v2 }
 0x7cd   : > { %5398 = vmatprep.subr.bf16.mxu0 %v5397_v14 }
 0x7e4   : > { %1191 = vmax.xlane.f32.xlu0 %v1190_v43  ;;  %v1080_v43 = vld [vmem:[%s7589_s7 + $0x68] sm:$0xff] }
 0x838   : > { %v1755_v46 = vpop.xlane.xlu0 %1754 }
 0x839   : > { %5896 = vrcp.f32 %v1755_v46  ;;  %v5405_v46 = vpack.c.bf16 %v1080_v43, %v1079_v42  ;;  %v1098_v42 = vld [vmem:[%s7589_s7 + $0xf8] sm:$0xff] }
 0x83c   : > { %v1758_v47 = vpop.xlane.xlu0 %1757 }
 0x83d   : > { %5898 = vrcp.f32 %v1758_v47  ;;  %v1081_v47 = vld [vmem:[%s7589_s7 + $0x70] sm:$0xff] }
 0x840   : > { %v1928_v52 = vpop.permute.xlu0 %1927 }
 0x843   : > { %v5897_v48 = vpop.eup %5896 }
 0x844   : > { %v1761_v49 = vmul.f32 %v5897_v48, %v5893_v21  ;;  %v1082_v48 = vld [vmem:[%s7589_s7 + $0x78] sm:$0xff] }
 0x846   : > { %5007 = vmatprep.mubr.msk.f32.mxu1 %vm1186_vm3, %v1761_v49  ;;  %v5409_v49 = vpack.c.bf16 %v1082_v48, %v1081_v47  ;;  %v4527_v48 = vld [vmem:[%s7590_s8] ss:$0 sm:$0xff] }
 0x847   : > { %v5899_v50 = vpop.eup %5898 }
 0x848   : > { %v1762_v51 = vmul.f32 %v5899_v50, %v5895_v41  ;;  %v5401_v41 = vpack.c.bf16 %v1078_v36, %v1077_v35  ;;  %v1068_v50 = vld [vmem:[%s7589_s7 + $0x8] sm:$0xff]  ;;  %v1093_v35 = vld [vmem:[%s7589_s7 + $0xd0] sm:$0xff]  ;;  %v1094_v36 = vld [vmem:[%s7589_s7 + $0xd8] sm:$0xff] }
 0x84a   : > { %5008 = vmatmul.mubr.msk.f32.vlgmr.msra.gmra.mrb[14].mxu1 %vm1186_vm3, %v1762_v51  ;;  %v1069_v51 = vld [vmem:[%s7589_s7 + $0x10] sm:$0xff] }
 0x84b   : > { %5460 = vmatpush3.bf16.xpose.msk.msra.mxu1 %vm6690_vm2, %v5455_v26  ;;  %5033 = vmatprep.mubr.msk.f32.mxu1 %vm706_vm1, %v1928_v52  ;;  %v5417_v34 = vpack.c.bf16 %v1070_v33, %v1069_v51 }
 0x852   : > { %5034 = vmatmul.mubr.msk.f32.vlgmr.msra.gmra.mrb[16].mxu1 %vm706_vm1, %v1930_v4 }
 0x871   : > { %v1192_v55 = vpop.xlane.xlu0 %1191 }
 0x872   : > { %v1194_v58 = vsub.f32 %v6725_v44, %v1192_v55  ;;  %v1073_v55 = vld [vmem:[%s7589_s7 + $0x30] sm:$0xff] }
 0x874   : > { %v1197_v62 = vmul.f32 1.442695, %v1194_v58  ;;  %v1074_v58 = vld [vmem:[%s7589_s7 + $0x38] sm:$0xff] }
 0x876   : > { %5900 = vpow2.f32 %v1197_v62  ;;  %v5425_v62 = vpack.c.bf16 %v1074_v58, %v1073_v55 }
 0x877   : > { %5902 = vpow2.f32 %v1195_v5 }
 0x880   : > { %v5901_v63 = vpop.eup %5900 }
 0x881   : > { %v1202_v0 = vsel %vm1186_vm3, %v5901_v63, 0.0  ;;  %v5903_v9 = vpop.eup %5902 }
 0x882   : > { %1203 = vadd.xlane.f32.xlu0 %v1202_v0  ;;  %v1199_v10 = vsel %vm1186_vm3, %v5903_v9, 0.0  ;;  %v1084_v0 = vld [vmem:[%s7589_s7 + $0x88] sm:$0xff] }
 0x90f   : > { %v1204_v22 = vpop.xlane.xlu0 %1203 }
 0x91d   : > { %v6775_v3 = vpop.f32.mrb[14].mxu1 }
 0x91e   : > { %v6777_v60 = vpop.f32.mrb[15].mxu1 }
 0x925   : > { %v5035_v6 = vpop.f32.mrb[16].mxu1 }
 0x926   : > { %v2009_v7 = vpop.f32.mrb[17].mxu1  ;;  %v2021_v44 = vsel %vm1186_vm3, %v5035_v6, -inf }
 0x927   : > { %v2018_v8 = vsel %vm1186_vm3, %v2009_v7, -inf }
 0x928   : > { %2019 = vmax.xlane.f32.xlu1 %v2018_v8 }
 0x92c   : > { %2022 = vmax.xlane.f32.xlu1 %v2021_v44 }
 0x930   : > { %1200 = vadd.xlane.f32.xlu1 %v1199_v10 }
 0x9b5   : > { %v2020_v15 = vpop.xlane.xlu1 %2019 }
 0x9b6   : > { %v2024_v16 = vsub.f32 %v2009_v7, %v2020_v15  ;;  %v1086_v15 = vld [vmem:[%s7589_s7 + $0x98] sm:$0xff] }
 0x9b8   : > { %v2026_v19 = vmul.f32 1.442695, %v2024_v16 }
 0x9b9   : > { %v2023_v20 = vpop.xlane.xlu1 %2022 }
 0x9ba   : > { %5904 = vpow2.f32 %v2026_v19  ;;  %v2025_v26 = vsub.f32 %v5035_v6, %v2023_v20 }
 0x9bb   : > { %5906 = vrcp.f32 %v1204_v22  ;;  %v1087_v22 = vld [vmem:[%s7589_s7 + $0xa0] sm:$0xff] }
 0x9bc   : > { %v2028_v23 = vmul.f32 1.442695, %v2025_v26  ;;  %v1088_v26 = vld [vmem:[%s7589_s7 + $0xa8] sm:$0xff] }
 0x9bd   : > { %v1201_v29 = vpop.xlane.xlu1 %1200 }
 0x9be   : > { %5908 = vpow2.f32 %v2028_v23  ;;  %v5447_v23 = vpack.c.bf16 %v1088_v26, %v1087_v22 }
 0x9bf   : > { %5910 = vrcp.f32 %v1201_v29  ;;  %v1089_v29 = vld [vmem:[%s7589_s7 + $0xb0] sm:$0xff] }
 0x9c4   : > { %v6788_v17 = vpop.eup %5904 }
 0x9c5   : > { %v2030_v30 = vsel %vm1186_vm3, %v6788_v17, 0.0  ;;  %v5907_v31 = vpop.eup %5906 }
 0x9c6   : > { %2031 = vadd.xlane.f32.xlu1 %v2030_v30  ;;  %v1208_v40 = vmul.f32 %v5907_v31, %v5901_v63  ;;  %v1083_v63 = vld [vmem:[%s7589_s7 + $0x80] sm:$0xff] }
 0x9c7   : > { %v5439_v1 = vpack.c.bf16 %v1084_v0, %v1083_v63  ;;  %v1091_v31 = vld [vmem:[%s7589_s7 + $0xc0] sm:$0xff] }
 0x9c8   : > { %v6792_v32 = vpop.eup %5908 }
 0x9c9   : > { %v5911_v38 = vpop.eup %5910  ;;  %v2033_v39 = vsel %vm1186_vm3, %v6792_v32, 0.0 }
 0x9ca   : > { %2034 = vadd.xlane.f32.xlu0 %v2033_v39  ;;  %v1207_v21 = vmul.f32 %v5911_v38, %v5903_v9  ;;  %v5469_v38 = vpack.c.bf16 %v1094_v36, %v1093_v35  ;;  %v1095_v39 = vld [vmem:[%s7589_s7 + $0xe0] sm:$0xff] }
 0x9cc   : > { %4941 = vmatprep.mubr.msk.f32.mxu0 %vm1186_vm3, %v1207_v21  ;;  %v1096_v21 = vld [vmem:[%s7589_s7 + $0xe8] sm:$0xff] }
 0x9cd   : > { %4942 = vmatmul.mubr.msk.f32.vlgmr.msra.gmra.mrb[8].mxu0 %vm1186_vm3, %v1208_v40  ;;  %v5473_v40 = vpack.c.bf16 %v1096_v21, %v1095_v39  ;;  %v2375_v21 = vld [vmem:[%s7657_s11 + $0x10] sm:$0xff] }
 0x9ce   : > { %5400 = vmatpush3.bf16.msra.mxu0 %v5397_v14  ;;  %4974 = vmatprep.mubr.msk.f32.mxu0 %vm706_vm1, %v6756_v28  ;;  %v1067_v28 = vld [vmem:[%s7589_s7] sm:$0xff]  ;;  %v1085_v14 = vld [vmem:[%s7589_s7 + $0x90] sm:$0xff] }
 0x9cf   : > { %5402 = vmatprep.subr.bf16.mxu0 %v5401_v41  ;;  %v5413_v52 = vpack.c.bf16 %v1068_v50, %v1067_v28  ;;  %v5443_v20 = vpack.c.bf16 %v1086_v15, %v1085_v14  ;;  %v2373_v15 = vld [vmem:[%s7657_s11] sm:$0xff] }
 0x9d2   : > { %5404 = vmatpush3.bf16.msra.mxu0 %v5401_v41  ;;  %v1097_v41 = vld [vmem:[%s7589_s7 + $0xf0] sm:$0xff] }
 0x9d3   : > { %5406 = vmatprep.subr.bf16.mxu0 %v5405_v46  ;;  %v5477_v43 = vpack.c.bf16 %v1098_v42, %v1097_v41 }
 0x9d6   : > { %5408 = vmatpush3.bf16.msra.mxu0 %v5405_v46 }
 0x9d7   : > { %5856 = vrot.lane.b32.xlu1 %v5855_v37, %s7616_s21  ;;  %5410 = vmatprep.subr.bf16.mxu0 %v5409_v49  ;;  %v1071_v37 = vld [vmem:[%s7589_s7 + $0x20] sm:$0xff]  ;;  %s7660_s21 = sld [smem:[#allocation23_spill]] }
 0x9da   : > { %5412 = vmatpush3.bf16.msra.mxu0 %v5409_v49 }
 0x9db   : > { %5414 = vmatprep.subr.bf16.mxu0 %v5413_v52 }
 0x9dd   : > { %4975 = vmatmul.mubr.msk.f32.vlgmr.msra.gmra.mrb[10].mxu0 %vm706_vm1, %v6754_v27  ;;  %v1072_v27 = vld [vmem:[%s7589_s7 + $0x28] sm:$0xff] }
 0x9de   : > { %5416 = vmatpush3.bf16.msra.mxu0 %v5413_v52  ;;  %v5421_v4 = vpack.c.bf16 %v1072_v27, %v1071_v37 }
 0x9df   : > { %5418 = vmatprep.subr.bf16.mxu0 %v5417_v34 }
 0x9e2   : > { %5420 = vmatpush3.bf16.msra.mxu0 %v5417_v34 }
 0x9e3   : > { %5422 = vmatprep.subr.bf16.mxu0 %v5421_v4 }
 0x9e6   : > { %5424 = vmatpush3.bf16.msra.mxu0 %v5421_v4 }
 0x9e7   : > { %5426 = vmatprep.subr.bf16.mxu0 %v5425_v62 }
 0x9ea   : > { %5428 = vmatpush3.bf16.msra.mxu0 %v5425_v62 }
 0x9eb   : > { %5440 = vmatprep.subr.bf16.mxu0 %v5439_v1 }
 0xa53   : > { %v2032_v2 = vpop.xlane.xlu1 %2031 }
 0xa54   : > { %5912 = vrcp.f32 %v2032_v2  ;;  %v2268_v2 = vld [vmem:[%s7656_s14 + $0x8] sm:$0xff] }
 0xa57   : > { %v5857_v5 = vpop.permute.xlu1 %5856  ;;  %v2035_v6 = vpop.xlane.xlu0 %2034 }
 0xa58   : > { %v5859_v7 = vunpack.i.h.bf16 %v5857_v5  ;;  %v5858_v8 = vunpack.i.l.bf16 %v5857_v5  ;;  %5914 = vrcp.f32 %v2035_v6  ;;  %v2269_v6 = vld [vmem:[%s7656_s14 + $0x10] sm:$0xff] }
 0xa5a   : > { %v5461_v44 = vpack.c.bf16 %v5859_v7, %v5858_v8  ;;  %v2270_v7 = vld [vmem:[%s7656_s14 + $0x18] sm:$0xff] }
 0xa5b   : > { %v5485_v8 = vpack.c.bf16 %v2270_v7, %v2269_v6 }
 0xa5c   : > { %5462 = vmatprep.subr.bf16.mxu1 %v5461_v44 }
 0xa5d   : > { %5464 = vmatpush3.bf16.msra.mxu1 %v5461_v44  ;;  %v2271_v44 = vld [vmem:[%s7656_s14 + $0x20] sm:$0xff] }
 0xa5e   : > { %v5913_v9 = vpop.eup %5912 }
 0xa5f   : > { %v2038_v10 = vmul.f32 %v5913_v9, %v6788_v17  ;;  %v1090_v17 = vld [vmem:[%s7589_s7 + $0xb8] sm:$0xff]  ;;  %v2272_v9 = vld [vmem:[%s7656_s14 + $0x28] sm:$0xff] }
 0xa60   : > { %v5451_v30 = vpack.c.bf16 %v1090_v17, %v1089_v29 }
 0xa61   : > { %5040 = vmatprep.mubr.msk.f32.mxu1 %vm1186_vm3, %v2038_v10  ;;  %v5489_v10 = vpack.c.bf16 %v2272_v9, %v2271_v44 }
 0xa62   : > { %v5915_v45 = vpop.eup %5914 }
 0xa63   : > { %v2039_v13 = vmul.f32 %v5915_v45, %v6792_v32  ;;  %v2273_v45 = vld [vmem:[%s7656_s14 + $0x30] sm:$0xff] }
 0xa65   : > { %5041 = vmatmul.mubr.msk.f32.vlgmr.msra.gmra.mrb[18].mxu1 %vm1186_vm3, %v2039_v13  ;;  %v2274_v13 = vld [vmem:[%s7656_s14 + $0x38] sm:$0xff] }
 0xa66   : > { %v5493_v14 = vpack.c.bf16 %v2274_v13, %v2273_v45 }
 0xaa0   : > { %v4943_v16 = vpop.f32.mrb[8].mxu0 }
 0xaa1   : > { %v1281_v19 = vpop.f32.mrb[9].mxu0 }
 0xaa2   : > { %4993 = vmatprep.mubr.msk.f32.mxu0 %vm706_vm1, %v1281_v19 }
 0xaa3   : > { %4994 = vmatmul.mubr.msk.f32.vlgmr.msra.gmra.mrb[10].mxu0 %vm706_vm1, %v4943_v16  ;;  %v2374_v16 = vld [vmem:[%s7657_s11 + $0x8] sm:$0xff] }
 0xaa4   : > { %5442 = vmatpush3.bf16.msra.mxu0 %v5439_v1  ;;  %5026 = vmatprep.mubr.msk.f32.mxu0 %vm706_vm1, %v6777_v60  ;;  %v1092_v60 = vld [vmem:[%s7589_s7 + $0xc8] sm:$0xff]  ;;  %v2267_v1 = vld [vmem:[%s7656_s14] sm:$0xff]  ;;  %v5497_v19 = vpack.c.bf16 %v2374_v16, %v2373_v15 }
 0xaa5   : > { %5444 = vmatprep.subr.bf16.mxu0 %v5443_v20  ;;  %v5465_v32 = vpack.c.bf16 %v1092_v60, %v1091_v31  ;;  %v5481_v5 = vpack.c.bf16 %v2268_v2, %v2267_v1  ;;  %v4528_v31 = vld [vmem:[%s7658_s20] ss:$0 sm:$0xff] }
 0xaa7   : > { %5482 = vmatprep.subr.bf16.mxu1 %v5481_v5 }
 0xaa8   : > { %5446 = vmatpush3.bf16.msra.mxu0 %v5443_v20  ;;  %5484 = vmatpush3.bf16.msra.mxu1 %v5481_v5 }
 0xaa9   : > { %5448 = vmatprep.subr.bf16.mxu0 %v5447_v23  ;;  %5486 = vmatprep.subr.bf16.mxu1 %v5485_v8 }
 0xaac   : > { %5450 = vmatpush3.bf16.msra.mxu0 %v5447_v23  ;;  %5488 = vmatpush3.bf16.msra.mxu1 %v5485_v8 }
 0xaad   : > { %5452 = vmatprep.subr.bf16.mxu0 %v5451_v30  ;;  %5490 = vmatprep.subr.bf16.mxu1 %v5489_v10 }
 0xab0   : > { %5454 = vmatpush3.bf16.msra.mxu0 %v5451_v30  ;;  %5492 = vmatpush3.bf16.msra.mxu1 %v5489_v10 }
 0xab1   : > { %5466 = vmatprep.subr.bf16.mxu0 %v5465_v32  ;;  %5494 = vmatprep.subr.bf16.mxu1 %v5493_v14 }
 0xab3   : > { %5027 = vmatmul.mubr.msk.f32.vlgmr.msra.gmra.mrb[10].mxu0 %vm706_vm1, %v6775_v3 }
 0xab4   : > { %5468 = vmatpush3.bf16.msra.mxu0 %v5465_v32  ;;  %5496 = vmatpush3.bf16.msra.mxu1 %v5493_v14  ;;  %v4529_v32 = vld [vmem:[%s7659_s16] ss:$0 sm:$0xff] }
 0xab5   : > { %5470 = vmatprep.subr.bf16.mxu0 %v5469_v38  ;;  %5498 = vmatprep.subr.bf16.mxu1 %v5497_v19 }
 0xab8   : > { %5472 = vmatpush3.bf16.msra.mxu0 %v5469_v38 }
 0xab9   : > { %5474 = vmatprep.subr.bf16.mxu0 %v5473_v40 }
 0xabc   : > { %5476 = vmatpush3.bf16.msra.mxu0 %v5473_v40  ;;  %v2376_v40 = vld [vmem:[%s7657_s11 + $0x18] sm:$0xff] }
 0xabd   : > { %5478 = vmatprep.subr.bf16.mxu0 %v5477_v43 }
 0xac0   : > { %5480 = vmatpush3.bf16.msra.mxu0 %v5477_v43  ;;  %v5501_v43 = vpack.c.bf16 %v2376_v40, %v2375_v21 }
 0xb38   : > { %v5042_v46 = vpop.f32.mrb[18].mxu1 }
 0xb39   : > { %v2120_v47 = vpop.f32.mrb[19].mxu1 }
 0xb3a   : > { %5059 = vmatprep.mubr.msk.f32.mxu0 %vm706_vm1, %v2120_v47  ;;  %v2378_v47 = vld [vmem:[%s7657_s11 + $0x28] sm:$0xff] }
 0xb3b   : > { %5060 = vmatmul.mubr.msk.f32.vlgmr.msra.gmra.mrb[10].mxu0 %vm706_vm1, %v5042_v46  ;;  %v2377_v46 = vld [vmem:[%s7657_s11 + $0x20] sm:$0xff] }
 0xb3c   : > { %2673 = vmatprep.mubr.f32.mxu0 %v6164_v56 }
 0xc0e   : > { %v5061_v3 = vpop.f32.mrb[10].mxu0 }
 0xc0f   : > { %v2201_v49 = vpop.f32.mrb[11].mxu0  ;;  %v2213_v28 = vadd.f32 %v5061_v3, %v6482_v12  ;;  %v5505_v3 = vpack.c.bf16 %v2378_v47, %v2377_v46  ;;  %v4538_v46 = vld [vmem:[%s7587_s5 + $0x180] sm:$0xff]  ;;  %v4544_v47 = vld [vmem:[%s7587_s5 + $0x1b0] sm:$0xff] }
 0xc10   : > { %v2212_v50 = vadd.f32 %v2201_v49, %v6480_v11  ;;  %v2380_v49 = vld [vmem:[%s7657_s11 + $0x38] sm:$0xff] }
 0xc11   : > { %v6916_v52 = vadd.f32 %v4527_v48, %v2213_v28 }
 0xc12   : > { %v6914_v51 = vadd.f32 %v4527_v48, %v2212_v50  ;;  %v2379_v48 = vld [vmem:[%s7657_s11 + $0x30] sm:$0xff]  ;;  %v2381_v50 = vld [vmem:[%s7657_s11 + $0x40] sm:$0xff] }
 0xc13   : > { %v2228_v34 = vsel %vm706_vm1, %v6916_v52, 0.0  ;;  %v5509_v28 = vpack.c.bf16 %v2380_v49, %v2379_v48  ;;  %v5531_v48 = vpack.c.bf16 %v4544_v47, %v4538_v46  ;;  %v4547_v49 = vld [vmem:[%s7587_s5 + $0x1c8] sm:$0xff] }
 0xc14   : > { %v2225_v33 = vsel %vm706_vm1, %v6914_v51, 0.0 }
 0xc15   : > { %2226 = vadd.xlane.f32.xlu0 %v2225_v33  ;;  %v2382_v33 = vld [vmem:[%s7657_s11 + $0x48] sm:$0xff] }
 0xc19   : > { %2229 = vadd.xlane.f32.xlu0 %v2228_v34  ;;  %v5513_v34 = vpack.c.bf16 %v2382_v33, %v2381_v50  ;;  %v4546_v50 = vld [vmem:[%s7587_s5 + $0x1c0] sm:$0xff] }
 0xca2   : > { %v2227_v37 = vpop.xlane.xlu0 %2226 }
 0xca3   : > { %v2231_v27 = vmul.f32 0.015625, %v2227_v37  ;;  %v2383_v37 = vld [vmem:[%s7657_s11 + $0x50] sm:$0xff] }
 0xca5   : > { %v2233_v4 = vsub.f32 %v6914_v51, %v2231_v27  ;;  %v2384_v27 = vld [vmem:[%s7657_s11 + $0x58] sm:$0xff] }
 0xca6   : > { %v2230_v55 = vpop.xlane.xlu0 %2229 }
 0xca7   : > { %v2232_v12 = vmul.f32 0.015625, %v2230_v55  ;;  %v2235_v58 = vmul.f32 %v2233_v4, %v2233_v4  ;;  %v2385_v55 = vld [vmem:[%s7657_s11 + $0x60] sm:$0xff] }
 0xca9   : > { %v2234_v11 = vsub.f32 %v6916_v52, %v2232_v12  ;;  %v2237_v62 = vsel %vm706_vm1, %v2235_v58, 0.0  ;;  %v2386_v12 = vld [vmem:[%s7657_s11 + $0x68] sm:$0xff] }
 0xcaa   : > { %2238 = vadd.xlane.f32.xlu0 %v2237_v62  ;;  %v5521_v58 = vpack.c.bf16 %v2386_v12, %v2385_v55  ;;  %v2388_v62 = vld [vmem:[%s7657_s11 + $0x78] sm:$0xff]  ;;  %v4550_v55 = vld [vmem:[%s7587_s5 + $0x1e0] sm:$0xff]  ;;  %v4556_v12 = vld [vmem:[%s7587_s5 + $0x210] sm:$0xff] }
 0xcab   : > { %v2236_v63 = vmul.f32 %v2234_v11, %v2234_v11 }
 0xcad   : > { %v2240_v0 = vsel %vm706_vm1, %v2236_v63, 0.0 }
 0xcae   : > { %2241 = vadd.xlane.f32.xlu0 %v2240_v0  ;;  %v4530_v0 = vld [vmem:[%s7660_s21] ss:$0 sm:$0xff] }
 0xd37   : > { %v2239_v20 = vpop.xlane.xlu0 %2238 }
 0xd38   : > { %v2243_v22 = vmul.f32 0.015625, %v2239_v20  ;;  %v4533_v20 = vld [vmem:[%s7661_s22] ss:$0 sm:$0xff] }
 0xd3a   : > { %v2245_v26 = vadd.f32 1e-05, %v2243_v22 }
 0xd3b   : > { %v2242_v23 = vpop.xlane.xlu0 %2241 }
 0xd3c   : > { %5916 = vrsqrt.f32 %v2245_v26  ;;  %v2244_v29 = vmul.f32 0.015625, %v2242_v23 }
 0xd3e   : > { %v2246_v17 = vadd.f32 1e-05, %v2244_v29 }
 0xd40   : > { %5918 = vrsqrt.f32 %v2246_v17 }
 0xd46   : > { %v5917_v30 = vpop.eup %5916 }
 0xd47   : > { %v2249_v60 = vmul.f32 %v5917_v30, %v2233_v4  ;;  %v5517_v4 = vpack.c.bf16 %v2384_v27, %v2383_v37  ;;  %v4551_v37 = vld [vmem:[%s7587_s5 + $0x1e8] sm:$0xff]  ;;  %v4557_v27 = vld [vmem:[%s7587_s5 + $0x218] sm:$0xff] }
 0xd49   : > { %v2257_v35 = vmul.f32 %v4528_v31, %v2249_v60 }
 0xd4a   : > { %v5919_v36 = vpop.eup %5918 }
 0xd4b   : > { %v2250_v38 = vmul.f32 %v5919_v36, %v2234_v11  ;;  %v2265_v39 = vadd.f32 %v4529_v32, %v2257_v35  ;;  %v2387_v11 = vld [vmem:[%s7657_s11 + $0x70] sm:$0xff] }
 0xd4c   : > { %v5525_v63 = vpack.c.bf16 %v2388_v62, %v2387_v11  ;;  %v5535_v11 = vpack.c.bf16 %v4556_v12, %v4550_v55  ;;  %v4559_v62 = vld [vmem:[%s7587_s5 + $0x228] sm:$0xff] }
 0xd4d   : > { %v2258_v41 = vmul.f32 %v4528_v31, %v2250_v38  ;;  %5078 = vmatprep.mubr.msk.f32.mxu1 %vm706_vm1, %v2265_v39 }
 0xd4f   : > { %v2266_v42 = vadd.f32 %v4529_v32, %v2258_v41  ;;  %v4539_v41 = vld [vmem:[%s7587_s5 + $0x188] sm:$0xff] }
 0xd51   : > { %5079 = vmatmul.mubr.msk.f32.vlgmr.msra.gmra.mrb[20].mxu1 %vm706_vm1, %v2266_v42  ;;  %v4545_v42 = vld [vmem:[%s7587_s5 + $0x1b8] sm:$0xff] }
 0xd52   : > { %5500 = vmatpush3.bf16.msra.mxu1 %v5497_v19 }
 0xd53   : > { %5502 = vmatprep.subr.bf16.mxu1 %v5501_v43 }
 0xd56   : > { %5504 = vmatpush3.bf16.msra.mxu1 %v5501_v43  ;;  %v5529_v43 = vpack.c.bf16 %v4545_v42, %v4539_v41 }
 0xd57   : > { %5506 = vmatprep.subr.bf16.mxu1 %v5505_v3 }
 0xd58   : > { %5530 = vmatprep.subr.bf16.mxu0 %v5529_v43 }
 0xd59   : > { %5532 = vmatpush1.bf16.msra.mxu0 %v5531_v48 }
 0xd5a   : > { %5508 = vmatpush3.bf16.msra.mxu1 %v5505_v3  ;;  %v4541_v3 = vld [vmem:[%s7587_s5 + $0x198] sm:$0xff] }
 0xd5b   : > { %5510 = vmatprep.subr.bf16.mxu1 %v5509_v28  ;;  %v5545_v33 = vpack.c.bf16 %v4547_v49, %v4541_v3  ;;  %v4536_v49 = vld [vmem:[%s7585_s3 + $0x1] ss:$0 sm:$0xff] }
 0xd5e   : > { %5512 = vmatpush3.bf16.msra.mxu1 %v5509_v28  ;;  %v4540_v28 = vld [vmem:[%s7587_s5 + $0x190] sm:$0xff] }
 0xd5f   : > { %5514 = vmatprep.subr.bf16.mxu1 %v5513_v34 }
 0xd62   : > { %5516 = vmatpush3.bf16.msra.mxu1 %v5513_v34  ;;  %v5547_v34 = vpack.c.bf16 %v4546_v50, %v4540_v28  ;;  %v4542_v50 = vld [vmem:[%s7587_s5 + $0x1a0] sm:$0xff] }
 0xd63   : > { %5518 = vmatprep.subr.bf16.mxu1 %v5517_v4 }
 0xd66   : > { %5520 = vmatpush3.bf16.msra.mxu1 %v5517_v4  ;;  %v5533_v4 = vpack.c.bf16 %v4557_v27, %v4551_v37  ;;  %v4555_v37 = vld [vmem:[%s7587_s5 + $0x208] sm:$0xff] }
 0xd67   : > { %5522 = vmatprep.subr.bf16.mxu1 %v5521_v58 }
 0xd68   : > { %5534 = vmatprep.subr.bf16.mxu0 %v5533_v4 }
 0xd69   : > { %5536 = vmatpush1.bf16.msra.mxu0 %v5535_v11 }
 0xd6a   : > { %5524 = vmatpush3.bf16.msra.mxu1 %v5521_v58  ;;  %v4553_v58 = vld [vmem:[%s7587_s5 + $0x1f8] sm:$0xff] }
 0xd6b   : > { %5526 = vmatprep.subr.bf16.mxu1 %v5525_v63 }
 0xd6e   : > { %5528 = vmatpush3.bf16.msra.mxu1 %v5525_v63  ;;  %v4552_v63 = vld [vmem:[%s7587_s5 + $0x1f0] sm:$0xff] }
 0xd6f   : > { %5546 = vmatprep.subr.bf16.mxu1 %v5545_v33  ;;  %v4548_v33 = vld [vmem:[%s7587_s5 + $0x1d0] sm:$0xff] }
 0xd70   : > { %v5563_v55 = vpack.c.bf16 %v4548_v33, %v4542_v50 }
 0xe24   : > { %v5080_v1 = vpop.f32.mrb[20].mxu1 }
 0xe25   : > { %v2360_v2 = vadd.f32 %v5080_v1, %v4530_v0  ;;  %v2354_v5 = vpop.f32.mrb[21].mxu1  ;;  %v5549_v1 = vpack.c.bf16 %v4559_v62, %v4553_v58  ;;  %v4554_v62 = vld [vmem:[%s7587_s5 + $0x200] sm:$0xff] }
 0xe26   : > { %v2355_v6 = vadd.f32 %v4530_v0, %v2354_v5  ;;  %v4558_v0 = vld [vmem:[%s7587_s5 + $0x220] sm:$0xff]  ;;  %v4563_v5 = vld [vmem:[%s7587_s5 + $0x248] sm:$0xff] }
 0xe27   : > { %v2366_v7 = vmul.f32 0.70710677, %v2360_v2  ;;  %v2364_v14 = vmul.f32 0.5, %v2360_v2  ;;  %v5551_v2 = vpack.c.bf16 %v4558_v0, %v4552_v63  ;;  %v4560_v63 = vld [vmem:[%s7587_s5 + $0x230] sm:$0xff]  ;;  %v4567_v0 = vld [vmem:[%s7587_s5 + $0x268] sm:$0xff] }
 0xe28   : > { %v2365_v8 = vmul.f32 0.70710677, %v2355_v6  ;;  %v2363_v45 = vmul.f32 0.5, %v2355_v6  ;;  %v4569_v6 = vld [vmem:[%s7587_s5 + $0x278] sm:$0xff] }
 0xe29   : > { %5920 = verf.f32 %v2366_v7  ;;  %v5537_v7 = vpack.c.bf16 %v4569_v6, %v4563_v5 }
 0xe2a   : > { %5922 = verf.f32 %v2365_v8  ;;  %v4562_v8 = vld [vmem:[%s7587_s5 + $0x240] sm:$0xff] }
 0xe2b   : > { %5538 = vmatprep.subr.bf16.mxu0 %v5537_v7  ;;  %v4566_v7 = vld [vmem:[%s7587_s5 + $0x260] sm:$0xff] }
 0xe33   : > { %v5921_v44 = vpop.eup %5920 }
 0xe34   : > { %v5923_v9 = vpop.eup %5922  ;;  %v2370_v10 = vadd.f32 1.0, %v5921_v44  ;;  %v4568_v44 = vld [vmem:[%s7587_s5 + $0x270] sm:$0xff] }
 0xe35   : > { %v2369_v13 = vadd.f32 1.0, %v5923_v9  ;;  %v4565_v9 = vld [vmem:[%s7587_s5 + $0x258] sm:$0xff] }
 0xe36   : > { %v2372_v16 = vmul.f32 %v2370_v10, %v2364_v14  ;;  %v5539_v10 = vpack.c.bf16 %v4568_v44, %v4562_v8  ;;  %v4570_v14 = vld [vmem:[%s7587_s5 + $0x280] sm:$0xff]  ;;  %v4572_v8 = vld [vmem:[%s7587_s5 + $0x290] sm:$0xff]  ;;  %v4579_v44 = vld [vmem:[%s7587_s5 + $0x2c8] sm:$0xff] }
 0xe37   : > { %v2371_v15 = vmul.f32 %v2369_v13, %v2363_v45  ;;  %v4571_v45 = vld [vmem:[%s7587_s5 + $0x288] sm:$0xff]  ;;  %v4564_v13 = vld [vmem:[%s7587_s5 + $0x250] sm:$0xff] }
 0xe38   : > { %5540 = vmatpush1.bf16.msra.mxu0 %v5539_v10  ;;  %v5571_v10 = vpack.c.bf16 %v4572_v8, %v4566_v7 }
 0xe39   : > { %5113 = vmatprep.mubr.f32.mxu1 %v2371_v15  ;;  %v5553_v15 = vpack.c.bf16 %v4571_v45, %v4565_v9  ;;  %v4585_v9 = vld [vmem:[%s7587_s5 + $0x2f8] sm:$0xff] }
 0xe3a   : > { %5114 = vmatmul.mubr.f32.vlgmr.msra.gmra.mrb[22].mxu1 %v2372_v16  ;;  %v5555_v16 = vpack.c.bf16 %v4570_v14, %v4564_v13  ;;  %v5573_v45 = vpack.c.bf16 %v4585_v9, %v4579_v44  ;;  %v4578_v13 = vld [vmem:[%s7587_s5 + $0x2c0] sm:$0xff]  ;;  %v4584_v14 = vld [vmem:[%s7587_s5 + $0x2f0] sm:$0xff] }
 0xe3b   : > { %2750 = vmatprep.mubr.f32.mxu1 %v6164_v56  ;;  %5548 = vmatpush1.bf16.msra.mxu1 %v5547_v34  ;;  %v4537_v34 = vld [vmem:[%s7586_s4 + $0x1] ss:$0 sm:$0xff] }
 0xe3c   : > { %5550 = vmatprep.subr.bf16.mxu1 %v5549_v1  ;;  %v4573_v1 = vld [vmem:[%s7587_s5 + $0x298] sm:$0xff] }
 0xe3d   : > { %v5569_v6 = vpack.c.bf16 %v4573_v1, %v4567_v0 }
 0xe3f   : > { %5552 = vmatpush1.bf16.msra.mxu1 %v5551_v2  ;;  %v5567_v2 = vpack.c.bf16 %v4560_v63, %v4554_v62 }
 0xe40   : > { %5554 = vmatprep.subr.bf16.mxu1 %v5553_v15  ;;  %v5575_v15 = vpack.c.bf16 %v4584_v14, %v4578_v13 }
 0xe43   : > { %5556 = vmatpush1.bf16.msra.mxu1 %v5555_v16  ;;  %v7200_v16 = vld [vmem:[%s7588_s6 + $0x6] sm:$0x3f] }
 0xf0d   : > { %v5115_v19 = vpop.f32.mrb[22].mxu1 }
 0xf0e   : > { %v2465_v22 = vadd.f32 %v5115_v19, %v6916_v52  ;;  %v2455_v26 = vpop.f32.mrb[23].mxu1  ;;  %v4575_v19 = vld [vmem:[%s7587_s5 + $0x2a8] sm:$0xff] }
 0xf0f   : > { %v2464_v23 = vadd.f32 %v2455_v26, %v6914_v51 }
 0xf10   : > { %v7015_v29 = vadd.f32 %v4533_v20, %v2465_v22  ;;  %v4574_v22 = vld [vmem:[%s7587_s5 + $0x2a0] sm:$0xff] }
 0xf11   : > { %v7017_v17 = vadd.f32 %v4533_v20, %v2464_v23  ;;  %v4581_v20 = vld [vmem:[%s7587_s5 + $0x2d8] sm:$0xff]  ;;  %v4580_v23 = vld [vmem:[%s7587_s5 + $0x2d0] sm:$0xff] }
 0xf12   : > { %v2482_v30 = vsel %vm706_vm1, %v7015_v29, 0.0  ;;  %v5541_v26 = vpack.c.bf16 %v4581_v20, %v4575_v19  ;;  %v2576_v19 = vrot.slane %v7200_v16, %v802_v54 }
 0xf13   : > { %2483 = vadd.xlane.f32.xlu0 %v2482_v30  ;;  %v2479_v31 = vsel %vm706_vm1, %v7017_v17, 0.0  ;;  %v4577_v30 = vld [vmem:[%s7587_s5 + $0x2b8] sm:$0xff] }
 0xf14   : > { %2480 = vadd.xlane.f32.xlu1 %v2479_v31  ;;  %v4583_v31 = vld [vmem:[%s7587_s5 + $0x2e8] sm:$0xff]  ;;  %5542 = vmatprep.subr.bf16.mxu0 %v5541_v26 }
 0xfa0   : > { %v2484_v60 = vpop.xlane.xlu0 %2483 }
 0xfa1   : > { %v2486_v32 = vmul.f32 0.015625, %v2484_v60  ;;  %v2481_v35 = vpop.xlane.xlu1 %2480  ;;  %v5543_v60 = vpack.c.bf16 %v4580_v23, %v4574_v22  ;;  %v2584_v23 = vrot.slane %v7200_v16, %v810_v59 }
 0xfa2   : > { %v2485_v36 = vmul.f32 0.015625, %v2481_v35  ;;  %v4576_v35 = vld [vmem:[%s7587_s5 + $0x2b0] sm:$0xff] }
 0xfa3   : > { %v7024_v52 = vsub.f32 %v7015_v29, %v2486_v32  ;;  %v5557_v32 = vpack.c.bf16 %v4583_v31, %v4577_v30  ;;  %5544 = vmatpush1.bf16.msra.mxu0 %v5543_v60  ;;  %v2588_v31 = vrot.slane %v7200_v16, %v814_v61 }
 0xfa4   : > { %v7027_v51 = vsub.f32 %v7017_v17, %v2485_v36  ;;  %v4582_v36 = vld [vmem:[%s7587_s5 + $0x2e0] sm:$0xff] }
 0xfa5   : > { %v2490_v21 = vmul.f32 %v7024_v52, %v7024_v52  ;;  %5558 = vmatprep.subr.bf16.mxu1 %v5557_v32 }
 0xfa6   : > { %v2489_v38 = vmul.f32 %v7027_v51, %v7027_v51 }
 0xfa7   : > { %v2494_v40 = vsel %vm706_vm1, %v2490_v21, 0.0  ;;  %v4549_v21 = vld [vmem:[%s7587_s5 + $0x1d8] sm:$0xff] }
 0xfa8   : > { %v2491_v39 = vsel %vm706_vm1, %v2489_v38, 0.0  ;;  %v4543_v38 = vld [vmem:[%s7587_s5 + $0x1a8] sm:$0xff] }
 0xfa9   : > { %2492 = vadd.xlane.f32.xlu0 %v2491_v39  ;;  %v5559_v39 = vpack.c.bf16 %v4582_v36, %v4576_v35 }
 0xfab   : > { %5560 = vmatpush1.bf16.msra.mxu1 %v5559_v39 }
 0xfad   : > { %2495 = vadd.xlane.f32.xlu0 %v2494_v40  ;;  %v5561_v40 = vpack.c.bf16 %v4549_v21, %v4543_v38 }
 0xfaf   : > { %5562 = vmatprep.subr.bf16.mxu0 %v5561_v40 }
0x1036   : > { %v2493_v41 = vpop.xlane.xlu0 %2492 }
0x1037   : > { %v2497_v42 = vmul.f32 0.015625, %v2493_v41 }
0x1039   : > { %v2499_v43 = vadd.f32 1e-05, %v2497_v42 }
0x103a   : > { %v2496_v46 = vpop.xlane.xlu0 %2495 }
0x103b   : > { %5924 = vrsqrt.f32 %v2499_v43  ;;  %v2498_v47 = vmul.f32 0.015625, %v2496_v46  ;;  %v2592_v46 = vrot.slane %v7200_v16, %v818_v24 }
0x103d   : > { %v2500_v3 = vadd.f32 1e-05, %v2498_v47 }
0x103f   : > { %5926 = vrsqrt.f32 %v2500_v3  ;;  %v2596_v3 = vrot.slane %v7200_v16, %v822_v25 }
0x1045   : > { %v5925_v48 = vpop.eup %5924 }
0x1046   : > { %v2503_v28 = vmul.f32 %v5925_v48, %v7027_v51  ;;  %v4561_v51 = vld [vmem:[%s7587_s5 + $0x238] sm:$0xff] }
0x1047   : > { %v5565_v58 = vpack.c.bf16 %v4561_v51, %v4555_v37 }
0x1048   : > { %v2511_v27 = vmul.f32 %v4536_v49, %v2503_v28 }
0x1049   : > { %v5927_v4 = vpop.eup %5926 }
0x104a   : > { %v2519_v12 = vadd.f32 %v4537_v34, %v2511_v27  ;;  %v2504_v11 = vmul.f32 %v5927_v4, %v7024_v52 }
0x104c   : > { %4587 = vmatmul.mubr.msk.f32.vlgmr.msra.gmra.mrb[12].mxu0 %vm706_vm1, %v2519_v12  ;;  %4589 = vmatmul.mubr.msk.f32.vlgmr.msra.gmra.mrb[24].mxu1 %vm706_vm1, %v2519_v12  ;;  %v2512_v52 = vmul.f32 %v4536_v49, %v2504_v11 }
0x104d   : > { %5564 = vmatpush1.bf16.msra.mxu0 %v5563_v55  ;;  %2679 = vmatprep.mubr.f32.mxu0 %v6164_v56 }
0x104e   : > { %2756 = vmatprep.mubr.f32.mxu1 %v6164_v56  ;;  %5566 = vmatprep.subr.bf16.mxu0 %v5565_v58  ;;  %v2520_v5 = vadd.f32 %v4537_v34, %v2512_v52 }
0x1050   : > { %4588 = vmatmul.mubr.msk.f32.gmra.mrb[14].mxu0 %vm706_vm1, %v2520_v5  ;;  %4590 = vmatmul.mubr.msk.f32.gmra.mrb[26].mxu1 %vm706_vm1, %v2520_v5 }
0x1051   : > { %5568 = vmatpush1.bf16.msra.mxu0 %v5567_v2  ;;  %2827 = vmatprep.mubr.f32.mxu0 %v6164_v56 }
0x1052   : > { %5570 = vmatprep.subr.bf16.mxu0 %v5569_v6 }
0x1055   : > { %5572 = vmatpush1.bf16.msra.mxu0 %v5571_v10 }
0x1056   : > { %5574 = vmatprep.subr.bf16.mxu0 %v5573_v45 }
0x1059   : > { %5576 = vmatpush1.bf16.msra.mxu0 %v5575_v15 }
0x105c   : > { %4591 = vmatmul.mubr.msk.f32.vlgmr.msra.gmra.mrb[16].mxu0 %vm706_vm1, %v2519_v12 }
0x105d   : > { %2833 = vmatprep.mubr.f32.mxu0 %v6164_v56 }
0x1060   : > { %4592 = vmatmul.mubr.msk.f32.gmra.mrb[18].mxu0 %vm706_vm1, %v2520_v5 }
0x111f   : > { %v2675_v20 = vpop.f32.mrb[12].mxu0  ;;  %v2752_v22 = vpop.f32.mrb[24].mxu1 }
0x1120   : > { %v2676_v26 = vadd.f32 %v2675_v20, %v2576_v19  ;;  %v7208_v30 = vpop.f32.mrb[13].mxu0  ;;  %v2754_v56 = vpop.f32.mrb[25].mxu1  ;;  %v2753_v32 = vadd.f32 %v2752_v22, %v2584_v23 }
0x1121   : > { %v7217_v39 = vadd.f32 %v2754_v56, %v2588_v31 }
0x1122   : > { %3063 = vrot.lane.b32.xlu1 %v2676_v26, %s7662_s12  ;;  %5120 = vmatprep.mubr.msk.f32.mxu1 %vm706_vm1, %v2676_v26 }
0x1123   : > { %v2681_v60 = vpop.f32.mrb[14].mxu0  ;;  %v2758_v54 = vpop.f32.mrb[26].mxu1 }
0x1124   : > { %v2759_v35 = vadd.f32 %v2758_v54, %v2584_v23  ;;  %v7215_v36 = vpop.f32.mrb[15].mxu0  ;;  %v2760_v38 = vpop.f32.mrb[27].mxu1  ;;  %v2682_v42 = vadd.f32 %v2681_v60, %v2576_v19 }
0x1125   : > { %v7219_v59 = vadd.f32 %v2760_v38, %v2588_v31  ;;  %v2580_v38 = vrot.slane %v7200_v16, %v806_v57  ;;  %v4601_v57 = vld [vmem:[%s7589_s7 + $0x140] sm:$0xff]  ;;  %v4602_v16 = vld [vmem:[%s7589_s7 + $0x148] sm:$0xff] }
0x1126   : > { %v5860_v21 = vpack.i.bf16 %v2759_v35, %v2753_v32  ;;  %v5577_v40 = vpack.c.bf16 %v2759_v35, %v2753_v32 }
0x1127   : > { %v5870_v61 = vpack.i.bf16 %v7219_v59, %v7217_v39  ;;  %v7225_v41 = vpack.c.bf16 %v7219_v59, %v7217_v39  ;;  %v4613_v39 = vld [vmem:[%s7589_s7 + $0x1a0] sm:$0xff]  ;;  %v4614_v59 = vld [vmem:[%s7589_s7 + $0x1a8] sm:$0xff] }
0x1128   : > { %5861 = vrot.lane.b32.xlu0 %v5860_v21, %s7662_s12  ;;  %5579 = vmatprep.subr.msk.bf16.mxu1 %vm6690_vm2, %v5577_v40 }
0x1129   : > { %5582 = vmatpush3.bf16.xpose.msk.msra.mxu1 %vm6690_vm2, %v5577_v40  ;;  %v2678_v40 = vadd.f32 %v7208_v30, %v2580_v38  ;;  %v4603_v30 = vld [vmem:[%s7589_s7 + $0x150] sm:$0xff] }
0x112c   : > { %3065 = vrot.lane.b32.xlu0 %v2682_v42, %s7662_s12 }
0x112f   : > { %v2829_v43 = vpop.f32.mrb[16].mxu0 }
0x1130   : > { %v2831_v47 = vpop.f32.mrb[17].mxu0  ;;  %5121 = vmatmul.mubr.msk.f32.vlgmr.msra.gmra.mrb[28].mxu1 %vm706_vm1, %v2682_v42  ;;  %v7240_v49 = vadd.f32 %v2829_v43, %v2592_v46  ;;  %v2684_v43 = vadd.f32 %v7215_v36, %v2580_v38  ;;  %v5597_v36 = vpack.c.bf16 %v4602_v16, %v4601_v57  ;;  %v4612_v16 = vld [vmem:[%s7589_s7 + $0x198] sm:$0xff] }
0x1131   : > { %v7242_v33 = vadd.f32 %v2831_v47, %v2596_v3 }
0x1133   : > { %v2835_v48 = vpop.f32.mrb[18].mxu0 }
0x1134   : > { %v2836_v28 = vadd.f32 %v2835_v48, %v2592_v46  ;;  %v2837_v50 = vpop.f32.mrb[19].mxu0  ;;  %v4604_v48 = vld [vmem:[%s7589_s7 + $0x158] sm:$0xff] }
0x1135   : > { %v7244_v34 = vadd.f32 %v2837_v50, %v2596_v3  ;;  %v4606_v50 = vld [vmem:[%s7589_s7 + $0x168] sm:$0xff] }
0x1136   : > { %v5865_v37 = vpack.i.bf16 %v2836_v28, %v7240_v49  ;;  %v5583_v24 = vpack.c.bf16 %v2836_v28, %v7240_v49  ;;  %v5601_v49 = vpack.c.bf16 %v4604_v48, %v4603_v30  ;;  %v4605_v28 = vld [vmem:[%s7589_s7 + $0x160] sm:$0xff]  ;;  %v4616_v48 = vld [vmem:[%s7589_s7 + $0x1b8] sm:$0xff] }
0x1137   : > { %v5875_v51 = vpack.i.bf16 %v7244_v34, %v7242_v33  ;;  %v7252_v27 = vpack.c.bf16 %v7244_v34, %v7242_v33  ;;  %v4621_v33 = vld [vmem:[%s7589_s7 + $0x1e0] sm:$0xff]  ;;  %v4622_v34 = vld [vmem:[%s7589_s7 + $0x1e8] sm:$0xff] }
0x1138   : > { %5584 = vmatprep.subr.bf16.mxu1 %v5583_v24 }
0x1139   : > { %5586 = vmatpush3.bf16.msra.mxu1 %v5583_v24  ;;  %v4607_v24 = vld [vmem:[%s7589_s7 + $0x170] sm:$0xff] }
0x1194   : > { %v3064_v25 = vpop.permute.xlu1 %3063 }
0x1195   : > { %5134 = vmatprep.mubr.msk.f32.mxu0 %vm706_vm1, %v3064_v25  ;;  %v4608_v25 = vld [vmem:[%s7589_s7 + $0x178] sm:$0xff] }
0x119a   : > { %v5862_v4 = vpop.permute.xlu0 %5861 }
0x119b   : > { %v5864_v55 = vunpack.i.h.bf16 %v5862_v4  ;;  %v5863_v12 = vunpack.i.l.bf16 %v5862_v4  ;;  %v5609_v4 = vpack.c.bf16 %v4608_v25, %v4607_v24 }
0x119d   : > { %v5587_v58 = vpack.c.bf16 %v5864_v55, %v5863_v12 }
0x119e   : > { %v3066_v11 = vpop.permute.xlu0 %3065 }
0x119f   : > { %5589 = vmatprep.subr.msk.bf16.mxu0 %vm6690_vm2, %v5587_v58 }
0x11a0   : > { %5592 = vmatpush3.bf16.xpose.msk.msra.mxu0 %vm6690_vm2, %v5587_v58 }
0x11a1   : > { %5598 = vmatprep.subr.bf16.mxu0 %v5597_v36 }
0x11a7   : > { %5135 = vmatmul.mubr.msk.f32.vlgmr.msra.gmra.mrb[20].mxu0 %vm706_vm1, %v3066_v11 }
0x11a8   : > { %5600 = vmatpush3.bf16.msra.mxu0 %v5597_v36  ;;  %v4615_v36 = vld [vmem:[%s7589_s7 + $0x1b0] sm:$0xff] }
0x11a9   : > { %5602 = vmatprep.subr.bf16.mxu0 %v5601_v49 }
0x11ac   : > { %5604 = vmatpush3.bf16.msra.mxu0 %v5601_v49  ;;  %v5651_v49 = vpack.c.bf16 %v4616_v48, %v4615_v36 }
0x1203   : > { %v5122_v62 = vpop.f32.mrb[28].mxu1 }
0x1204   : > { %v2951_v63 = vpop.f32.mrb[29].mxu1  ;;  %v2963_v0 = vsel %vm1186_vm3, %v5122_v62, -inf }
0x1205   : > { %2964 = vmax.xlane.f32.xlu1 %v2963_v0  ;;  %v2960_v1 = vsel %vm1186_vm3, %v2951_v63, -inf }
0x1206   : > { %2961 = vmax.xlane.f32.xlu0 %v2960_v1 }
0x127a   : > { %v5136_v52 = vpop.f32.mrb[20].mxu0 }
0x127b   : > { %v3145_v2 = vpop.f32.mrb[21].mxu0  ;;  %v3157_v6 = vsel %vm1186_vm3, %v5136_v52, -inf }
0x127c   : > { %v3154_v5 = vsel %vm1186_vm3, %v3145_v2, -inf }
0x127d   : > { %3155 = vmax.xlane.f32.xlu0 %v3154_v5  ;;  %v4593_v5 = vld [vmem:[%s7589_s7 + $0x100] sm:$0xff] }
0x1281   : > { %3158 = vmax.xlane.f32.xlu0 %v3157_v6  ;;  %v4594_v6 = vld [vmem:[%s7589_s7 + $0x108] sm:$0xff] }
0x1292   : > { %v2965_v7 = vpop.xlane.xlu1 %2964 }
0x1293   : > { %v2967_v8 = vsub.f32 %v5122_v62, %v2965_v7  ;;  %v2962_v44 = vpop.xlane.xlu0 %2961  ;;  %v5613_v7 = vpack.c.bf16 %v4594_v6, %v4593_v5 }
0x1294   : > { %v2966_v9 = vsub.f32 %v2951_v63, %v2962_v44  ;;  %v4595_v44 = vld [vmem:[%s7589_s7 + $0x110] sm:$0xff] }
0x1295   : > { %v2970_v10 = vmul.f32 1.442695, %v2967_v8 }
0x1296   : > { %v2968_v45 = vmul.f32 1.442695, %v2966_v9 }
0x1297   : > { %5928 = vpow2.f32 %v2970_v10 }
0x1298   : > { %5930 = vpow2.f32 %v2968_v45 }
0x12a1   : > { %v5929_v13 = vpop.eup %5928 }
0x12a2   : > { %v2975_v14 = vsel %vm1186_vm3, %v5929_v13, 0.0  ;;  %v5931_v15 = vpop.eup %5930 }
0x12a3   : > { %2976 = vadd.xlane.f32.xlu0 %v2975_v14  ;;  %v2972_v19 = vsel %vm1186_vm3, %v5931_v15, 0.0  ;;  %v4598_v14 = vld [vmem:[%s7589_s7 + $0x128] sm:$0xff] }
0x12a7   : > { %2973 = vadd.xlane.f32.xlu0 %v2972_v19  ;;  %v4599_v19 = vld [vmem:[%s7589_s7 + $0x130] sm:$0xff] }
0x130a   : > { %v3156_v20 = vpop.xlane.xlu0 %3155 }
0x130b   : > { %v3160_v22 = vsub.f32 %v3145_v2, %v3156_v20  ;;  %v4600_v20 = vld [vmem:[%s7589_s7 + $0x138] sm:$0xff] }
0x130d   : > { %v3162_v26 = vmul.f32 1.442695, %v3160_v22 }
0x130e   : > { %v3159_v23 = vpop.xlane.xlu0 %3158 }
0x130f   : > { %5932 = vpow2.f32 %v3162_v26  ;;  %v3161_v56 = vsub.f32 %v5136_v52, %v3159_v23  ;;  %v5625_v23 = vpack.c.bf16 %v4600_v20, %v4599_v19  ;;  %v4619_v19 = vld [vmem:[%s7589_s7 + $0x1d0] sm:$0xff] }
0x1311   : > { %v3164_v31 = vmul.f32 1.442695, %v3161_v56 }
0x1313   : > { %5934 = vpow2.f32 %v3164_v31 }
0x1319   : > { %v5933_v60 = vpop.eup %5932 }
0x131a   : > { %v3166_v54 = vsel %vm1186_vm3, %v5933_v60, 0.0 }
0x131b   : > { %3167 = vadd.xlane.f32.xlu0 %v3166_v54 }
0x131d   : > { %v5935_v32 = vpop.eup %5934 }
0x131e   : > { %v3169_v35 = vsel %vm1186_vm3, %v5935_v32, 0.0 }
0x131f   : > { %3170 = vadd.xlane.f32.xlu1 %v3169_v35 }
0x1330   : > { %v2977_v21 = vpop.xlane.xlu0 %2976 }
0x1331   : > { %5866 = vrot.lane.b32.xlu0 %v5865_v37, %s7662_s12  ;;  %5936 = vrcp.f32 %v2977_v21  ;;  %v5605_v37 = vpack.c.bf16 %v4606_v50, %v4605_v28 }
0x1333   : > { %5606 = vmatprep.subr.bf16.mxu0 %v5605_v37 }
0x1334   : > { %v2974_v42 = vpop.xlane.xlu0 %2973  ;;  %5608 = vmatpush3.bf16.msra.mxu0 %v5605_v37 }
0x1335   : > { %5938 = vrcp.f32 %v2974_v42  ;;  %3700 = vrot.lane.b32.xlu0 %v2678_v40, %s7662_s12  ;;  %5610 = vmatprep.subr.bf16.mxu0 %v5609_v4 }
0x1338   : > { %5612 = vmatpush3.bf16.msra.mxu0 %v5609_v4 }
0x1339   : > { %3702 = vrot.lane.b32.xlu0 %v2684_v43, %s7662_s12  ;;  %5614 = vmatprep.subr.bf16.mxu0 %v5613_v7 }
0x133b   : > { %v5937_v46 = vpop.eup %5936 }
0x133c   : > { %v2981_v53 = vmul.f32 %v5937_v46, %v5929_v13  ;;  %v4597_v13 = vld [vmem:[%s7589_s7 + $0x120] sm:$0xff] }
0x133f   : > { %v5939_v47 = vpop.eup %5938 }
0x1340   : > { %v2980_v3 = vmul.f32 %v5939_v47, %v5931_v15  ;;  %v5621_v15 = vpack.c.bf16 %v4598_v14, %v4597_v13  ;;  %v4609_v47 = vld [vmem:[%s7589_s7 + $0x180] sm:$0xff] }
0x1341   : > { %v4617_v14 = vld [vmem:[%s7589_s7 + $0x1c0] sm:$0xff] }
0x1342   : > { %5127 = vmatprep.mubr.msk.f32.mxu1 %vm1186_vm3, %v2980_v3  ;;  %v4610_v3 = vld [vmem:[%s7589_s7 + $0x188] sm:$0xff] }
0x1343   : > { %5128 = vmatmul.mubr.msk.f32.vlgmr.msra.gmra.mrb[30].mxu1 %vm1186_vm3, %v2981_v53  ;;  %v4611_v53 = vld [vmem:[%s7589_s7 + $0x190] sm:$0xff]  ;;  %v5639_v57 = vpack.c.bf16 %v4610_v3, %v4609_v47 }
0x1344   : > { %v5643_v30 = vpack.c.bf16 %v4612_v16, %v4611_v53 }
0x13a8   : > { %v3168_v55 = vpop.xlane.xlu0 %3167 }
0x13a9   : > { %5940 = vrcp.f32 %v3168_v55 }
0x13ac   : > { %v3171_v12 = vpop.xlane.xlu1 %3170  ;;  %v5867_v58 = vpop.permute.xlu0 %5866 }
0x13ad   : > { %5942 = vrcp.f32 %v3171_v12  ;;  %v5869_v11 = vunpack.i.h.bf16 %v5867_v58  ;;  %v5868_v62 = vunpack.i.l.bf16 %v5867_v58 }
0x13af   : > { %v5593_v63 = vpack.c.bf16 %v5869_v11, %v5868_v62 }
0x13b0   : > { %v3701_v62 = vpop.permute.xlu0 %3700 }
0x13b1   : > { %5594 = vmatprep.subr.bf16.mxu1 %v5593_v63 }
0x13b2   : > { %5596 = vmatpush3.bf16.msra.mxu1 %v5593_v63 }
0x13b3   : > { %v5941_v0 = vpop.eup %5940  ;;  %5631 = vmatprep.subr.msk.bf16.mxu1 %vm6690_vm2, %v7225_v41 }
0x13b4   : > { %v3174_v1 = vmul.f32 %v5941_v0, %v5933_v60  ;;  %v3703_v63 = vpop.permute.xlu0 %3702 }
0x13b6   : > { %5141 = vmatprep.mubr.msk.f32.mxu1 %vm1186_vm3, %v3174_v1 }
0x13b7   : > { %v5943_v52 = vpop.eup %5942 }
0x13b8   : > { %v3175_v2 = vmul.f32 %v5943_v52, %v5935_v32 }
0x13ba   : > { %5142 = vmatmul.mubr.msk.f32.vlgmr.msra.gmra.mrb[32].mxu1 %vm1186_vm3, %v3175_v2 }
0x13bb   : > { %5634 = vmatpush3.bf16.xpose.msk.msra.mxu1 %vm6690_vm2, %v7225_v41  ;;  %5186 = vmatprep.mubr.msk.f32.mxu1 %vm706_vm1, %v2678_v40 }
0x13bc   : > { %5636 = vmatprep.subr.bf16.mxu1 %v7252_v27 }
0x13c2   : > { %5187 = vmatmul.mubr.msk.f32.vlgmr.msra.gmra.mrb[34].mxu1 %vm706_vm1, %v2684_v43 }
0x13c3   : > { %5638 = vmatpush3.bf16.msra.mxu1 %v7252_v27  ;;  %v4596_v27 = vld [vmem:[%s7589_s7 + $0x118] sm:$0xff] }
0x13c4   : > { %v5617_v45 = vpack.c.bf16 %v4596_v27, %v4595_v44 }
0x1416   : > { %v5129_v8 = vpop.f32.mrb[30].mxu1 }
0x1417   : > { %v3054_v41 = vpop.f32.mrb[31].mxu1 }
0x148d   : > { %v5143_v9 = vpop.f32.mrb[32].mxu1 }
0x148e   : > { %v3256_v10 = vpop.f32.mrb[33].mxu1 }
0x148f   : > { %5160 = vmatprep.mubr.msk.f32.mxu0 %vm706_vm1, %v3256_v10 }
0x1490   : > { %5161 = vmatmul.mubr.msk.f32.vlgmr.msra.gmra.mrb[22].mxu0 %vm706_vm1, %v5143_v9 }
0x1491   : > { %5616 = vmatpush3.bf16.msra.mxu0 %v5613_v7  ;;  %5179 = vmatprep.mubr.msk.f32.mxu0 %vm706_vm1, %v3054_v41 }
0x1492   : > { %5618 = vmatprep.subr.bf16.mxu0 %v5617_v45 }
0x1495   : > { %5620 = vmatpush3.bf16.msra.mxu0 %v5617_v45  ;;  %v5188_v22 = vpop.f32.mrb[34].mxu1 }
0x1496   : > { %v3505_v26 = vpop.f32.mrb[35].mxu1  ;;  %5622 = vmatprep.subr.bf16.mxu0 %v5621_v15  ;;  %v3517_v31 = vsel %vm1186_vm3, %v5188_v22, -inf }
0x1497   : > { %v3514_v56 = vsel %vm1186_vm3, %v3505_v26, -inf }
0x1498   : > { %3515 = vmax.xlane.f32.xlu1 %v3514_v56  ;;  %v4624_v56 = vld [vmem:[%s7589_s7 + $0x1f8] sm:$0xff] }
0x1499   : > { %5624 = vmatpush3.bf16.msra.mxu0 %v5621_v15  ;;  %v4618_v15 = vld [vmem:[%s7589_s7 + $0x1c8] sm:$0xff] }
0x149a   : > { %5626 = vmatprep.subr.bf16.mxu0 %v5625_v23  ;;  %v5665_v20 = vpack.c.bf16 %v4618_v15, %v4617_v14  ;;  %v4661_v15 = vld [vmem:[%s7658_s20 + $0x1] ss:$0 sm:$0xff] }
0x149c   : > { %3518 = vmax.xlane.f32.xlu1 %v3517_v31 }
0x149d   : > { %5628 = vmatpush3.bf16.msra.mxu0 %v5625_v23  ;;  %v4623_v23 = vld [vmem:[%s7589_s7 + $0x1f0] sm:$0xff] }
0x149e   : > { %5640 = vmatprep.subr.bf16.mxu0 %v5639_v57  ;;  %v5677_v31 = vpack.c.bf16 %v4624_v56, %v4623_v23  ;;  %v4678_v23 = vld [vmem:[%s7657_s11 + $0x98] sm:$0xff] }
0x14a0   : > { %5180 = vmatmul.mubr.msk.f32.vlgmr.msra.gmra.mrb[22].mxu0 %vm706_vm1, %v5129_v8 }
0x14a1   : > { %5642 = vmatpush3.bf16.msra.mxu0 %v5639_v57  ;;  %v4658_v57 = vld [vmem:[%s7590_s8 + $0x1] ss:$0 sm:$0xff] }
0x14a2   : > { %5644 = vmatprep.subr.bf16.mxu0 %v5643_v30 }
0x14a5   : > { %5646 = vmatpush3.bf16.msra.mxu0 %v5643_v30 }
0x1525   : > { %v3516_v60 = vpop.xlane.xlu1 %3515 }
0x1526   : > { %v3520_v54 = vsub.f32 %v3505_v26, %v3516_v60 }
0x1528   : > { %v3522_v38 = vmul.f32 1.442695, %v3520_v54 }
0x1529   : > { %v3519_v32 = vpop.xlane.xlu1 %3518 }
0x152a   : > { %v3521_v35 = vsub.f32 %v5188_v22, %v3519_v32  ;;  %v4620_v22 = vld [vmem:[%s7589_s7 + $0x1d8] sm:$0xff] }
0x152b   : > { %v5669_v26 = vpack.c.bf16 %v4620_v22, %v4619_v19 }
0x152c   : > { %v3524_v21 = vmul.f32 1.442695, %v3521_v35 }
0x152e   : > { %5944 = vpow2.f32 %v3524_v21 }
0x152f   : > { %5946 = vpow2.f32 %v3522_v38 }
0x1538   : > { %v5945_v40 = vpop.eup %5944 }
0x1539   : > { %v3529_v42 = vsel %vm1186_vm3, %v5945_v40, 0.0  ;;  %v5947_v43 = vpop.eup %5946 }
0x153a   : > { %3530 = vadd.xlane.f32.xlu1 %v3529_v42  ;;  %v3526_v46 = vsel %vm1186_vm3, %v5947_v43, 0.0 }
0x153e   : > { %3527 = vadd.xlane.f32.xlu1 %v3526_v46 }
0x154f   : > { %5871 = vrot.lane.b32.xlu1 %v5870_v61, %s7662_s12  ;;  %v5647_v61 = vpack.c.bf16 %v4614_v59, %v4613_v39 }
0x1551   : > { %5648 = vmatprep.subr.bf16.mxu0 %v5647_v61 }
0x1552   : > { %5650 = vmatpush3.bf16.msra.mxu0 %v5647_v61 }
0x1553   : > { %5652 = vmatprep.subr.bf16.mxu0 %v5651_v49 }
0x1556   : > { %5654 = vmatpush3.bf16.msra.mxu0 %v5651_v49 }
0x1557   : > { %5666 = vmatprep.subr.bf16.mxu0 %v5665_v20 }
0x15c7   : > { %v3531_v28 = vpop.xlane.xlu1 %3530 }
0x15c8   : > { %5948 = vrcp.f32 %v3531_v28 }
0x15cb   : > { %v3528_v50 = vpop.xlane.xlu1 %3527 }
0x15cc   : > { %5950 = vrcp.f32 %v3528_v50 }
0x15cf   : > { %v5872_v37 = vpop.permute.xlu1 %5871 }
0x15d0   : > { %v5874_v24 = vunpack.i.h.bf16 %v5872_v37  ;;  %v5873_v25 = vunpack.i.l.bf16 %v5872_v37 }
0x15d2   : > { %v5655_v4 = vpack.c.bf16 %v5874_v24, %v5873_v25  ;;  %v5949_v55 = vpop.eup %5948 }
0x15d3   : > { %v3535_v11 = vmul.f32 %v5949_v55, %v5945_v40 }
0x15d4   : > { %5657 = vmatprep.subr.msk.bf16.mxu1 %vm6690_vm2, %v5655_v4 }
0x15d6   : > { %v5951_v12 = vpop.eup %5950 }
0x15d7   : > { %v3534_v58 = vmul.f32 %v5951_v12, %v5947_v43  ;;  %v4663_v12 = vld [vmem:[%s7656_s14 + $0x40] sm:$0xff] }
0x15d9   : > { %5193 = vmatprep.mubr.msk.f32.mxu1 %vm1186_vm3, %v3534_v58  ;;  %v4664_v58 = vld [vmem:[%s7656_s14 + $0x48] sm:$0xff] }
0x15da   : > { %5194 = vmatmul.mubr.msk.f32.vlgmr.msra.gmra.mrb[36].mxu1 %vm1186_vm3, %v3535_v11  ;;  %v5681_v11 = vpack.c.bf16 %v4664_v58, %v4663_v12 }
0x15db   : > { %5660 = vmatpush3.bf16.xpose.msk.msra.mxu1 %vm6690_vm2, %v5655_v4  ;;  %5219 = vmatprep.mubr.msk.f32.mxu1 %vm706_vm1, %v3701_v62  ;;  %v4665_v62 = vld [vmem:[%s7656_s14 + $0x50] sm:$0xff] }
0x15e2   : > { %5220 = vmatmul.mubr.msk.f32.vlgmr.msra.gmra.mrb[38].mxu1 %vm706_vm1, %v3703_v63  ;;  %v4666_v63 = vld [vmem:[%s7656_s14 + $0x58] sm:$0xff] }
0x16ad   : > { %v5195_v0 = vpop.f32.mrb[36].mxu1 }
0x16ae   : > { %v3608_v1 = vpop.f32.mrb[37].mxu1 }
0x16af   : > { %5212 = vmatprep.mubr.msk.f32.mxu0 %vm706_vm1, %v3608_v1  ;;  %v4667_v1 = vld [vmem:[%s7656_s14 + $0x60] sm:$0xff] }
0x16b0   : > { %5213 = vmatmul.mubr.msk.f32.vlgmr.msra.gmra.mrb[22].mxu0 %vm706_vm1, %v5195_v0  ;;  %v5685_v0 = vpack.c.bf16 %v4666_v63, %v4665_v62 }
0x16b1   : > { %5668 = vmatpush3.bf16.msra.mxu0 %v5665_v20  ;;  %v4662_v20 = vld [vmem:[%s7659_s16 + $0x1] ss:$0 sm:$0xff] }
0x16b2   : > { %5670 = vmatprep.subr.bf16.mxu0 %v5669_v26 }
0x16b5   : > { %v5221_v52 = vpop.f32.mrb[38].mxu1  ;;  %5672 = vmatpush3.bf16.msra.mxu0 %v5669_v26 }
0x16b6   : > { %v3782_v2 = vpop.f32.mrb[39].mxu1  ;;  %v3794_v5 = vsel %vm1186_vm3, %v5221_v52, -inf }
0x16b7   : > { %3795 = vmax.xlane.f32.xlu1 %v3794_v5  ;;  %v3791_v6 = vsel %vm1186_vm3, %v3782_v2, -inf  ;;  %v4669_v5 = vld [vmem:[%s7656_s14 + $0x70] sm:$0xff] }
0x16b8   : > { %3792 = vmax.xlane.f32.xlu0 %v3791_v6  ;;  %v4670_v6 = vld [vmem:[%s7656_s14 + $0x78] sm:$0xff] }
0x1744   : > { %v3796_v18 = vpop.xlane.xlu1 %3795 }
0x1745   : > { %v3798_v7 = vsub.f32 %v5221_v52, %v3796_v18  ;;  %v3793_v8 = vpop.xlane.xlu0 %3792  ;;  %v4668_v52 = vld [vmem:[%s7656_s14 + $0x68] sm:$0xff]  ;;  %v5693_v18 = vpack.c.bf16 %v4670_v6, %v4669_v5 }
0x1746   : > { %v3797_v41 = vsub.f32 %v3782_v2, %v3793_v8  ;;  %v5689_v2 = vpack.c.bf16 %v4668_v52, %v4667_v1  ;;  %v4676_v8 = vld [vmem:[%s7657_s11 + $0x88] sm:$0xff] }
0x1747   : > { %v3801_v44 = vmul.f32 1.442695, %v3798_v7  ;;  %v4675_v7 = vld [vmem:[%s7657_s11 + $0x80] sm:$0xff] }
0x1748   : > { %v3799_v27 = vmul.f32 1.442695, %v3797_v41  ;;  %v5697_v41 = vpack.c.bf16 %v4676_v8, %v4675_v7 }
0x1749   : > { %5952 = vpow2.f32 %v3801_v44 }
0x174a   : > { %5954 = vpow2.f32 %v3799_v27 }
0x1753   : > { %v5953_v9 = vpop.eup %5952 }
0x1754   : > { %v3806_v10 = vsel %vm1186_vm3, %v5953_v9, 0.0  ;;  %v5955_v45 = vpop.eup %5954 }
0x1755   : > { %3807 = vadd.xlane.f32.xlu0 %v3806_v10  ;;  %v3803_v13 = vsel %vm1186_vm3, %v5955_v45, 0.0 }
0x1759   : > { %3804 = vadd.xlane.f32.xlu0 %v3803_v13 }
0x176f   : > { %5876 = vrot.lane.b32.xlu0 %v5875_v51, %s7662_s12  ;;  %v5673_v51 = vpack.c.bf16 %v4622_v34, %v4621_v33  ;;  %s608_s12 = scalar_lea.vmem [#allocation10], %s7663_s9  ;;  %s4354_s9 = scalar_lea.sflag [#allocation4], %s6462_s23 }
0x1770   : > { %s4367_s17 = sshll.u32 %s608_s12, 4  ;;  %s7533_s17 = int_to_ptr.vmem [resolvable:$true] %s4367_s17 }
0x1771   : > { %5674 = vmatprep.subr.bf16.mxu0 %v5673_v51  ;;  %s6082_s13 = scalar_lea.vmem %s7533_s17, 256  ;;  %p6089_p12 = scmp.lt.s32.totalorder %s7533_s17, %s6087_s29 }
0x1772   : > { %5676 = vmatpush3.bf16.msra.mxu0 %v5673_v51  ;;  %v4677_v51 = vld [vmem:[%s7657_s11 + $0x90] sm:$0xff]  ;;  %p6083_p10 = scmp.ne.s32.totalorder %s7533_s17, %s6082_s13 }
0x1773   : > { %5678 = vmatprep.subr.bf16.mxu0 %v5677_v31 }
0x1774   : > { %p6084_p3 = pnand %p6083_p10, %p6411_p5 }
0x1776   : > { %5680 = vmatpush3.bf16.msra.mxu0 %v5677_v31  ;;  %p6085_p7 = pneg %p6084_p3 }
0x17e2   : > { %v3808_v60 = vpop.xlane.xlu0 %3807 }
0x17e3   : > { %5956 = vrcp.f32 %v3808_v60  ;;  %v5701_v60 = vpack.c.bf16 %v4678_v23, %v4677_v51 }
0x17e6   : > { %v3805_v54 = vpop.xlane.xlu0 %3804 }
0x17e7   : > { %5958 = vrcp.f32 %v3805_v54  ;;  %v4679_v54 = vld [vmem:[%s7657_s11 + $0xa0] sm:$0xff] }
0x17ea   : > { %v5877_v32 = vpop.permute.xlu0 %5876 }
0x17eb   : > { %v5879_v35 = vunpack.i.h.bf16 %v5877_v32  ;;  %v5878_v38 = vunpack.i.l.bf16 %v5877_v32  ;;  %v4680_v32 = vld [vmem:[%s7657_s11 + $0xa8] sm:$0xff] }
0x17ed   : > { %v5661_v21 = vpack.c.bf16 %v5879_v35, %v5878_v38  ;;  %v5957_v40 = vpop.eup %5956  ;;  %v5705_v35 = vpack.c.bf16 %v4680_v32, %v4679_v54  ;;  %v4681_v38 = vld [vmem:[%s7657_s11 + $0xb0] sm:$0xff] }
0x17ee   : > { %v3812_v46 = vmul.f32 %v5957_v40, %v5953_v9 }
0x17ef   : > { %5662 = vmatprep.subr.bf16.mxu1 %v5661_v21 }
0x17f0   : > { %5664 = vmatpush3.bf16.msra.mxu1 %v5661_v21  ;;  %v4682_v21 = vld [vmem:[%s7657_s11 + $0xb8] sm:$0xff] }
0x17f1   : > { %v5959_v42 = vpop.eup %5958  ;;  %5682 = vmatprep.subr.bf16.mxu1 %v5681_v11  ;;  %v5709_v40 = vpack.c.bf16 %v4682_v21, %v4681_v38 }
0x17f2   : > { %v3811_v43 = vmul.f32 %v5959_v42, %v5955_v45  ;;  %v4683_v42 = vld [vmem:[%s7657_s11 + $0xc0] sm:$0xff] }
0x17f4   : > { %5226 = vmatprep.mubr.msk.f32.mxu1 %vm1186_vm3, %v3811_v43  ;;  %v4684_v43 = vld [vmem:[%s7657_s11 + $0xc8] sm:$0xff] }
0x17f5   : > { %5227 = vmatmul.mubr.msk.f32.vlgmr.msra.gmra.mrb[40].mxu1 %vm1186_vm3, %v3812_v46  ;;  %v5713_v46 = vpack.c.bf16 %v4684_v43, %v4683_v42 }
0x17f6   : > { %5684 = vmatpush3.bf16.msra.mxu1 %v5681_v11 }
0x17f7   : > { %5686 = vmatprep.subr.bf16.mxu1 %v5685_v0 }
0x17fa   : > { %5688 = vmatpush3.bf16.msra.mxu1 %v5685_v0 }
0x17fb   : > { %5690 = vmatprep.subr.bf16.mxu1 %v5689_v2 }
0x17fe   : > { %5692 = vmatpush3.bf16.msra.mxu1 %v5689_v2 }
0x17ff   : > { %5694 = vmatprep.subr.bf16.mxu1 %v5693_v18 }
0x1802   : > { %5696 = vmatpush3.bf16.msra.mxu1 %v5693_v18 }
0x1803   : > { %5698 = vmatprep.subr.bf16.mxu1 %v5697_v41 }
0x18c8   : > { %v5228_v47 = vpop.f32.mrb[40].mxu1 }
0x18c9   : > { %v3893_v3 = vpop.f32.mrb[41].mxu1 }
0x18ca   : > { %5245 = vmatprep.mubr.msk.f32.mxu0 %vm706_vm1, %v3893_v3  ;;  %v4686_v3 = vld [vmem:[%s7657_s11 + $0xd8] sm:$0xff] }
0x18cb   : > { %5246 = vmatmul.mubr.msk.f32.vlgmr.msra.gmra.mrb[22].mxu0 %vm706_vm1, %v5228_v47  ;;  %v4685_v47 = vld [vmem:[%s7657_s11 + $0xd0] sm:$0xff] }
0x199e   : > { %v5247_v53 = vpop.f32.mrb[22].mxu0 }
0x199f   : > { %v3974_v16 = vpop.f32.mrb[23].mxu0  ;;  %v3986_v30 = vadd.f32 %v5247_v53, %v7015_v29  ;;  %v5717_v53 = vpack.c.bf16 %v4686_v3, %v4685_v47 }
0x19a0   : > { %v3985_v39 = vadd.f32 %v3974_v16, %v7017_v17  ;;  %v4688_v16 = vld [vmem:[%s7657_s11 + $0xe8] sm:$0xff] }
0x19a1   : > { %v7427_v61 = vadd.f32 %v4658_v57, %v3986_v30 }
0x19a2   : > { %v7425_v59 = vadd.f32 %v4658_v57, %v3985_v39  ;;  %v4687_v57 = vld [vmem:[%s7657_s11 + $0xe0] sm:$0xff]  ;;  %v4689_v39 = vld [vmem:[%s7657_s11 + $0xf0] sm:$0xff] }
0x19a3   : > { %v4004_v48 = vsel %vm706_vm1, %v7427_v61, 0.0  ;;  %v5721_v30 = vpack.c.bf16 %v4688_v16, %v4687_v57 }
0x19a4   : > { %v4001_v36 = vsel %vm706_vm1, %v7425_v59, 0.0 }
0x19a5   : > { %4002 = vadd.xlane.f32.xlu1 %v4001_v36  ;;  %v4690_v36 = vld [vmem:[%s7657_s11 + $0xf8] sm:$0xff] }
0x19a9   : > { %4005 = vadd.xlane.f32.xlu1 %v4004_v48  ;;  %v5725_v48 = vpack.c.bf16 %v4690_v36, %v4689_v39 }
0x1a32   : > { %v4003_v49 = vpop.xlane.xlu1 %4002 }
0x1a33   : > { %v4007_v28 = vmul.f32 0.015625, %v4003_v49  ;;  %v4255_v49 = vld [vmem:[#allocation8] sm:$0xff] }
0x1a35   : > { %v4009_v50 = vsub.f32 %v7425_v59, %v4007_v28  ;;  %v4256_v28 = vld [vmem:[#allocation8 + $0x8] sm:$0xff] }
0x1a36   : > { %v4006_v37 = vpop.xlane.xlu1 %4005 }
0x1a37   : > { %v4008_v29 = vmul.f32 0.015625, %v4006_v37  ;;  %v4011_v24 = vmul.f32 %v4009_v50, %v4009_v50  ;;  %v5729_v37 = vpack.c.bf16 %v4256_v28, %v4255_v49 }
0x1a39   : > { %v4010_v17 = vsub.f32 %v7427_v61, %v4008_v29  ;;  %v4013_v25 = vsel %vm706_vm1, %v4011_v24, 0.0  ;;  %v4258_v29 = vld [vmem:[#allocation8 + $0x18] sm:$0xff]  ;;  %5730 = vmatprep.subr.bf16.mxu0 %v5729_v37 }
0x1a3a   : > { %4014 = vadd.xlane.f32.xlu1 %v4013_v25  ;;  %v4260_v25 = vld [vmem:[#allocation8 + $0x28] sm:$0xff]  ;;  %5732 = vmatpush3.bf16.msra.mxu0 %v5729_v37 }
0x1a3b   : > { %v4012_v4 = vmul.f32 %v4010_v17, %v4010_v17 }
0x1a3d   : > { %v4016_v55 = vsel %vm706_vm1, %v4012_v4, 0.0 }
0x1a3e   : > { %4017 = vadd.xlane.f32.xlu1 %v4016_v55  ;;  %v4672_v55 = vld [vmem:[%s7660_s21 + $0x1] ss:$0 sm:$0xff] }
0x1ac7   : > { %v4015_v44 = vpop.xlane.xlu1 %4014 }
0x1ac8   : > { %v4019_v27 = vmul.f32 0.015625, %v4015_v44  ;;  %v4262_v44 = vld [vmem:[#allocation8 + $0x38] sm:$0xff] }
0x1aca   : > { %v4021_v9 = vadd.f32 1e-05, %v4019_v27 }
0x1acb   : > { %v4018_v10 = vpop.xlane.xlu1 %4017 }
0x1acc   : > { %5960 = vrsqrt.f32 %v4021_v9  ;;  %v4020_v45 = vmul.f32 0.015625, %v4018_v10 }
0x1ace   : > { %v4022_v13 = vadd.f32 1e-05, %v4020_v45  ;;  %v4692_v45 = vld [vmem:[%s7661_s22 + $0x1] ss:$0 sm:$0xff] }
0x1ad0   : > { %5962 = vrsqrt.f32 %v4022_v13 }
0x1ad6   : > { %v5961_v14 = vpop.eup %5960 }
0x1ad7   : > { %v4025_v19 = vmul.f32 %v5961_v14, %v4009_v50  ;;  %v4257_v50 = vld [vmem:[#allocation8 + $0x10] sm:$0xff] }
0x1ad8   : > { %v5733_v24 = vpack.c.bf16 %v4258_v29, %v4257_v50 }
0x1ad9   : > { %v4033_v22 = vmul.f32 %v4661_v15, %v4025_v19 }
0x1ada   : > { %v5963_v26 = vpop.eup %5962  ;;  %5734 = vmatprep.subr.bf16.mxu0 %v5733_v24 }
0x1adb   : > { %v4026_v33 = vmul.f32 %v5963_v26, %v4010_v17  ;;  %v4041_v34 = vadd.f32 %v4662_v20, %v4033_v22  ;;  %v4259_v17 = vld [vmem:[#allocation8 + $0x20] sm:$0xff]  ;;  %5736 = vmatpush3.bf16.msra.mxu0 %v5733_v24 }
0x1adc   : > { %v5737_v4 = vpack.c.bf16 %v4260_v25, %v4259_v17 }
0x1add   : > { %v4034_v56 = vmul.f32 %v4661_v15, %v4026_v33  ;;  %5264 = vmatprep.mubr.msk.f32.mxu1 %vm706_vm1, %v4041_v34 }
0x1ade   : > { %5738 = vmatprep.subr.bf16.mxu0 %v5737_v4 }
0x1adf   : > { %v4042_v31 = vadd.f32 %v4662_v20, %v4034_v56  ;;  %5740 = vmatpush3.bf16.msra.mxu0 %v5737_v4 }
0x1ae1   : > { %5265 = vmatmul.mubr.msk.f32.vlgmr.msra.gmra.mrb[42].mxu1 %vm706_vm1, %v4042_v31 }
0x1ae2   : > { %5700 = vmatpush3.bf16.msra.mxu1 %v5697_v41  ;;  %v4261_v41 = vld [vmem:[#allocation8 + $0x30] sm:$0xff] }
0x1ae3   : > { %5702 = vmatprep.subr.bf16.mxu1 %v5701_v60  ;;  %v5741_v27 = vpack.c.bf16 %v4262_v44, %v4261_v41 }
0x1ae5   : > { %5742 = vmatprep.subr.bf16.mxu0 %v5741_v27 }
0x1ae6   : > { %5704 = vmatpush3.bf16.msra.mxu1 %v5701_v60  ;;  %5744 = vmatpush3.bf16.msra.mxu0 %v5741_v27 }
0x1ae7   : > { %5706 = vmatprep.subr.bf16.mxu1 %v5705_v35 }
0x1aea   : > { %5708 = vmatpush3.bf16.msra.mxu1 %v5705_v35 }
0x1aeb   : > { %5710 = vmatprep.subr.bf16.mxu1 %v5709_v40 }
0x1aee   : > { %5712 = vmatpush3.bf16.msra.mxu1 %v5709_v40 }
0x1aef   : > { %5714 = vmatprep.subr.bf16.mxu1 %v5713_v46 }
0x1af2   : > { %5716 = vmatpush3.bf16.msra.mxu1 %v5713_v46 }
0x1af3   : > { %5718 = vmatprep.subr.bf16.mxu1 %v5717_v53 }
0x1af6   : > { %5720 = vmatpush3.bf16.msra.mxu1 %v5717_v53 }
0x1af7   : > { %5722 = vmatprep.subr.bf16.mxu1 %v5721_v30 }
0x1afa   : > { %5724 = vmatpush3.bf16.msra.mxu1 %v5721_v30 }
0x1afb   : > { %5726 = vmatprep.subr.bf16.mxu1 %v5725_v48 }
0x1afe   : > { %5728 = vmatpush3.bf16.msra.mxu1 %v5725_v48 }
0x1bb4   : > { %v5266_v12 = vpop.f32.mrb[42].mxu1 }
0x1bb5   : > { %v4138_v58 = vadd.f32 %v5266_v12, %v4672_v55  ;;  %v4132_v11 = vpop.f32.mrb[43].mxu1 }
0x1bb6   : > { %v4133_v62 = vadd.f32 %v4672_v55, %v4132_v11 }
0x1bb7   : > { %v4144_v63 = vmul.f32 0.70710677, %v4138_v58  ;;  %v4142_v18 = vmul.f32 0.5, %v4138_v58 }
0x1bb8   : > { %v4143_v0 = vmul.f32 0.70710677, %v4133_v62  ;;  %v4141_v5 = vmul.f32 0.5, %v4133_v62 }
0x1bb9   : > { %5964 = verf.f32 %v4144_v63 }
0x1bba   : > { %5966 = verf.f32 %v4143_v0 }
0x1bc3   : > { %v5965_v1 = vpop.eup %5964 }
0x1bc4   : > { %v5967_v52 = vpop.eup %5966  ;;  %v4148_v2 = vadd.f32 1.0, %v5965_v1 }
0x1bc5   : > { %v4147_v6 = vadd.f32 1.0, %v5967_v52 }
0x1bc6   : > { %v4150_v8 = vmul.f32 %v4148_v2, %v4142_v18 }
0x1bc7   : > { %v4149_v7 = vmul.f32 %v4147_v6, %v4141_v5 }
0x1bc9   : > { %5299 = vmatprep.mubr.f32.mxu1 %v4149_v7 }
0x1bca   : > { %5300 = vmatmul.mubr.f32.vlgmr.msra.gmra.mrb[44].mxu1 %v4150_v8 }
0x1c9d   : > { %v5301_v9 = vpop.f32.mrb[44].mxu1 }
0x1c9e   : > { %v4244_v10 = vadd.f32 %v5301_v9, %v7427_v61  ;;  %v4234_v13 = vpop.f32.mrb[45].mxu1  ;;  %v4693_v61 = vld [vmem:[%s7664_s19] ss:$0 sm:$0xff]  ;;  %s6088_s19 = scalar_lea.vmem %s6087_s29, 512 }
0x1c9f   : > { %v4243_v14 = vadd.f32 %v4234_v13, %v7425_v59  ;;  %p6090_p1 = scmp.lt.s32.totalorder %s6088_s19, %s6082_s13 }
0x1ca0   : > { %v4254_v19 = vadd.f32 %v4692_v45, %v4244_v10 }
0x1ca1   : > { %v4253_v15 = vadd.f32 %v4692_v45, %v4243_v14  ;;  %p6091_p2 = por %p6090_p1, %p6089_p12 }
0x1ca3   : > { %5318 = vmatprep.mubr.msk.f32.mxu0 %vm706_vm1, %v4253_v15  ;;  %p6092_p4 = pnand %p6091_p2, %p6085_p7 }
0x1ca4   : > { %5319 = vmatmul.mubr.msk.f32.vlgmr.msra.gmra.mrb[24].mxu0 %vm706_vm1, %v4254_v19 }
0x1d77   : > { %v5320_v20 = vpop.f32.mrb[24].mxu0 }
0x1d78   : > { %v4348_v59 = vadd.f32 %v5320_v20, %v4693_v61  ;;  %v4342_v22 = vpop.f32.mrb[25].mxu0 }
0x1d79   : > { %v4343_v26 = vadd.f32 %v4693_v61, %v4342_v22 }
0x1d7a   : > { %4352 = vst [vmem:[%s608_s12 + $0x8] sm:$0xff] %v4348_v59 }
0x1d7b   : > { %4351 = vst [vmem:[%s608_s12] sm:$0xff] %v4343_v26 }
0x1d7c   : > { %6095 = shalt.err (!%p6092_p4)
}
0x1d7d   : > { %s6096_s12 = scalar_lea.hbm %s7538_s18, 256  ;;  %s6100_s15 = scalar_lea.hbm %s7665_s0, 512 }
0x1d7e   : > { %p6097_p9 = scmp.ne.s32.totalorder %s7538_s18, %s6096_s12  ;;  %p6101_p8 = scmp.lt.u32.totalorder %s7538_s18, %s7665_s0 }
0x1d7f   : > { %p6102_p13 = scmp.lt.u32.totalorder %s6100_s15, %s6096_s12  ;;  %p6104_p10 = scmp.lt.u32.totalorder %s6096_s12, %s7538_s18 }
0x1d80   : > { %p6098_p0 = pnand %p6097_p9, %p6411_p5 }
0x1d81   : > { %p6103_p6 = por %p6102_p13, %p6101_p8 }
0x1d82   : > { %p6099_p11 = pneg %p6098_p0 }
0x1d83   : > { %p6105_p3 = por %p6104_p10, %p6103_p6 }
0x1d85   : > { %p6106_p7 = pnand %p6105_p3, %p6099_p11 }
0x1d87   : > { %6109 = shalt.err (!%p6106_p7)
}
0x1d88   : > { %s6167_s13 = smov 128   ;;  %s6168_s19 = smov 8  }
0x1d89   : > { %5771 = dma.vmem_to_hbm [thread:$0]  (%p6411_p5), %s7533_s17, 256, %s7538_s18, %s4354_s9, %s6167_s13, %s6167_s13, %s6168_s19  }
0x1d8a PF: > { %s7666_s1 = sld [smem:[#allocation15_spill]]  ;;  %s7667_s2 = sld [smem:[#allocation16_spill]] }
0x1d8b   : > { %p7669_p1 = scmp.ge.s32.totalorder %s6156_s27, 2 }
0x1d90   : > { %s4382_s28 = sand.u32 1, %s7666_s1   ;;  %p7668_p12 = scmp.ne.s32.totalorder %s7667_s2, 0 }
0x1d91   : > { %s4383_s12 = scalar_lea.sflag [#allocation4], %s4382_s28 }
0x1d92   : > { %p5788_p2 = pnand %p7669_p1, %p7668_p12 }
0x1d94   : > { %6139 = dma.done.wait (!%p5788_p2), %s4383_s12, 256  }
0x1d95   : > { %6141 = vsyncadd (!%p5788_p2), %s4383_s12, 4294967040  ;;  %s7670_s15 = smov %s6407_s24  ;;  %p32_p4 = scmp.ge.s32.totalorder %s6397_s10, 4  }
0x1d96   : > { %s7671_s24 = smov %s6148_s25  ;;  %s7672_s25 = smov %s6152_s26 }
0x1d97   : > { %s7673_s26 = smov %s7670_s15  ;;  %s7674_s27 = smov %s6397_s10 }
0x1d98   :  { %34 = sbr.rel (!%p32_p4) target bundleno = 20 (0x14), region = 157 }
0x1d9f   :  { %4388 = vsyncpa [#allocation3], 1 }
0x1da0   :  { %4390 = vsyncpa [#allocation3 + $0x1], 1 }
0x1da1   :  { %4391 = vsyncpa [#allocation6], 1 }
0x1da2   :  { %4392 = vsyncpa [#allocation9], 1 }
0x1da3   :  { %4393 = vsyncpa [#allocation4], 1 }
0x1da4   :  { %4395 = vsyncpa [#allocation4 + $0x1], 1 }

</bundles_post_ra>
